<compile_context>
chip_gen: v5e
topology: v5e:2x2
jax: 0.10.0
libtpu: 0.0.40
codegen_flags: <defaults>
</compile_context>

<pallas_src>
import jax
import jax.numpy as jnp
from jax.experimental import pallas as pl
from jax.experimental.pallas import tpu as pltpu


def _round_up(n, m):
    return ((n + m - 1) // m) * m


# ---------------------------------------------------------------------------
# Kernel
# ---------------------------------------------------------------------------
def fcnn_kernel(x_ref, w1_ref, b1_ref, w2_ref, b2_ref, w3_ref, b3_ref, out_ref):
    # fc1 + ReLU  (dropout1 is identity in eval mode)
    h1 = jnp.dot(x_ref[...], w1_ref[...],
                 preferred_element_type=jnp.float32) + b1_ref[...]
    h1 = jnp.maximum(h1, 0.0)                                     # [TB, 512] f32

    # fc2 with BatchNorm1d folded in (running stats), then ReLU
    # (dropout2 is identity in eval mode)
    h2 = jnp.dot(h1.astype(jnp.bfloat16), w2_ref[...],
                 preferred_element_type=jnp.float32) + b2_ref[...]
    h2 = jnp.maximum(h2, 0.0)                                     # [TB, 256] f32

    # fc3, N padded to a lane-dense 128; real result lives in column 0
    out_ref[...] = jnp.dot(h2.astype(jnp.bfloat16), w3_ref[...],
                           preferred_element_type=jnp.float32) + b3_ref[...]


# ---------------------------------------------------------------------------
# Parameter prep: BN folding + lane padding + bf16 casts
# ---------------------------------------------------------------------------
def prepare_params(params, d_in):
    eps = 1e-5
    scale = params["bn_gamma"] * jax.lax.rsqrt(params["bn_var"] + eps)   # [1,250]
    w2_fold = params["w2"] * scale                                        # [500,250]
    b2_fold = (params["b2"] - params["bn_mean"]) * scale + params["bn_beta"]

    d_in_pad = _round_up(d_in, 128)                 # 32  -> 128
    h1_pad = _round_up(params["w1"].shape[1], 128)  # 500 -> 512
    h2_pad = _round_up(w2_fold.shape[1], 128)       # 250 -> 256
    out_pad = 128                                   # 1   -> 128 (lane-dense output)

    def pad2(a, rows, cols):
        return jnp.pad(a, ((0, rows - a.shape[0]), (0, cols - a.shape[1])))

    # Zero-padding is exact: padded input rows see zero x, padded hidden columns
    # get zero weight + zero bias -> 0 through ReLU -> zero fc3 rows -> 0 output.
    return {
        "w1": pad2(params["w1"], d_in_pad, h1_pad).astype(jnp.bfloat16),
        "b1": pad2(params["b1"], 1, h1_pad).astype(jnp.float32),
        "w2": pad2(w2_fold, h1_pad, h2_pad).astype(jnp.bfloat16),
        "b2": pad2(b2_fold, 1, h2_pad).astype(jnp.float32),
        "w3": pad2(params["w3"], h2_pad, out_pad).astype(jnp.bfloat16),
        "b3": pad2(params["b3"], 1, out_pad).astype(jnp.float32),
        "d_in_pad": d_in_pad,
        "out_pad": out_pad,
    }


# ---------------------------------------------------------------------------
# Wrapper
# ---------------------------------------------------------------------------
def fcnn_forward(x, pp, *, tile_b=256):
    """x: [B, window_size * num_features] float32 -> [B, 1] float32."""
    B, d_in = x.shape
    d_in_pad = pp["d_in_pad"]
    out_pad = pp["out_pad"]
    h1_pad = pp["w1"].shape[1]
    h2_pad = pp["w2"].shape[1]

    b_pad = _round_up(max(B, 1), tile_b)
    xp = jnp.pad(x, ((0, b_pad - B), (0, d_in_pad - d_in))).astype(jnp.bfloat16)

    grid = (b_pad // tile_b,)
    const = lambda i: (0, 0)

    flops = 2 * b_pad * (d_in_pad * h1_pad + h1_pad * h2_pad + h2_pad * out_pad)
    bytes_accessed = (
        xp.size * xp.dtype.itemsize
        + sum(int(pp[k].size) * pp[k].dtype.itemsize
              for k in ("w1", "b1", "w2", "b2", "w3", "b3"))
        + b_pad * out_pad * 4
    )

    out = pl.pallas_call(
        fcnn_kernel,
        out_shape=jax.ShapeDtypeStruct((b_pad, out_pad), jnp.float32),
        grid=grid,
        in_specs=[
            pl.BlockSpec((tile_b, d_in_pad), lambda i: (i, 0)),   # x: streamed
            pl.BlockSpec((d_in_pad, h1_pad), const),              # weights: resident
            pl.BlockSpec((1, h1_pad), const),
            pl.BlockSpec((h1_pad, h2_pad), const),
            pl.BlockSpec((1, h2_pad), const),
            pl.BlockSpec((h2_pad, out_pad), const),
            pl.BlockSpec((1, out_pad), const),
        ],
        out_specs=pl.BlockSpec((tile_b, out_pad), lambda i: (i, 0)),
        compiler_params=pltpu.CompilerParams(
            dimension_semantics=("parallel",)),
        cost_estimate=pl.CostEstimate(
            flops=flops, transcendentals=0, bytes_accessed=bytes_accessed),
    )(xp, pp["w1"], pp["b1"], pp["w2"], pp["b2"], pp["w3"], pp["b3"])

    return out[:B, :1]


# ---------------------------------------------------------------------------
# Deterministic synthetic parameters (PyTorch Linear stores [out, in]; we keep
# the transpose [in, out] so the kernel does plain x @ W + b).
# ---------------------------------------------------------------------------
def init_params(key, window_size, num_features):
    d_in = window_size * num_features
    ks = jax.random.split(key, 8)

    def lin(kw, kb, fan_in, fan_out):
        bound = 1.0 / jnp.sqrt(fan_in)
        w = jax.random.uniform(kw, (fan_in, fan_out), jnp.float32, -bound, bound)
        b = jax.random.uniform(kb, (1, fan_out), jnp.float32, -bound, bound)
        return w, b

    w1, b1 = lin(ks[0], ks[1], d_in, 500)
    w2, b2 = lin(ks[2], ks[3], 500, 250)
    w3, b3 = lin(ks[4], ks[5], 250, 1)

    bn_gamma = 1.0 + 0.1 * jax.random.normal(ks[6], (1, 250), jnp.float32)
    bn_beta = 0.1 * jax.random.normal(ks[7], (1, 250), jnp.float32)
    bn_mean = 0.05 * jnp.arange(250, dtype=jnp.float32).reshape(1, 250) / 250.0
    bn_var = jnp.ones((1, 250), jnp.float32) * 1.5

    return {
        "w1": w1, "b1": b1,
        "w2": w2, "b2": b2,
        "bn_gamma": bn_gamma, "bn_beta": bn_beta,
        "bn_mean": bn_mean, "bn_var": bn_var,
        "w3": w3, "b3": b3,
    }


# TODO(synk): Dropout is implemented as identity (eval mode). Training-mode
# dropout would require pltpu.prng_seed / prng_random_bits masking in-kernel.

if __name__ == "__main__":
    window_size = 8
    num_features = 4
    batch = 2

    key = jax.random.PRNGKey(0)
    k_params, k_x = jax.random.split(key)
    params = init_params(k_params, window_size, num_features)
    x = jax.random.normal(k_x, (batch, window_size * num_features), jnp.float32)

    pp = prepare_params(params, window_size * num_features)
    out = fcnn_forward(x, pp)
    jax.block_until_ready(out)

    # Pure-JAX f32 reference with the original (un-folded, un-padded) params.
    h1 = jnp.maximum(x @ params["w1"] + params["b1"], 0.0)
    h2 = h1 @ params["w2"] + params["b2"]
    inv_std = jax.lax.rsqrt(params["bn_var"] + 1e-5)
    h2 = (h2 - params["bn_mean"]) * inv_std * params["bn_gamma"] + params["bn_beta"]
    h2 = jnp.maximum(h2, 0.0)
    ref = h2 @ params["w3"] + params["b3"]

    assert out.shape == (batch, 1) and out.dtype == jnp.float32
    assert bool(jnp.allclose(out, ref, rtol=1e-1, atol=1e-1)), (out, ref)
    print("KERNEL_OK")
</pallas_src>

<mosaic_0001>
module attributes {stable_mosaic.version = 11 : i64} {
  func.func @fcnn_kernel(%arg0: i32, %arg1: memref<256x128xbf16, #tpu.memory_space<vmem>>, %arg2: memref<128x512xbf16, #tpu.memory_space<vmem>>, %arg3: memref<1x512xf32, #tpu.memory_space<vmem>>, %arg4: memref<512x256xbf16, #tpu.memory_space<vmem>>, %arg5: memref<1x256xf32, #tpu.memory_space<vmem>>, %arg6: memref<256x128xbf16, #tpu.memory_space<vmem>>, %arg7: memref<1x128xf32, #tpu.memory_space<vmem>>, %arg8: memref<256x128xf32, #tpu.memory_space<vmem>>) attributes {dimension_semantics = [#tpu.dimension_semantics<parallel>], iteration_bounds = array<i64: 1>, scalar_prefetch = 0 : i64, scratch_operands = 0 : i64, tpu.core_type = #tpu.core_type<tc>, window_params = [{transform_indices = @transform_0, window_bounds = array<i64: 256, 128>}, {pipeline_mode = #tpu.pipeline_mode<synchronous>, transform_indices = @transform_1, window_bounds = array<i64: 128, 512>}, {pipeline_mode = #tpu.pipeline_mode<synchronous>, transform_indices = @transform_2, window_bounds = array<i64: 1, 512>}, {pipeline_mode = #tpu.pipeline_mode<synchronous>, transform_indices = @transform_3, window_bounds = array<i64: 512, 256>}, {pipeline_mode = #tpu.pipeline_mode<synchronous>, transform_indices = @transform_4, window_bounds = array<i64: 1, 256>}, {pipeline_mode = #tpu.pipeline_mode<synchronous>, transform_indices = @transform_5, window_bounds = array<i64: 256, 128>}, {pipeline_mode = #tpu.pipeline_mode<synchronous>, transform_indices = @transform_6, window_bounds = array<i64: 1, 128>}, {transform_indices = @transform_7, window_bounds = array<i64: 256, 128>}]} {
    %c0 = arith.constant 0 : index
    %c0_0 = arith.constant 0 : index
    %0 = vector.load %arg1[%c0, %c0_0] : memref<256x128xbf16, #tpu.memory_space<vmem>>, vector<256x128xbf16>
    %c0_1 = arith.constant 0 : index
    %c0_2 = arith.constant 0 : index
    %1 = vector.load %arg2[%c0_1, %c0_2] : memref<128x512xbf16, #tpu.memory_space<vmem>>, vector<128x512xbf16>
    %cst = arith.constant dense<0.000000e+00> : vector<256x512xf32>
    %2 = tpu.matmul %0, %1, %cst {dimension_numbers = #tpu.dot_dimension_numbers<[1], [0], [0], [1], [0, 0, 1, 1], [], []>} : vector<256x128xbf16>, vector<128x512xbf16>, vector<256x512xf32> -> vector<256x512xf32>
    %c0_3 = arith.constant 0 : index
    %c0_4 = arith.constant 0 : index
    %3 = vector.load %arg3[%c0_3, %c0_4] : memref<1x512xf32, #tpu.memory_space<vmem>>, vector<1x512xf32>
    %4 = vector.broadcast %3 : vector<1x512xf32> to vector<256x512xf32>
    %5 = arith.addf %2, %4 : vector<256x512xf32>
    %cst_5 = arith.constant 0.000000e+00 : f32
    %6 = vector.broadcast %cst_5 : f32 to vector<256x512xf32>
    %7 = arith.maximumf %5, %6 : vector<256x512xf32>
    %8 = arith.truncf %7 : vector<256x512xf32> to vector<256x512xbf16>
    %c0_6 = arith.constant 0 : index
    %c0_7 = arith.constant 0 : index
    %9 = vector.load %arg4[%c0_6, %c0_7] : memref<512x256xbf16, #tpu.memory_space<vmem>>, vector<512x256xbf16>
    %cst_8 = arith.constant dense<0.000000e+00> : vector<256x256xf32>
    %10 = tpu.matmul %8, %9, %cst_8 {dimension_numbers = #tpu.dot_dimension_numbers<[1], [0], [0], [1], [0, 0, 1, 1], [], []>} : vector<256x512xbf16>, vector<512x256xbf16>, vector<256x256xf32> -> vector<256x256xf32>
    %c0_9 = arith.constant 0 : index
    %c0_10 = arith.constant 0 : index
    %11 = vector.load %arg5[%c0_9, %c0_10] : memref<1x256xf32, #tpu.memory_space<vmem>>, vector<1x256xf32>
    %12 = vector.broadcast %11 : vector<1x256xf32> to vector<256x256xf32>
    %13 = arith.addf %10, %12 : vector<256x256xf32>
    %cst_11 = arith.constant 0.000000e+00 : f32
    %14 = vector.broadcast %cst_11 : f32 to vector<256x256xf32>
    %15 = arith.maximumf %13, %14 : vector<256x256xf32>
    %16 = arith.truncf %15 : vector<256x256xf32> to vector<256x256xbf16>
    %c0_12 = arith.constant 0 : index
    %c0_13 = arith.constant 0 : index
    %17 = vector.load %arg6[%c0_12, %c0_13] : memref<256x128xbf16, #tpu.memory_space<vmem>>, vector<256x128xbf16>
    %cst_14 = arith.constant dense<0.000000e+00> : vector<256x128xf32>
    %18 = tpu.matmul %16, %17, %cst_14 {dimension_numbers = #tpu.dot_dimension_numbers<[1], [0], [0], [1], [0, 0, 1, 1], [], []>} : vector<256x256xbf16>, vector<256x128xbf16>, vector<256x128xf32> -> vector<256x128xf32>
    %c0_15 = arith.constant 0 : index
    %c0_16 = arith.constant 0 : index
    %19 = vector.load %arg7[%c0_15, %c0_16] : memref<1x128xf32, #tpu.memory_space<vmem>>, vector<1x128xf32>
    %20 = vector.broadcast %19 : vector<1x128xf32> to vector<256x128xf32>
    %21 = arith.addf %18, %20 : vector<256x128xf32>
    %c0_17 = arith.constant 0 : index
    %c0_18 = arith.constant 0 : index
    %22 = vector.load %arg8[%c0_17, %c0_18] : memref<256x128xf32, #tpu.memory_space<vmem>>, vector<256x128xf32>
    tpu.vector_store %arg8[%c0_17, %c0_18], %21 {strides = array<i32>} : memref<256x128xf32, #tpu.memory_space<vmem>>, vector<256x128xf32>,
    return
  }
  func.func @transform_0(%arg0: i32) -> (i32, i32) {
    %c0_i32 = arith.constant 0 : i32
    %c0_i32_0 = arith.constant 0 : i32
    return %arg0, %c0_i32 : i32, i32
  }
  func.func @transform_1(%arg0: i32) -> (i32, i32) {
    %c0_i32 = arith.constant 0 : i32
    %c0_i32_0 = arith.constant 0 : i32
    %c0_i32_1 = arith.constant 0 : i32
    return %c0_i32, %c0_i32_0 : i32, i32
  }
  func.func @transform_2(%arg0: i32) -> (i32, i32) {
    %c0_i32 = arith.constant 0 : i32
    %c0_i32_0 = arith.constant 0 : i32
    %c0_i32_1 = arith.constant 0 : i32
    return %c0_i32, %c0_i32_0 : i32, i32
  }
  func.func @transform_3(%arg0: i32) -> (i32, i32) {
    %c0_i32 = arith.constant 0 : i32
    %c0_i32_0 = arith.constant 0 : i32
    %c0_i32_1 = arith.constant 0 : i32
    return %c0_i32, %c0_i32_0 : i32, i32
  }
  func.func @transform_4(%arg0: i32) -> (i32, i32) {
    %c0_i32 = arith.constant 0 : i32
    %c0_i32_0 = arith.constant 0 : i32
    %c0_i32_1 = arith.constant 0 : i32
    return %c0_i32, %c0_i32_0 : i32, i32
  }
  func.func @transform_5(%arg0: i32) -> (i32, i32) {
    %c0_i32 = arith.constant 0 : i32
    %c0_i32_0 = arith.constant 0 : i32
    %c0_i32_1 = arith.constant 0 : i32
    return %c0_i32, %c0_i32_0 : i32, i32
  }
  func.func @transform_6(%arg0: i32) -> (i32, i32) {
    %c0_i32 = arith.constant 0 : i32
    %c0_i32_0 = arith.constant 0 : i32
    %c0_i32_1 = arith.constant 0 : i32
    return %c0_i32, %c0_i32_0 : i32, i32
  }
  func.func @transform_7(%arg0: i32) -> (i32, i32) {
    %c0_i32 = arith.constant 0 : i32
    %c0_i32_0 = arith.constant 0 : i32
    return %arg0, %c0_i32 : i32, i32
  }
}

</mosaic_0001>

<bundles_post_ra>
// kernel: tpu_custom_call.1
= control target key start
LH: loop header
LB: loop body
LE: loop exit
PB: predicated region body
PF: predicated region fallthrough
CT: control target
= control target key end

     0   :  { %12 = vsyncpa [#allocation3], 0  ;;  %s4329_s0 = inlined_call_operand.hbm [shape: bf16[256,128], index: 0, kind: input, shape index: {}]   ;;  %s4330_s1 = inlined_call_operand.hbm [shape: bf16[128,512], index: 1, kind: input, shape index: {}]   ;;  %s4331_s2 = inlined_call_operand.hbm [shape: f32[1,512], index: 2, kind: input, shape index: {}]   ;;  %s4332_s3 = inlined_call_operand.hbm [shape: bf16[512,256], index: 3, kind: input, shape index: {}]   ;;  %s4333_s4 = inlined_call_operand.vmem [shape: f32[1,256], index: 4, kind: input, shape index: {}]   ;;  %s4334_s5 = inlined_call_operand.hbm [shape: bf16[256,128], index: 5, kind: input, shape index: {}]   ;;  %s4335_s6 = inlined_call_operand.vmem [shape: f32[1,128], index: 6, kind: input, shape index: {}]   ;;  %s4336_s7 = inlined_call_operand.hbm [shape: f32[256,128], index: 7, kind: output, shape index: {}]  }
   0x1   :  { %13 = vsyncpa [#allocation6], 0 }
   0x2   :  { %14 = vsyncpa [#allocation9], 0  ;;  %s33_s26 = sshll.u32 %s4330_s1, 4  ;;  %s34_s26 = int_to_ptr.hbm [resolvable:$true] %s33_s26 }
   0x3   :  { %15 = vsyncpa [#allocation4], 0  ;;  %s3369_s27 = smov [#allocation5]   ;;  %s57_s8 = sshll.u32 %s4332_s3, 4  ;;  %s58_s8 = int_to_ptr.hbm [resolvable:$true] %s57_s8 }
   0x4   :  { %s35_s28 = sshll.u32 %s3369_s27, 4  ;;  %s3370_s9 = smov 256   ;;  %s36_s28 = int_to_ptr.vmem [resolvable:$true] %s35_s28 }
   0x5   :  { %s3371_s10 = smov 16   ;;  %s3372_s11 = smov [#allocation8]  }
   0x6   :  { %41 = dma.hbm_to_vmem [thread:$0]  %s34_s26, 4096, %s36_s28, [#allocation6], %s3370_s9, %s3370_s9, %s3371_s10  }
   0x7   :  { %s59_s12 = sshll.u32 %s3372_s11, 4  ;;  %s3373_s13 = smov 128   ;;  %s60_s12 = int_to_ptr.vmem [resolvable:$true] %s59_s12 }
   0x8   :  { %s3374_s14 = smov 8   ;;  %s20_s16 = sshll.u32 %s4329_s0, 4  ;;  %s21_s16 = int_to_ptr.hbm [resolvable:$true] %s20_s16 }
   0x9   :  { %65 = dma.hbm_to_vmem [thread:$0]  %s58_s8, 8192, %s60_s12, [#allocation9], %s3373_s13, %s3373_s13, %s3374_s14  }
   0xa   :  { %s3375_s17 = smov [#allocation2]   ;;  %s47_s20 = sshll.u32 %s4331_s2, 4  ;;  %s48_s20 = int_to_ptr.hbm [resolvable:$true] %s47_s20 }
   0xb   :  { %s22_s3 = sshll.u32 %s3375_s17, 4  ;;  %s3376_s21 = smov 64   ;;  %s23_s3 = int_to_ptr.vmem [resolvable:$true] %s22_s3 }
   0xc   :  { %s3377_s22 = smov 4   ;;  %s3378_s23 = smov [#allocation7]  }
   0xd   :  { %28 = dma.hbm_to_vmem [thread:$0]  %s21_s16, 2048, %s23_s3, [#allocation3], %s3376_s21, %s3376_s21, %s3377_s22  }
   0xe   :  { %s49_s24 = sshll.u32 %s3378_s23, 4  ;;  %s72_s27 = sshll.u32 %s4334_s5, 4  ;;  %s50_s24 = int_to_ptr.vmem [resolvable:$true] %s49_s24  ;;  %s73_s27 = int_to_ptr.hbm [resolvable:$true] %s72_s27 }
   0xf   :  { %52 = dma.hbm_to_vmem [thread:$0]  %s48_s20, 64, %s50_s24, [#allocation6]  }
  0x10   :  { %s3379_s0 = smov [#allocation10]  }
  0x11   :  { %s74_s28 = sshll.u32 %s3379_s0, 4  ;;  %s75_s28 = int_to_ptr.vmem [resolvable:$true] %s74_s28 }
  0x12   :  { %80 = dma.hbm_to_vmem [thread:$0]  %s73_s27, 2048, %s75_s28, [#allocation9], %s3376_s21, %s3376_s21, %s3377_s22  }
  0x13   :  { %3361 = dma.done.wait [#allocation3], 2048  }
  0x14   :  { %3362 = vsyncadd [#allocation3], 4294965248 }
  0x15   :  { %3363 = dma.done.wait [#allocation6], 4160  }
  0x16   :  { %3364 = vsyncadd [#allocation6], 4294963136 }
  0x17   :  { %3365 = dma.done.wait [#allocation9], 10240  }
  0x18   :  { %3366 = vsyncadd [#allocation9], 4294957056  ;;  %v2720_v0 = vld [vmem:[#allocation5 + $0xe0] sm:$0xf]  ;;  %v3100_v1 = vld [vmem:[#allocation5 + $0xec] sm:$0xf0] }
  0x19   :  { %v3098_v2 = vld [vmem:[#allocation5 + $0xe4] sm:$0xf]  ;;  %v2721_v3 = vor.u32 %v3100_v1, %v2720_v0  ;;  %v2722_v4 = vld [vmem:[#allocation5 + $0xf0] sm:$0xf0]  ;;  %v2704_v5 = vld [vmem:[#allocation5 + $0xc0] sm:$0xf] }
  0x1a   :  { %v3096_v6 = vld [vmem:[#allocation5 + $0xcc] sm:$0xf0]  ;;  %v2725_v7 = vor.u32 %v3098_v2, %v2722_v4  ;;  %v3094_v8 = vld [vmem:[#allocation5 + $0xc4] sm:$0xf]  ;;  %v2706_v9 = vld [vmem:[#allocation5 + $0xd0] sm:$0xf0] }
  0x1b   :  { %433 = vmatpush.bf16.msra.mxu0 %v2721_v3  ;;  %3182 = vmatpush.bf16.msra.mxu2 %v2721_v3  ;;  %v2705_v10 = vor.u32 %v3096_v6, %v2704_v5  ;;  %v2709_v11 = vor.u32 %v3094_v8, %v2706_v9  ;;  %v2688_v12 = vld [vmem:[#allocation5 + $0xa0] sm:$0xf]  ;;  %v3092_v13 = vld [vmem:[#allocation5 + $0xac] sm:$0xf0]  ;;  %v3090_v14 = vld [vmem:[#allocation5 + $0xa4] sm:$0xf] }
  0x1c   :  { %522 = vmatpush.bf16.msra.mxu1 %v2725_v7  ;;  %3190 = vmatpush.bf16.msra.mxu3 %v2725_v7  ;;  %v2690_v15 = vld [vmem:[#allocation5 + $0xb0] sm:$0xf0]  ;;  %v2689_v16 = vor.u32 %v3092_v13, %v2688_v12  ;;  %v2672_v18 = vld [vmem:[#allocation5 + $0x80] sm:$0xf]  ;;  %v3088_v19 = vld [vmem:[#allocation5 + $0x8c] sm:$0xf0] }
  0x1d   :  { %v2693_v17 = vor.u32 %v3090_v14, %v2690_v15  ;;  %v3086_v20 = vld [vmem:[#allocation5 + $0x84] sm:$0xf]  ;;  %v2674_v21 = vld [vmem:[#allocation5 + $0x90] sm:$0xf0]  ;;  %v2673_v22 = vor.u32 %v3088_v19, %v2672_v18  ;;  %v2656_v24 = vld [vmem:[#allocation5 + $0x60] sm:$0xf] }
  0x1e   :  { %v2677_v23 = vor.u32 %v3086_v20, %v2674_v21  ;;  %v3084_v25 = vld [vmem:[#allocation5 + $0x6c] sm:$0xf0]  ;;  %v3082_v26 = vld [vmem:[#allocation5 + $0x64] sm:$0xf]  ;;  %v2658_v27 = vld [vmem:[#allocation5 + $0x70] sm:$0xf0] }
  0x1f   :  { %434 = vmatpush.bf16.msra.mxu0 %v2705_v10  ;;  %3183 = vmatpush.bf16.msra.mxu2 %v2705_v10  ;;  %v2657_v28 = vor.u32 %v3084_v25, %v2656_v24  ;;  %v2661_v29 = vor.u32 %v3082_v26, %v2658_v27  ;;  %v2640_v30 = vld [vmem:[#allocation5 + $0x40] sm:$0xf]  ;;  %v3080_v31 = vld [vmem:[#allocation5 + $0x4c] sm:$0xf0]  ;;  %v3078_v32 = vld [vmem:[#allocation5 + $0x44] sm:$0xf] }
  0x20   :  { %523 = vmatpush.bf16.msra.mxu1 %v2709_v11  ;;  %3191 = vmatpush.bf16.msra.mxu3 %v2709_v11  ;;  %v2642_v33 = vld [vmem:[#allocation5 + $0x50] sm:$0xf0]  ;;  %v2641_v34 = vor.u32 %v3080_v31, %v2640_v30  ;;  %v2624_v36 = vld [vmem:[#allocation5 + $0x20] sm:$0xf]  ;;  %v3076_v37 = vld [vmem:[#allocation5 + $0x2c] sm:$0xf0] }
  0x21   :  { %v2645_v35 = vor.u32 %v3078_v32, %v2642_v33  ;;  %v3074_v38 = vld [vmem:[#allocation5 + $0x24] sm:$0xf]  ;;  %v2626_v39 = vld [vmem:[#allocation5 + $0x30] sm:$0xf0]  ;;  %v2625_v40 = vor.u32 %v3076_v37, %v2624_v36  ;;  %v2608_v42 = vld [vmem:[#allocation5] sm:$0xf] }
  0x22   :  { %v2629_v41 = vor.u32 %v3074_v38, %v2626_v39  ;;  %v3072_v43 = vld [vmem:[#allocation5 + $0xc] sm:$0xf0]  ;;  %v3070_v44 = vld [vmem:[#allocation5 + $0x4] sm:$0xf]  ;;  %v2610_v45 = vld [vmem:[#allocation5 + $0x10] sm:$0xf0] }
  0x23   :  { %435 = vmatpush.bf16.msra.mxu0 %v2689_v16  ;;  %3184 = vmatpush.bf16.msra.mxu2 %v2689_v16  ;;  %v2728_v46 = vld [vmem:[#allocation5 + $0xe8] sm:$0xf]  ;;  %v3101_v47 = vld [vmem:[#allocation5 + $0xf4] sm:$0xf0]  ;;  %v3099_v48 = vld [vmem:[#allocation5 + $0xec] sm:$0xf]  ;;  %v2609_v50 = vor.u32 %v3072_v43, %v2608_v42  ;;  %v2613_v51 = vor.u32 %v3070_v44, %v2610_v45 }
  0x24   :  { %524 = vmatpush.bf16.msra.mxu1 %v2693_v17  ;;  %3192 = vmatpush.bf16.msra.mxu3 %v2693_v17  ;;  %v2730_v49 = vld [vmem:[#allocation5 + $0xf8] sm:$0xf0]  ;;  %v3439_v52 = vld [vmem:[#allocation2] sm:$0xff]  ;;  %v2729_v54 = vor.u32 %v3101_v47, %v2728_v46  ;;  %v2712_v56 = vld [vmem:[#allocation5 + $0xc8] sm:$0xf]  ;;  %s2527_s12 = sshll.u32 %s4336_s7, 4  ;;  %s2528_s12 = int_to_ptr.hbm [resolvable:$true] %s2527_s12 }
  0x25   :  { %v3441_v53 = vld [vmem:[#allocation2 + $0x40] sm:$0xff]  ;;  %v2733_v55 = vor.u32 %v3099_v48, %v2730_v49  ;;  %v3097_v57 = vld [vmem:[#allocation5 + $0xd4] sm:$0xf0]  ;;  %v3095_v58 = vld [vmem:[#allocation5 + $0xcc] sm:$0xf] }
  0x26   :  { %v2714_v59 = vld [vmem:[#allocation5 + $0xd8] sm:$0xf0]  ;;  %v2713_v60 = vor.u32 %v3097_v57, %v2712_v56  ;;  %v2696_v62 = vld [vmem:[#allocation5 + $0xa8] sm:$0xf]  ;;  %v3093_v63 = vld [vmem:[#allocation5 + $0xb4] sm:$0xf0] }
  0x27   :  { %436 = vmatpush.bf16.msra.mxu0 %v2673_v22  ;;  %3185 = vmatpush.bf16.msra.mxu2 %v2673_v22  ;;  %v2717_v61 = vor.u32 %v3095_v58, %v2714_v59  ;;  %v3091_v0 = vld [vmem:[#allocation5 + $0xac] sm:$0xf]  ;;  %v2698_v1 = vld [vmem:[#allocation5 + $0xb8] sm:$0xf0]  ;;  %v2697_v2 = vor.u32 %v3093_v63, %v2696_v62  ;;  %v2680_v6 = vld [vmem:[#allocation5 + $0x88] sm:$0xf] }
  0x28   :  { %525 = vmatpush.bf16.msra.mxu1 %v2677_v23  ;;  %3193 = vmatpush.bf16.msra.mxu3 %v2677_v23  ;;  %v2701_v3 = vor.u32 %v3091_v0, %v2698_v1  ;;  %v3447_v4 = vld [vmem:[#allocation2 + $0x8] sm:$0xff]  ;;  %v3089_v7 = vld [vmem:[#allocation5 + $0x94] sm:$0xf0]  ;;  %v2682_v10 = vld [vmem:[#allocation5 + $0x98] sm:$0xf0] }
  0x29   :  { %v3449_v5 = vld [vmem:[#allocation2 + $0x48] sm:$0xff]  ;;  %v2681_v9 = vor.u32 %v3089_v7, %v2680_v6  ;;  %v3455_v12 = vld [vmem:[#allocation2 + $0x10] sm:$0xff]  ;;  %v3085_v15 = vld [vmem:[#allocation5 + $0x74] sm:$0xf0] }
  0x2a   :  { %v3087_v8 = vld [vmem:[#allocation5 + $0x8c] sm:$0xf]  ;;  %v3457_v13 = vld [vmem:[#allocation2 + $0x50] sm:$0xff]  ;;  %v2664_v14 = vld [vmem:[#allocation5 + $0x68] sm:$0xf] }
  0x2b   :  { %437 = vmatpush.bf16.msra.mxu0 %v2657_v28  ;;  %3186 = vmatpush.bf16.msra.mxu2 %v2657_v28  ;;  %v2685_v11 = vor.u32 %v3087_v8, %v2682_v10  ;;  %v3083_v16 = vld [vmem:[#allocation5 + $0x6c] sm:$0xf]  ;;  %v2665_v17 = vor.u32 %v3085_v15, %v2664_v14  ;;  %v2666_v18 = vld [vmem:[#allocation5 + $0x78] sm:$0xf0]  ;;  %v2648_v22 = vld [vmem:[#allocation5 + $0x48] sm:$0xf] }
  0x2c   :  { %526 = vmatpush.bf16.msra.mxu1 %v2661_v29  ;;  %3194 = vmatpush.bf16.msra.mxu3 %v2661_v29  ;;  %v2669_v19 = vor.u32 %v3083_v16, %v2666_v18  ;;  %v3463_v20 = vld [vmem:[#allocation2 + $0x18] sm:$0xff]  ;;  %v3079_v24 = vld [vmem:[#allocation5 + $0x4c] sm:$0xf]  ;;  %v3467_v28 = vld [vmem:[#allocation2 + $0x20] sm:$0xff] }
  0x2d   :  { %v3065_v21 = vld [vmem:[#allocation2 + $0x58] sm:$0xff]  ;;  %v3066_v29 = vld [vmem:[#allocation2 + $0x60] sm:$0xff]  ;;  %v2632_v30 = vld [vmem:[#allocation5 + $0x28] sm:$0xf] }
  0x2e   :  { %v3081_v23 = vld [vmem:[#allocation5 + $0x54] sm:$0xf0]  ;;  %v2650_v26 = vld [vmem:[#allocation5 + $0x58] sm:$0xf0]  ;;  %v3075_v32 = vld [vmem:[#allocation5 + $0x2c] sm:$0xf] }
  0x2f   :  { %438 = vmatpush.bf16.msra.mxu0 %v2641_v34  ;;  %3187 = vmatpush.bf16.msra.mxu2 %v2641_v34  ;;  %v2649_v25 = vor.u32 %v3081_v23, %v2648_v22  ;;  %v2653_v27 = vor.u32 %v3079_v24, %v2650_v26  ;;  %v3077_v31 = vld [vmem:[#allocation5 + $0x34] sm:$0xf0]  ;;  %v2634_v34 = vld [vmem:[#allocation5 + $0x38] sm:$0xf0]  ;;  %v2856_v39 = vld [vmem:[#allocation8 + $0xf0] sm:$0xf] }
  0x30   :  { %527 = vmatpush.bf16.msra.mxu1 %v2645_v35  ;;  %3195 = vmatpush.bf16.msra.mxu3 %v2645_v35  ;;  %v2633_v33 = vor.u32 %v3077_v31, %v2632_v30  ;;  %v2792_v35 = vld [vmem:[#allocation8 + $0x70] sm:$0xf]  ;;  %v3117_v36 = vld [vmem:[#allocation8 + $0x74] sm:$0xf0]  ;;  %v2637_v37 = vor.u32 %v3075_v32, %v2634_v34  ;;  %v3471_v42 = vld [vmem:[#allocation2 + $0x28] sm:$0xff] }
  0x31   :  { %v2793_v38 = vor.u32 %v3117_v36, %v2792_v35  ;;  %v3067_v43 = vld [vmem:[#allocation2 + $0x68] sm:$0xff]  ;;  %v2784_v44 = vld [vmem:[#allocation8 + $0x60] sm:$0xf]  ;;  %v2618_v56 = vld [vmem:[#allocation5 + $0x18] sm:$0xf0] }
  0x32   :  { %v3115_v45 = vld [vmem:[#allocation8 + $0x64] sm:$0xf0]  ;;  %v2848_v47 = vld [vmem:[#allocation8 + $0xe0] sm:$0xf]  ;;  %v2616_v49 = vld [vmem:[#allocation5 + $0x8] sm:$0xf] }
  0x33   :  { %439 = vmatpush.bf16.msra.mxu0 %v2625_v40  ;;  %3188 = vmatpush.bf16.msra.mxu2 %v2625_v40  ;;  %v3133_v40 = vld [vmem:[#allocation8 + $0xf4] sm:$0xf0]  ;;  %v2785_v46 = vor.u32 %v3115_v45, %v2784_v44  ;;  %v3131_v48 = vld [vmem:[#allocation8 + $0xe4] sm:$0xf0]  ;;  %v2776_v57 = vld [vmem:[#allocation8 + $0x50] sm:$0xf] }
  0x34   :  { %528 = vmatpush.bf16.msra.mxu1 %v2629_v41  ;;  %3196 = vmatpush.bf16.msra.mxu3 %v2629_v41  ;;  %v2857_v41 = vor.u32 %v3133_v40, %v2856_v39  ;;  %v3113_v58 = vld [vmem:[#allocation8 + $0x54] sm:$0xf0]  ;;  %v2768_v63 = vld [vmem:[#allocation8 + $0x40] sm:$0xf]  ;;  %v3111_v1 = vld [vmem:[#allocation8 + $0x44] sm:$0xf0] }
  0x35   :  { %v3129_v62 = vld [vmem:[#allocation8 + $0xd4] sm:$0xf0]  ;;  %v2769_v6 = vor.u32 %v3111_v1, %v2768_v63  ;;  %v2760_v8 = vld [vmem:[#allocation8 + $0x30] sm:$0xf]  ;;  %v2752_v18 = vld [vmem:[#allocation8 + $0x20] sm:$0xf] }
  0x36   :  { %v2824_v10 = vld [vmem:[#allocation8 + $0xb0] sm:$0xf]  ;;  %v3125_v16 = vld [vmem:[#allocation8 + $0xb4] sm:$0xf0]  ;;  %v3123_v23 = vld [vmem:[#allocation8 + $0xa4] sm:$0xf0] }
  0x37   :  { %440 = vmatpush.bf16.msra.mxu0 %v2609_v50  ;;  %3189 = vmatpush.bf16.msra.mxu2 %v2609_v50  ;;  %v3073_v50 = vld [vmem:[#allocation5 + $0x14] sm:$0xf0]  ;;  %v3068_v14 = vld [vmem:[#allocation2 + $0x70] sm:$0xff]  ;;  %v3165_v30 = vld [vmem:[#allocation8 + $0x1f4] sm:$0xf0] }
  0x38   :  { %529 = vmatpush.bf16.msra.mxu1 %v2613_v51  ;;  %3197 = vmatpush.bf16.msra.mxu3 %v2613_v51  ;;  %v2849_v51 = vor.u32 %v3131_v48, %v2848_v47  ;;  %v2920_v24 = vld [vmem:[#allocation8 + $0x170] sm:$0xf]  ;;  %v3121_v36 = vld [vmem:[#allocation8 + $0x94] sm:$0xf0]  ;;  %v3103_v39 = vld [vmem:[#allocation8 + $0x4] sm:$0xf0] }
  0x39   :  { %v2744_v32 = vld [vmem:[#allocation8 + $0x10] sm:$0xf]  ;;  %v2800_v40 = vld [vmem:[#allocation8 + $0x80] sm:$0xf]  ;;  %v3479_v45 = vld [vmem:[#allocation2 + $0x38] sm:$0xff] }
  0x3a   :  { %441 = vmatmul.bf16.vlgmr.msra.gmra.mxu0 %v3439_v52  ;;  %481 = vmatmul.bf16.vlgmr.msra.gmra.mxu2 %v3441_v53  ;;  %v2808_v34 = vld [vmem:[#allocation8 + $0x90] sm:$0xf]  ;;  %v3483_v47 = vld [vmem:[#allocation7] sm:$0xf] }
  0x3b   :  { %611 = vmatpush.bf16.msrb.mxu2 %v2729_v54  ;;  %530 = vmatmul.bf16.vlgmr.msra.gmra.mxu1 %v3439_v52  ;;  %v3071_v54 = vld [vmem:[#allocation5 + $0xc] sm:$0xf] }
  0x3c   :  { %700 = vmatpush.bf16.msrb.mxu3 %v2733_v55  ;;  %1371 = vmatpush.bf16.msrb.mxu0 %v2793_v38  ;;  %v2617_v55 = vor.u32 %v3073_v50, %v2616_v49  ;;  %v2621_v59 = vor.u32 %v3071_v54, %v2618_v56  ;;  %v2736_v38 = vld [vmem:[#allocation8] sm:$0xf]  ;;  %v3486_v50 = vperm.slane %v3483_v47, 1 }
  0x3d   :  { %570 = vmatmul.bf16.vlgmr.msra.gmra.mxu3 %v3441_v53  ;;  %1460 = vmatpush.bf16.msrb.mxu1 %v2857_v41  ;;  %v2737_v41 = vor.u32 %v3103_v39, %v2736_v38  ;;  %v2912_v54 = vld [vmem:[#allocation8 + $0x160] sm:$0xf] }
  0x3f   :  { %612 = vmatpush.bf16.msrb.mxu2 %v2713_v60  ;;  %v2777_v60 = vor.u32 %v3113_v58, %v2776_v57  ;;  %v2976_v58 = vld [vmem:[#allocation8 + $0x1e0] sm:$0xf] }
  0x40   :  { %701 = vmatpush.bf16.msrb.mxu3 %v2717_v61  ;;  %1372 = vmatpush.bf16.msrb.mxu0 %v2785_v46  ;;  %v2840_v61 = vld [vmem:[#allocation8 + $0xd0] sm:$0xf]  ;;  %v3069_v46 = vld [vmem:[#allocation2 + $0x78] sm:$0xff] }
  0x41   :  { %1461 = vmatpush.bf16.msrb.mxu1 %v2849_v51  ;;  %v2841_v0 = vor.u32 %v3129_v62, %v2840_v61  ;;  %v3489_v51 = vperm.slane %v3483_v47, 0 }
  0x43   :  { %613 = vmatpush.bf16.msrb.mxu2 %v2697_v2  ;;  %v2832_v2 = vld [vmem:[#allocation8 + $0xc0] sm:$0xf] }
  0x44   :  { %702 = vmatpush.bf16.msrb.mxu3 %v2701_v3  ;;  %v3127_v3 = vld [vmem:[#allocation8 + $0xc4] sm:$0xf0]  ;;  %1373 = vmatpush.bf16.msrb.mxu0 %v2777_v60 }
  0x45   :  { %1462 = vmatpush.bf16.msrb.mxu1 %v2841_v0  ;;  %v2833_v7 = vor.u32 %v3127_v3, %v2832_v2 }
  0x47   :  { %614 = vmatpush.bf16.msrb.mxu2 %v2681_v9  ;;  %v3109_v9 = vld [vmem:[#allocation8 + $0x34] sm:$0xf0] }
  0x48   :  { %703 = vmatpush.bf16.msrb.mxu3 %v2685_v11  ;;  %1374 = vmatpush.bf16.msrb.mxu0 %v2769_v6  ;;  %v3475_v11 = vld [vmem:[#allocation2 + $0x30] sm:$0xff]  ;;  %v2761_v15 = vor.u32 %v3109_v9, %v2760_v8 }
  0x49   :  { %1463 = vmatpush.bf16.msrb.mxu1 %v2833_v7 }
  0x4a   :  { %446 = vmatmul.bf16.gmra.mxu0 %v3447_v4  ;;  %486 = vmatmul.bf16.gmra.mxu2 %v3449_v5 }
  0x4b   :  { %535 = vmatmul.bf16.gmra.mxu1 %v3447_v4  ;;  %615 = vmatpush.bf16.msrb.mxu2 %v2665_v17  ;;  %v2825_v17 = vor.u32 %v3125_v16, %v2824_v10 }
  0x4c   :  { %704 = vmatpush.bf16.msrb.mxu3 %v2669_v19  ;;  %1375 = vmatpush.bf16.msrb.mxu0 %v2761_v15  ;;  %v3107_v19 = vld [vmem:[#allocation8 + $0x24] sm:$0xf0] }
  0x4d   :  { %575 = vmatmul.bf16.gmra.mxu3 %v3449_v5  ;;  %1464 = vmatpush.bf16.msrb.mxu1 %v2825_v17  ;;  %v2753_v22 = vor.u32 %v3107_v19, %v2752_v18 }
  0x4f   :  { %616 = vmatpush.bf16.msrb.mxu2 %v2649_v25  ;;  %v3149_v25 = vld [vmem:[#allocation8 + $0x174] sm:$0xf0] }
  0x50   :  { %705 = vmatpush.bf16.msrb.mxu3 %v2653_v27  ;;  %v2984_v27 = vld [vmem:[#allocation8 + $0x1f0] sm:$0xf]  ;;  %1376 = vmatpush.bf16.msrb.mxu0 %v2753_v22 }
  0x51   :  { %v2985_v31 = vor.u32 %v3165_v30, %v2984_v27 }
  0x53   :  { %617 = vmatpush.bf16.msrb.mxu2 %v2633_v33  ;;  %v3105_v33 = vld [vmem:[#allocation8 + $0x14] sm:$0xf0] }
  0x54   :  { %706 = vmatpush.bf16.msrb.mxu3 %v2637_v37  ;;  %v2745_v35 = vor.u32 %v3105_v33, %v2744_v32  ;;  %v2809_v37 = vor.u32 %v3121_v36, %v2808_v34 }
  0x56   :  { %1377 = vmatpush.bf16.msrb.mxu0 %v2745_v35 }
  0x57   :  { %618 = vmatpush.bf16.msrb.mxu2 %v2617_v55  ;;  %v3147_v55 = vld [vmem:[#allocation8 + $0x164] sm:$0xf0] }
  0x58   :  { %707 = vmatpush.bf16.msrb.mxu3 %v2621_v59  ;;  %v2913_v57 = vor.u32 %v3147_v55, %v2912_v54  ;;  %v3163_v59 = vld [vmem:[#allocation8 + $0x1e4] sm:$0xf0] }
  0x59   :  { %v2977_v62 = vor.u32 %v3163_v59, %v2976_v58 }
  0x5a   :  { %451 = vmatmul.bf16.gmra.mxu0 %v3455_v12  ;;  %491 = vmatmul.bf16.gmra.mxu2 %v3457_v13 }
  0x5b   :  { %540 = vmatmul.bf16.gmra.mxu1 %v3455_v12  ;;  %1378 = vmatpush.bf16.msrb.mxu0 %v2737_v41 }
  0x5c   :  { %1638 = vmatpush.bf16.msra.mxu3 %v2985_v31 }
  0x5d   :  { %580 = vmatmul.bf16.gmra.mxu3 %v3457_v13 }
  0x60   :  { %1639 = vmatpush.bf16.msra.mxu3 %v2977_v62 }
  0x6a   :  { %456 = vmatmul.bf16.gmra.mxu0 %v3463_v20  ;;  %496 = vmatmul.bf16.gmra.mxu2 %v3065_v21 }
  0x6b   :  { %545 = vmatmul.bf16.gmra.mxu1 %v3463_v20 }
  0x6d   :  { %585 = vmatmul.bf16.gmra.mxu3 %v3065_v21  ;;  %v2816_v21 = vld [vmem:[#allocation8 + $0xa0] sm:$0xf] }
  0x6e   :  { %v2817_v26 = vor.u32 %v3123_v23, %v2816_v21 }
  0x70   :  { %1465 = vmatpush.bf16.msrb.mxu1 %v2817_v26 }
  0x74   :  { %1466 = vmatpush.bf16.msrb.mxu1 %v2809_v37 }
  0x7a   :  { %461 = vmatmul.bf16.gmra.mxu0 %v3467_v28  ;;  %501 = vmatmul.bf16.gmra.mxu2 %v3066_v29 }
  0x7b   :  { %550 = vmatmul.bf16.gmra.mxu1 %v3467_v28 }
  0x7d   :  { %590 = vmatmul.bf16.gmra.mxu3 %v3066_v29  ;;  %v2921_v29 = vor.u32 %v3149_v25, %v2920_v24 }
  0x7f   :  { %1549 = vmatpush.bf16.msra.mxu2 %v2921_v29 }
  0x83   :  { %1550 = vmatpush.bf16.msra.mxu2 %v2913_v57 }
  0x8a   :  { %466 = vmatmul.bf16.gmra.mxu0 %v3471_v42  ;;  %506 = vmatmul.bf16.gmra.mxu2 %v3067_v43 }
  0x8b   :  { %555 = vmatmul.bf16.gmra.mxu1 %v3471_v42 }
  0x8d   :  { %595 = vmatmul.bf16.gmra.mxu3 %v3067_v43  ;;  %v3119_v43 = vld [vmem:[#allocation8 + $0x84] sm:$0xf0] }
  0x8e   :  { %v2801_v44 = vor.u32 %v3119_v43, %v2800_v40 }
  0x90   :  { %1467 = vmatpush.bf16.msrb.mxu1 %v2801_v44 }
  0x9a   :  { %471 = vmatmul.bf16.gmra.mxu0 %v3475_v11  ;;  %511 = vmatmul.bf16.gmra.mxu2 %v3068_v14 }
  0x9b   :  { %560 = vmatmul.bf16.gmra.mxu1 %v3475_v11 }
  0x9d   :  { %600 = vmatmul.bf16.gmra.mxu3 %v3068_v14 }
  0xaa   :  { %476 = vmatmul.bf16.gmra.mxu0 %v3479_v45  ;;  %516 = vmatmul.bf16.gmra.mxu2 %v3069_v46 }
  0xab   :  { %565 = vmatmul.bf16.gmra.mxu1 %v3479_v45 }
  0xad   :  { %605 = vmatmul.bf16.gmra.mxu3 %v3069_v46 }
  0xb7   :  { %v442_v48 = vpop.f32.mrf.mxu0 }
  0xb8   :  { %v531_v49 = vpop.f32.mrf.mxu1  ;;  %v443_v56 = vadd.f32 %v442_v48, %v3489_v51 }
  0xb9   :  { %v532_v60 = vadd.f32 %v531_v49, %v3486_v50 }
  0xba   :  { %619 = vmatmul.bf16.vlgmr.msrb.gmra.mxu2 %v3439_v52  ;;  %v789_v1 = vmax.f32 %v443_v56, 0.0 }
  0xbd   :  { %708 = vmatmul.bf16.vlgmr.msrb.gmra.mxu3 %v3439_v52  ;;  %v482_v61 = vpop.f32.mrf.mxu2  ;;  %v790_v52 = vmax.f32 %v532_v60, 0.0 }
  0xbe   :  { %v483_v9 = vadd.f32 %v482_v61, %v3489_v51 }
  0xbf   :  { %v444_v0 = vpop.f32.mrf.mxu0 }
  0xc0   :  { %v571_v63 = vpop.f32.mrf.mxu3  ;;  %v445_v2 = vadd.f32 %v444_v0, %v3489_v51  ;;  %v533_v3 = vpop.f32.mrf.mxu1  ;;  %v853_v22 = vmax.f32 %v483_v9, 0.0  ;;  %v3145_v0 = vld [vmem:[#allocation8 + $0x154] sm:$0xf0] }
  0xc1   :  { %v534_v6 = vadd.f32 %v533_v3, %v3486_v50  ;;  %v572_v14 = vadd.f32 %v571_v63, %v3486_v50  ;;  %v2904_v63 = vld [vmem:[#allocation8 + $0x150] sm:$0xf] }
  0xc2   :  { %v793_v7 = vmax.f32 %v445_v2, 0.0  ;;  %v2905_v3 = vor.u32 %v3145_v0, %v2904_v63 }
  0xc3   :  { %v794_v8 = vmax.f32 %v534_v6, 0.0  ;;  %v854_v25 = vmax.f32 %v572_v14, 0.0  ;;  %v3161_v6 = vld [vmem:[#allocation8 + $0x1d4] sm:$0xf0] }
  0xc4   :  { %v3498_v10 = vpack.c.bf16 %v793_v7, %v789_v1  ;;  %1551 = vmatpush.bf16.msra.mxu2 %v2905_v3 }
  0xc5   :  { %v484_v15 = vpop.f32.mrf.mxu2  ;;  %v3501_v16 = vpack.c.bf16 %v794_v8, %v790_v52  ;;  %v2968_v52 = vld [vmem:[#allocation8 + $0x1d0] sm:$0xf] }
  0xc6   :  { %v485_v17 = vadd.f32 %v484_v15, %v3489_v51  ;;  %1379 = vmatmul.bf16.vlgmr.msrb.gmra.mxu0 %v3498_v10  ;;  %v2969_v9 = vor.u32 %v3161_v6, %v2968_v52 }
  0xc7   :  { %1468 = vmatmul.bf16.vlgmr.msrb.gmra.mxu1 %v3501_v16  ;;  %v447_v21 = vpop.f32.mrf.mxu0 }
  0xc8   :  { %v573_v18 = vpop.f32.mrf.mxu3  ;;  %v857_v23 = vmax.f32 %v485_v17, 0.0  ;;  %v536_v24 = vpop.f32.mrf.mxu1  ;;  %v448_v30 = vadd.f32 %v447_v21, %v3489_v51  ;;  %1640 = vmatpush.bf16.msra.mxu3 %v2969_v9 }
  0xc9   :  { %v574_v19 = vadd.f32 %v573_v18, %v3486_v50  ;;  %v537_v31 = vadd.f32 %v536_v24, %v3486_v50 }
  0xca   :  { %624 = vmatmul.bf16.gmra.mxu2 %v3447_v4  ;;  %v3508_v27 = vpack.c.bf16 %v857_v23, %v853_v22  ;;  %v797_v35 = vmax.f32 %v448_v30, 0.0 }
  0xcb   :  { %v858_v26 = vmax.f32 %v574_v19, 0.0  ;;  %v798_v38 = vmax.f32 %v537_v31, 0.0 }
  0xcd   :  { %713 = vmatmul.bf16.gmra.mxu3 %v3447_v4  ;;  %v3511_v29 = vpack.c.bf16 %v858_v26, %v854_v25  ;;  %v487_v32 = vpop.f32.mrf.mxu2 }
  0xce   :  { %v488_v4 = vadd.f32 %v487_v32, %v3489_v51 }
  0xcf   :  { %v449_v34 = vpop.f32.mrf.mxu0 }
  0xd0   :  { %v576_v33 = vpop.f32.mrf.mxu3  ;;  %v450_v36 = vadd.f32 %v449_v34, %v3489_v51  ;;  %v538_v37 = vpop.f32.mrf.mxu1  ;;  %v861_v57 = vmax.f32 %v488_v4, 0.0 }
  0xd1   :  { %v539_v39 = vadd.f32 %v538_v37, %v3486_v50  ;;  %v577_v44 = vadd.f32 %v576_v33, %v3486_v50 }
  0xd2   :  { %v801_v40 = vmax.f32 %v450_v36, 0.0 }
  0xd3   :  { %v802_v41 = vmax.f32 %v539_v39, 0.0  ;;  %v862_v60 = vmax.f32 %v577_v44, 0.0 }
  0xd4   :  { %v3518_v43 = vpack.c.bf16 %v801_v40, %v797_v35 }
  0xd5   :  { %v489_v46 = vpop.f32.mrf.mxu2  ;;  %v3521_v48 = vpack.c.bf16 %v802_v41, %v798_v38 }
  0xd6   :  { %v490_v49 = vadd.f32 %v489_v46, %v3489_v51  ;;  %1384 = vmatmul.bf16.gmra.mxu0 %v3518_v43 }
  0xd7   :  { %1473 = vmatmul.bf16.gmra.mxu1 %v3521_v48  ;;  %v452_v56 = vpop.f32.mrf.mxu0 }
  0xd8   :  { %v578_v54 = vpop.f32.mrf.mxu3  ;;  %v865_v58 = vmax.f32 %v490_v49, 0.0  ;;  %v541_v59 = vpop.f32.mrf.mxu1  ;;  %v453_v2 = vadd.f32 %v452_v56, %v3489_v51 }
  0xd9   :  { %v579_v55 = vadd.f32 %v578_v54, %v3486_v50  ;;  %v542_v7 = vadd.f32 %v541_v59, %v3486_v50 }
  0xda   :  { %629 = vmatmul.bf16.gmra.mxu2 %v3455_v12  ;;  %v3528_v62 = vpack.c.bf16 %v865_v58, %v861_v57  ;;  %v805_v17 = vmax.f32 %v453_v2, 0.0 }
  0xdb   :  { %v866_v61 = vmax.f32 %v579_v55, 0.0  ;;  %v806_v19 = vmax.f32 %v542_v7, 0.0 }
  0xdd   :  { %718 = vmatmul.bf16.gmra.mxu3 %v3455_v12  ;;  %v3531_v1 = vpack.c.bf16 %v866_v61, %v862_v60  ;;  %v492_v8 = vpop.f32.mrf.mxu2 }
  0xde   :  { %v493_v24 = vadd.f32 %v492_v8, %v3489_v51 }
  0xdf   :  { %4368 = vst [vmem:[#allocation16_spill] sm:$0xff] %v3531_v1  ;;  %v454_v15 = vpop.f32.mrf.mxu0 }
  0xe0   :  { %v581_v14 = vpop.f32.mrf.mxu3  ;;  %v455_v12 = vadd.f32 %v454_v15, %v3489_v51  ;;  %v543_v18 = vpop.f32.mrf.mxu1  ;;  %v869_v36 = vmax.f32 %v493_v24, 0.0 }
  0xe1   :  { %v544_v21 = vadd.f32 %v543_v18, %v3486_v50  ;;  %v582_v26 = vadd.f32 %v581_v14, %v3486_v50 }
  0xe2   :  { %v809_v22 = vmax.f32 %v455_v12, 0.0 }
  0xe3   :  { %v810_v23 = vmax.f32 %v544_v21, 0.0  ;;  %v870_v39 = vmax.f32 %v582_v26, 0.0  ;;  %v2896_v21 = vld [vmem:[#allocation8 + $0x140] sm:$0xf] }
  0xe4   :  { %v3538_v25 = vpack.c.bf16 %v809_v22, %v805_v17  ;;  %v3143_v22 = vld [vmem:[#allocation8 + $0x144] sm:$0xf0] }
  0xe5   :  { %v494_v30 = vpop.f32.mrf.mxu2  ;;  %v3541_v31 = vpack.c.bf16 %v810_v23, %v806_v19  ;;  %v2897_v26 = vor.u32 %v3143_v22, %v2896_v21 }
  0xe6   :  { %v495_v32 = vadd.f32 %v494_v30, %v3489_v51  ;;  %1389 = vmatmul.bf16.gmra.mxu0 %v3538_v25  ;;  %v2960_v30 = vld [vmem:[#allocation8 + $0x1c0] sm:$0xf] }
  0xe7   :  { %1478 = vmatmul.bf16.gmra.mxu1 %v3541_v31  ;;  %v457_v35 = vpop.f32.mrf.mxu0  ;;  %1552 = vmatpush.bf16.msra.mxu2 %v2897_v26 }
  0xe8   :  { %v583_v33 = vpop.f32.mrf.mxu3  ;;  %v873_v37 = vmax.f32 %v495_v32, 0.0  ;;  %v546_v38 = vpop.f32.mrf.mxu1  ;;  %v458_v44 = vadd.f32 %v457_v35, %v3489_v51  ;;  %v3159_v32 = vld [vmem:[#allocation8 + $0x1c4] sm:$0xf0] }
  0xe9   :  { %v584_v34 = vadd.f32 %v583_v33, %v3486_v50  ;;  %v547_v46 = vadd.f32 %v546_v38, %v3486_v50  ;;  %v2961_v35 = vor.u32 %v3159_v32, %v2960_v30 }
  0xea   :  { %634 = vmatmul.bf16.gmra.mxu2 %v3463_v20  ;;  %v3548_v41 = vpack.c.bf16 %v873_v37, %v869_v36  ;;  %v813_v56 = vmax.f32 %v458_v44, 0.0 }
  0xeb   :  { %v874_v40 = vmax.f32 %v584_v34, 0.0  ;;  %v814_v59 = vmax.f32 %v547_v46, 0.0  ;;  %1641 = vmatpush.bf16.msra.mxu3 %v2961_v35 }
  0xec   :  { %4369 = vst [vmem:[#allocation17_spill] sm:$0xff] %v3548_v41 }
  0xed   :  { %723 = vmatmul.bf16.gmra.mxu3 %v3463_v20  ;;  %v3551_v4 = vpack.c.bf16 %v874_v40, %v870_v39  ;;  %v497_v49 = vpop.f32.mrf.mxu2 }
  0xee   :  { %v498_v20 = vadd.f32 %v497_v49, %v3489_v51 }
  0xef   :  { %4370 = vst [vmem:[#allocation18_spill] sm:$0xff] %v3551_v4  ;;  %v459_v55 = vpop.f32.mrf.mxu0 }
  0xf0   :  { %v586_v54 = vpop.f32.mrf.mxu3  ;;  %v460_v57 = vadd.f32 %v459_v55, %v3489_v51  ;;  %v548_v58 = vpop.f32.mrf.mxu1  ;;  %v877_v14 = vmax.f32 %v498_v20, 0.0 }
  0xf1   :  { %v549_v60 = vadd.f32 %v548_v58, %v3486_v50  ;;  %v587_v2 = vadd.f32 %v586_v54, %v3486_v50 }
  0xf2   :  { %v817_v61 = vmax.f32 %v460_v57, 0.0 }
  0xf3   :  { %v818_v63 = vmax.f32 %v549_v60, 0.0  ;;  %v878_v12 = vmax.f32 %v587_v2, 0.0 }
  0xf4   :  { %v3558_v0 = vpack.c.bf16 %v817_v61, %v813_v56 }
  0xf5   :  { %v499_v3 = vpop.f32.mrf.mxu2  ;;  %v3561_v52 = vpack.c.bf16 %v818_v63, %v814_v59 }
  0xf6   :  { %v500_v6 = vadd.f32 %v499_v3, %v3489_v51  ;;  %1394 = vmatmul.bf16.gmra.mxu0 %v3558_v0 }
  0xf7   :  { %1483 = vmatmul.bf16.gmra.mxu1 %v3561_v52  ;;  %v462_v9 = vpop.f32.mrf.mxu0 }
  0xf8   :  { %v588_v7 = vpop.f32.mrf.mxu3  ;;  %v881_v15 = vmax.f32 %v500_v6, 0.0  ;;  %v551_v17 = vpop.f32.mrf.mxu1  ;;  %v463_v24 = vadd.f32 %v462_v9, %v3489_v51 }
  0xf9   :  { %v589_v8 = vadd.f32 %v588_v7, %v3486_v50  ;;  %v552_v33 = vadd.f32 %v551_v17, %v3486_v50 }
  0xfa   :  { %639 = vmatmul.bf16.gmra.mxu2 %v3467_v28  ;;  %v3568_v19 = vpack.c.bf16 %v881_v15, %v877_v14  ;;  %v821_v38 = vmax.f32 %v463_v24, 0.0 }
  0xfb   :  { %v882_v18 = vmax.f32 %v589_v8, 0.0  ;;  %v822_v40 = vmax.f32 %v552_v33, 0.0 }
  0xfc   :  { %4371 = vst [vmem:[#allocation19_spill] sm:$0xff] %v3568_v19 }
  0xfd   :  { %728 = vmatmul.bf16.gmra.mxu3 %v3467_v28  ;;  %v3571_v23 = vpack.c.bf16 %v882_v18, %v878_v12  ;;  %v502_v34 = vpop.f32.mrf.mxu2 }
  0xfe   :  { %v503_v54 = vadd.f32 %v502_v34, %v3489_v51 }
  0xff   :  { %4372 = vst [vmem:[#allocation20_spill] sm:$0xff] %v3571_v23  ;;  %v464_v37 = vpop.f32.mrf.mxu0 }
 0x100   :  { %v591_v36 = vpop.f32.mrf.mxu3  ;;  %v465_v28 = vadd.f32 %v464_v37, %v3489_v51  ;;  %v553_v39 = vpop.f32.mrf.mxu1  ;;  %v885_v20 = vmax.f32 %v503_v54, 0.0 }
 0x101   :  { %v554_v44 = vadd.f32 %v553_v39, %v3486_v50  ;;  %v592_v56 = vadd.f32 %v591_v36, %v3486_v50 }
 0x102   :  { %v825_v46 = vmax.f32 %v465_v28, 0.0 }
 0x103   :  { %v826_v49 = vmax.f32 %v554_v44, 0.0  ;;  %v886_v6 = vmax.f32 %v592_v56, 0.0 }
 0x104   :  { %v3578_v55 = vpack.c.bf16 %v825_v46, %v821_v38 }
 0x105   :  { %v504_v57 = vpop.f32.mrf.mxu2  ;;  %v3581_v58 = vpack.c.bf16 %v826_v49, %v822_v40 }
 0x106   :  { %v505_v59 = vadd.f32 %v504_v57, %v3489_v51  ;;  %1399 = vmatmul.bf16.gmra.mxu0 %v3578_v55 }
 0x107   :  { %1488 = vmatmul.bf16.gmra.mxu1 %v3581_v58  ;;  %v467_v63 = vpop.f32.mrf.mxu0 }
 0x108   :  { %v593_v60 = vpop.f32.mrf.mxu3  ;;  %v889_v2 = vmax.f32 %v505_v59, 0.0  ;;  %v556_v3 = vpop.f32.mrf.mxu1  ;;  %v468_v14 = vadd.f32 %v467_v63, %v3489_v51  ;;  %v2888_v59 = vld [vmem:[#allocation8 + $0x130] sm:$0xf] }
 0x109   :  { %v594_v61 = vadd.f32 %v593_v60, %v3486_v50  ;;  %v557_v15 = vadd.f32 %v556_v3, %v3486_v50  ;;  %v3141_v60 = vld [vmem:[#allocation8 + $0x134] sm:$0xf0] }
 0x10a   :  { %644 = vmatmul.bf16.gmra.mxu2 %v3471_v42  ;;  %v3588_v8 = vpack.c.bf16 %v889_v2, %v885_v20  ;;  %v829_v21 = vmax.f32 %v468_v14, 0.0  ;;  %v2889_v20 = vor.u32 %v3141_v60, %v2888_v59  ;;  %v2952_v2 = vld [vmem:[#allocation8 + $0x1b0] sm:$0xf]  ;;  %v3157_v3 = vld [vmem:[#allocation8 + $0x1b4] sm:$0xf0] }
 0x10b   :  { %v890_v7 = vmax.f32 %v594_v61, 0.0  ;;  %v830_v26 = vmax.f32 %v557_v15, 0.0  ;;  %v2953_v14 = vor.u32 %v3157_v3, %v2952_v2  ;;  %v3116_v3 = vld [vmem:[#allocation8 + $0x74] sm:$0xf] }
 0x10c   :  { %4373 = vst [vmem:[#allocation21_spill] sm:$0xff] %v3588_v8  ;;  %1553 = vmatpush.bf16.msra.mxu2 %v2889_v20 }
 0x10d   :  { %733 = vmatmul.bf16.gmra.mxu3 %v3471_v42  ;;  %v3591_v9 = vpack.c.bf16 %v890_v7, %v886_v6  ;;  %v507_v17 = vpop.f32.mrf.mxu2 }
 0x10e   :  { %v508_v42 = vadd.f32 %v507_v17, %v3489_v51  ;;  %1642 = vmatpush.bf16.msra.mxu3 %v2953_v14 }
 0x10f   :  { %4374 = vst [vmem:[#allocation22_spill] sm:$0xff] %v3591_v9  ;;  %v469_v18 = vpop.f32.mrf.mxu0 }
 0x110   :  { %v596_v12 = vpop.f32.mrf.mxu3  ;;  %v470_v22 = vadd.f32 %v469_v18, %v3489_v51  ;;  %v558_v24 = vpop.f32.mrf.mxu1  ;;  %v893_v44 = vmax.f32 %v508_v42, 0.0 }
 0x111   :  { %v559_v30 = vadd.f32 %v558_v24, %v3486_v50  ;;  %v597_v35 = vadd.f32 %v596_v12, %v3486_v50 }
 0x112   :  { %v833_v32 = vmax.f32 %v470_v22, 0.0 }
 0x113   :  { %v834_v33 = vmax.f32 %v559_v30, 0.0  ;;  %v894_v54 = vmax.f32 %v597_v35, 0.0 }
 0x114   :  { %v3598_v34 = vpack.c.bf16 %v833_v32, %v829_v21 }
 0x115   :  { %v509_v36 = vpop.f32.mrf.mxu2  ;;  %v3601_v37 = vpack.c.bf16 %v834_v33, %v830_v26 }
 0x116   :  { %v510_v38 = vadd.f32 %v509_v36, %v3489_v51  ;;  %1404 = vmatmul.bf16.gmra.mxu0 %v3598_v34 }
 0x117   :  { %1493 = vmatmul.bf16.gmra.mxu1 %v3601_v37  ;;  %v472_v40 = vpop.f32.mrf.mxu0 }
 0x118   :  { %v598_v28 = vpop.f32.mrf.mxu3  ;;  %v897_v46 = vmax.f32 %v510_v38, 0.0  ;;  %v561_v49 = vpop.f32.mrf.mxu1  ;;  %v473_v63 = vadd.f32 %v472_v40, %v3489_v51 }
 0x119   :  { %v599_v39 = vadd.f32 %v598_v28, %v3486_v50  ;;  %v562_v6 = vadd.f32 %v561_v49, %v3486_v50 }
 0x11a   :  { %649 = vmatmul.bf16.gmra.mxu2 %v3475_v11  ;;  %v3608_v57 = vpack.c.bf16 %v897_v46, %v893_v44  ;;  %v837_v12 = vmax.f32 %v473_v63, 0.0 }
 0x11b   :  { %v898_v56 = vmax.f32 %v599_v39, 0.0  ;;  %v838_v21 = vmax.f32 %v562_v6, 0.0  ;;  %v2794_v6 = vld [vmem:[#allocation8 + $0x78] sm:$0xf0] }
 0x11c   :  { %4375 = vst [vmem:[#allocation23_spill] sm:$0xff] %v3608_v57  ;;  %v2797_v14 = vor.u32 %v3116_v3, %v2794_v6 }
 0x11d   :  { %738 = vmatmul.bf16.gmra.mxu3 %v3475_v11  ;;  %v3611_v61 = vpack.c.bf16 %v898_v56, %v894_v54  ;;  %v512_v7 = vpop.f32.mrf.mxu2 }
 0x11e   :  { %v513_v30 = vadd.f32 %v512_v7, %v3489_v51  ;;  %1727 = vmatpush.bf16.msra.mxu0 %v2797_v14  ;;  %v3155_v14 = vld [vmem:[#allocation8 + $0x1a4] sm:$0xf0] }
 0x11f   :  { %4376 = vst [vmem:[#allocation24_spill] sm:$0xff] %v3611_v61  ;;  %v474_v17 = vpop.f32.mrf.mxu0 }
 0x120   :  { %v601_v15 = vpop.f32.mrf.mxu3  ;;  %v475_v11 = vadd.f32 %v474_v17, %v3489_v51  ;;  %v563_v18 = vpop.f32.mrf.mxu1  ;;  %v901_v40 = vmax.f32 %v513_v30, 0.0 }
 0x121   :  { %v564_v22 = vadd.f32 %v563_v18, %v3486_v50  ;;  %v602_v33 = vadd.f32 %v601_v15, %v3486_v50 }
 0x122   :  { %v841_v24 = vmax.f32 %v475_v11, 0.0 }
 0x123   :  { %v842_v26 = vmax.f32 %v564_v22, 0.0  ;;  %v902_v49 = vmax.f32 %v602_v33, 0.0 }
 0x124   :  { %v3618_v32 = vpack.c.bf16 %v841_v24, %v837_v12 }
 0x125   :  { %v514_v42 = vpop.f32.mrf.mxu2  ;;  %v3621_v35 = vpack.c.bf16 %v842_v26, %v838_v21  ;;  %v2858_v21 = vld [vmem:[#allocation8 + $0xf8] sm:$0xf0] }
 0x126   :  { %v515_v36 = vadd.f32 %v514_v42, %v3489_v51  ;;  %1409 = vmatmul.bf16.gmra.mxu0 %v3618_v32 }
 0x127   :  { %1498 = vmatmul.bf16.gmra.mxu1 %v3621_v35  ;;  %v477_v39 = vpop.f32.mrf.mxu0 }
 0x128   :  { %v603_v38 = vpop.f32.mrf.mxu3  ;;  %v905_v44 = vmax.f32 %v515_v36, 0.0  ;;  %v566_v46 = vpop.f32.mrf.mxu1  ;;  %v478_v60 = vadd.f32 %v477_v39, %v3489_v51 }
 0x129   :  { %v604_v28 = vadd.f32 %v603_v38, %v3486_v50  ;;  %v567_v63 = vadd.f32 %v566_v46, %v3486_v50 }
 0x12a   :  { %654 = vmatmul.bf16.gmra.mxu2 %v3479_v45  ;;  %v3628_v56 = vpack.c.bf16 %v905_v44, %v901_v40  ;;  %v845_v15 = vmax.f32 %v478_v60, 0.0 }
 0x12b   :  { %v906_v54 = vmax.f32 %v604_v28, 0.0  ;;  %v846_v11 = vmax.f32 %v567_v63, 0.0  ;;  %v2880_v63 = vld [vmem:[#allocation8 + $0x120] sm:$0xf] }
 0x12d   :  { %743 = vmatmul.bf16.gmra.mxu3 %v3479_v45  ;;  %v3631_v59 = vpack.c.bf16 %v906_v54, %v902_v49  ;;  %v517_v20 = vpop.f32.mrf.mxu2  ;;  %v3132_v45 = vld [vmem:[#allocation8 + $0xf4] sm:$0xf] }
 0x12e   :  { %v2861_v24 = vor.u32 %v3132_v45, %v2858_v21  ;;  %v518_v30 = vadd.f32 %v517_v20, %v3489_v51  ;;  %v3139_v20 = vld [vmem:[#allocation8 + $0x124] sm:$0xf0] }
 0x12f   :  { %v479_v7 = vpop.f32.mrf.mxu0 }
 0x130   :  { %v606_v2 = vpop.f32.mrf.mxu3  ;;  %v480_v17 = vadd.f32 %v479_v7, %v3489_v51  ;;  %v568_v12 = vpop.f32.mrf.mxu1  ;;  %1816 = vmatpush.bf16.msra.mxu1 %v2861_v24  ;;  %v909_v44 = vmax.f32 %v518_v30, 0.0  ;;  %v2944_v7 = vld [vmem:[#allocation8 + $0x1a0] sm:$0xf] }
 0x131   :  { %v569_v18 = vadd.f32 %v568_v12, %v3486_v50  ;;  %v607_v42 = vadd.f32 %v606_v2, %v3486_v50  ;;  %v2881_v2 = vor.u32 %v3139_v20, %v2880_v63 }
 0x132   :  { %v849_v22 = vmax.f32 %v480_v17, 0.0  ;;  %v3657_v17 = vperm.slane %v3483_v47, 2 }
 0x133   :  { %v850_v26 = vmax.f32 %v569_v18, 0.0  ;;  %v910_v49 = vmax.f32 %v607_v42, 0.0  ;;  %1554 = vmatpush.bf16.msra.mxu2 %v2881_v2 }
 0x134   :  { %v3638_v33 = vpack.c.bf16 %v849_v22, %v845_v15  ;;  %v2945_v15 = vor.u32 %v3155_v14, %v2944_v7  ;;  %v3130_v14 = vld [vmem:[#allocation8 + $0xe4] sm:$0xf] }
 0x135   :  { %v519_v36 = vpop.f32.mrf.mxu2  ;;  %v3641_v38 = vpack.c.bf16 %v850_v26, %v846_v11 }
 0x136   :  { %v520_v28 = vadd.f32 %v519_v36, %v3489_v51  ;;  %1414 = vmatmul.bf16.gmra.mxu0 %v3638_v33  ;;  %1643 = vmatpush.bf16.msra.mxu3 %v2945_v15  ;;  %v2850_v15 = vld [vmem:[#allocation8 + $0xe8] sm:$0xf0] }
 0x137   :  { %1503 = vmatmul.bf16.gmra.mxu1 %v3641_v38 }
 0x138   :  { %v608_v39 = vpop.f32.mrf.mxu3  ;;  %v913_v46 = vmax.f32 %v520_v28, 0.0 }
 0x139   :  { %v609_v40 = vadd.f32 %v608_v39, %v3486_v50  ;;  %v1045_v50 = vld [vmem:[%s4333_s4] sm:$0x3] }
 0x13a   :  { %659 = vmatmul.bf16.gmra.mxu2 %v3441_v53  ;;  %v3648_v60 = vpack.c.bf16 %v913_v46, %v909_v44  ;;  %v3659_v12 = vperm.slane %v1045_v50, 0  ;;  %v3114_v50 = vld [vmem:[#allocation8 + $0x64] sm:$0xf] }
 0x13b   :  { %v914_v54 = vmax.f32 %v609_v40, 0.0 }
 0x13c   :  { %4377 = vst [vmem:[#allocation25_spill] sm:$0xff] %v3648_v60 }
 0x13d   :  { %748 = vmatmul.bf16.gmra.mxu3 %v3441_v53  ;;  %v3651_v51 = vpack.c.bf16 %v914_v54, %v910_v49  ;;  %v620_v3 = vpop.f32.mrf.mxu2  ;;  %v3662_v53 = vperm.slane %v3483_v47, 3 }
 0x13e   :  { %v621_v18 = vadd.f32 %v620_v3, %v3657_v17 }
 0x13f   :  { %4378 = vst [vmem:[#allocation26_spill] sm:$0xff] %v3651_v51 }
 0x140   :  { %v709_v6 = vpop.f32.mrf.mxu3  ;;  %v791_v36 = vmax.f32 %v621_v18, 0.0 }
 0x141   :  { %v710_v22 = vadd.f32 %v709_v6, %v3662_v53  ;;  %v2786_v6 = vld [vmem:[#allocation8 + $0x68] sm:$0xf0] }
 0x142   :  { %v2789_v7 = vor.u32 %v3114_v50, %v2786_v6 }
 0x143   :  { %v1380_v11 = vpop.f32.mrf.mxu0  ;;  %v792_v39 = vmax.f32 %v710_v22, 0.0 }
 0x144   :  { %v1381_v45 = vadd.f32 %v1380_v11, %v3659_v12  ;;  %v1469_v21 = vpop.f32.mrf.mxu1  ;;  %1728 = vmatpush.bf16.msra.mxu0 %v2789_v7  ;;  %v2853_v11 = vor.u32 %v3130_v14, %v2850_v15 }
 0x145   :  { %v622_v24 = vpop.f32.mrf.mxu2 }
 0x146   :  { %v3667_v26 = vadd.f32 %v1469_v21, %v1381_v45  ;;  %v623_v30 = vadd.f32 %v622_v24, %v3657_v17  ;;  %1419 = vmatmul.bf16.gmra.mxu0 %v3508_v27  ;;  %1817 = vmatpush.bf16.msra.mxu1 %v2853_v11 }
 0x147   :  { %1508 = vmatmul.bf16.gmra.mxu1 %v3511_v29 }
 0x148   :  { %v711_v42 = vpop.f32.mrf.mxu3  ;;  %v795_v28 = vmax.f32 %v623_v30, 0.0 }
 0x149   :  { %v712_v47 = vadd.f32 %v711_v42, %v3662_v53 }
 0x14a   :  { %v3673_v44 = vpack.c.bf16 %v795_v28, %v791_v36  ;;  %664 = vmatmul.bf16.gmra.mxu2 %v3449_v5 }
 0x14b   :  { %v796_v40 = vmax.f32 %v712_v47, 0.0  ;;  %v1382_v49 = vpop.f32.mrf.mxu0 }
 0x14c   :  { %4379 = vst [vmem:[#allocation27_spill] sm:$0xff] %v3673_v44  ;;  %v1383_v54 = vadd.f32 %v1382_v49, %v3659_v12  ;;  %v1471_v63 = vpop.f32.mrf.mxu1 }
 0x14d   :  { %v3676_v46 = vpack.c.bf16 %v796_v40, %v792_v39  ;;  %753 = vmatmul.bf16.gmra.mxu3 %v3449_v5  ;;  %v625_v20 = vpop.f32.mrf.mxu2 }
 0x14e   :  { %v3680_v2 = vadd.f32 %v1471_v63, %v1383_v54  ;;  %v626_v45 = vadd.f32 %v625_v20, %v3657_v17  ;;  %v2872_v20 = vld [vmem:[#allocation8 + $0x110] sm:$0xf] }
 0x14f   :  { %4380 = vst [vmem:[#allocation28_spill] sm:$0xff] %v3676_v46 }
 0x150   :  { %v714_v3 = vpop.f32.mrf.mxu3  ;;  %v799_v28 = vmax.f32 %v626_v45, 0.0  ;;  %v2936_v45 = vld [vmem:[#allocation8 + $0x190] sm:$0xf] }
 0x151   :  { %v715_v22 = vadd.f32 %v714_v3, %v3662_v53  ;;  %v3137_v3 = vld [vmem:[#allocation8 + $0x114] sm:$0xf0] }
 0x152   :  { %v2873_v14 = vor.u32 %v3137_v3, %v2872_v20 }
 0x153   :  { %v1385_v18 = vpop.f32.mrf.mxu0  ;;  %v800_v40 = vmax.f32 %v715_v22, 0.0 }
 0x154   :  { %v1386_v5 = vadd.f32 %v1385_v18, %v3659_v12  ;;  %v1474_v21 = vpop.f32.mrf.mxu1  ;;  %1555 = vmatpush.bf16.msra.mxu2 %v2873_v14 }
 0x155   :  { %v627_v24 = vpop.f32.mrf.mxu2 }
 0x156   :  { %v3685_v30 = vadd.f32 %v1474_v21, %v1386_v5  ;;  %v628_v42 = vadd.f32 %v627_v24, %v3657_v17  ;;  %1424 = vmatmul.bf16.gmra.mxu0 %v3528_v62  ;;  %v3153_v5 = vld [vmem:[#allocation8 + $0x194] sm:$0xf0] }
 0x157   :  { %1513 = vmatmul.bf16.gmra.mxu1 %v3531_v1  ;;  %v2937_v21 = vor.u32 %v3153_v5, %v2936_v45 }
 0x158   :  { %v716_v47 = vpop.f32.mrf.mxu3  ;;  %v803_v39 = vmax.f32 %v628_v42, 0.0 }
 0x159   :  { %v717_v36 = vadd.f32 %v716_v47, %v3662_v53  ;;  %1644 = vmatpush.bf16.msra.mxu3 %v2937_v21 }
 0x15a   :  { %669 = vmatmul.bf16.gmra.mxu2 %v3457_v13  ;;  %v3692_v54 = vpack.c.bf16 %v803_v39, %v799_v28 }
 0x15b   :  { %v804_v49 = vmax.f32 %v717_v36, 0.0  ;;  %v1387_v63 = vpop.f32.mrf.mxu0 }
 0x15c   :  { %v1388_v6 = vadd.f32 %v1387_v63, %v3659_v12  ;;  %v1476_v7 = vpop.f32.mrf.mxu1 }
 0x15d   :  { %758 = vmatmul.bf16.gmra.mxu3 %v3457_v13  ;;  %v3695_v50 = vpack.c.bf16 %v804_v49, %v800_v40  ;;  %v630_v15 = vpop.f32.mrf.mxu2 }
 0x15e   :  { %v3698_v11 = vadd.f32 %v1476_v7, %v1388_v6  ;;  %v631_v13 = vadd.f32 %v630_v15, %v3657_v17  ;;  %v3211_v7 = vld [vmem:[#allocation2 + $0x58] sm:$0xff] }
 0x15f   :  { %4381 = vst [vmem:[#allocation29_spill] sm:$0xff] %v3695_v50 }
 0x160   :  { %v719_v18 = vpop.f32.mrf.mxu3  ;;  %v807_v63 = vmax.f32 %v631_v13, 0.0  ;;  %v2778_v13 = vld [vmem:[#allocation8 + $0x58] sm:$0xf0] }
 0x161   :  { %v720_v47 = vadd.f32 %v719_v18, %v3662_v53 }
 0x163   :  { %v1390_v22 = vpop.f32.mrf.mxu0  ;;  %v808_v3 = vmax.f32 %v720_v47, 0.0  ;;  %v3128_v47 = vld [vmem:[#allocation8 + $0xd4] sm:$0xf] }
 0x164   :  { %v1391_v24 = vadd.f32 %v1390_v22, %v3659_v12  ;;  %v1479_v42 = vpop.f32.mrf.mxu1 }
 0x165   :  { %v632_v36 = vpop.f32.mrf.mxu2 }
 0x166   :  { %v3703_v28 = vadd.f32 %v1479_v42, %v1391_v24  ;;  %v633_v39 = vadd.f32 %v632_v36, %v3657_v17  ;;  %1429 = vmatmul.bf16.gmra.mxu0 %v3548_v41  ;;  %v3112_v42 = vld [vmem:[#allocation8 + $0x54] sm:$0xf] }
 0x167   :  { %1518 = vmatmul.bf16.gmra.mxu1 %v3551_v4  ;;  %v2781_v36 = vor.u32 %v3112_v42, %v2778_v13 }
 0x168   :  { %4382 = vst [vmem:[#allocation30_spill] sm:$0xff] %v3703_v28  ;;  %v721_v40 = vpop.f32.mrf.mxu3  ;;  %v811_v20 = vmax.f32 %v633_v39, 0.0  ;;  %v2842_v39 = vld [vmem:[#allocation8 + $0xd8] sm:$0xf0] }
 0x169   :  { %v722_v49 = vadd.f32 %v721_v40, %v3662_v53  ;;  %1729 = vmatpush.bf16.msra.mxu0 %v2781_v36  ;;  %v2845_v40 = vor.u32 %v3128_v47, %v2842_v39  ;;  %v3212_v39 = vld [vmem:[#allocation2 + $0x60] sm:$0xff] }
 0x16a   :  { %674 = vmatmul.bf16.gmra.mxu2 %v3211_v7  ;;  %v3709_v14 = vpack.c.bf16 %v811_v20, %v807_v63 }
 0x16b   :  { %v812_v6 = vmax.f32 %v722_v49, 0.0  ;;  %v1392_v15 = vpop.f32.mrf.mxu0  ;;  %1818 = vmatpush.bf16.msra.mxu1 %v2845_v40 }
 0x16c   :  { %4383 = vst [vmem:[#allocation31_spill] sm:$0xff] %v3709_v14  ;;  %v1393_v45 = vadd.f32 %v1392_v15, %v3659_v12  ;;  %v1481_v5 = vpop.f32.mrf.mxu1 }
 0x16d   :  { %763 = vmatmul.bf16.gmra.mxu3 %v3211_v7  ;;  %v3711_v18 = vpack.c.bf16 %v812_v6, %v808_v3  ;;  %v635_v21 = vpop.f32.mrf.mxu2 }
 0x16e   :  { %v3714_v22 = vadd.f32 %v1481_v5, %v1393_v45  ;;  %v636_v63 = vadd.f32 %v635_v21, %v3657_v17 }
 0x16f   :  { %4384 = vst [vmem:[#allocation32_spill] sm:$0xff] %v3711_v18 }
 0x170   :  { %4385 = vst [vmem:[#allocation33_spill] sm:$0xff] %v3714_v22  ;;  %v724_v24 = vpop.f32.mrf.mxu3  ;;  %v815_v13 = vmax.f32 %v636_v63, 0.0  ;;  %v3122_v22 = vld [vmem:[#allocation8 + $0xa4] sm:$0xf] }
 0x171   :  { %v725_v6 = vadd.f32 %v724_v24, %v3662_v53 }
 0x173   :  { %v1395_v49 = vpop.f32.mrf.mxu0  ;;  %v816_v36 = vmax.f32 %v725_v6, 0.0  ;;  %v2928_v6 = vld [vmem:[#allocation8 + $0x180] sm:$0xf] }
 0x174   :  { %v1396_v20 = vadd.f32 %v1395_v49, %v3659_v12  ;;  %v1484_v3 = vpop.f32.mrf.mxu1  ;;  %v2864_v49 = vld [vmem:[#allocation8 + $0x100] sm:$0xf] }
 0x175   :  { %v637_v7 = vpop.f32.mrf.mxu2 }
 0x176   :  { %v3719_v15 = vadd.f32 %v1484_v3, %v1396_v20  ;;  %v638_v45 = vadd.f32 %v637_v7, %v3657_v17  ;;  %1434 = vmatmul.bf16.gmra.mxu0 %v3568_v19  ;;  %v3135_v20 = vld [vmem:[#allocation8 + $0x104] sm:$0xf0] }
 0x177   :  { %1523 = vmatmul.bf16.gmra.mxu1 %v3571_v23 }
 0x178   :  { %4386 = vst [vmem:[#allocation34_spill] sm:$0xff] %v3719_v15  ;;  %v726_v5 = vpop.f32.mrf.mxu3  ;;  %v819_v21 = vmax.f32 %v638_v45, 0.0  ;;  %v3151_v45 = vld [vmem:[#allocation8 + $0x184] sm:$0xf0] }
 0x179   :  { %v727_v42 = vadd.f32 %v726_v5, %v3662_v53  ;;  %v2865_v5 = vor.u32 %v3135_v20, %v2864_v49 }
 0x17a   :  { %679 = vmatmul.bf16.gmra.mxu2 %v3212_v39  ;;  %v3725_v40 = vpack.c.bf16 %v819_v21, %v815_v13 }
 0x17b   :  { %v820_v47 = vmax.f32 %v727_v42, 0.0  ;;  %v1397_v24 = vpop.f32.mrf.mxu0  ;;  %1556 = vmatpush.bf16.msra.mxu2 %v2865_v5  ;;  %v2929_v42 = vor.u32 %v3151_v45, %v2928_v6  ;;  %v3213_v45 = vld [vmem:[#allocation2 + $0x68] sm:$0xff] }
 0x17c   :  { %v1398_v7 = vadd.f32 %v1397_v24, %v3659_v12  ;;  %v1486_v19 = vpop.f32.mrf.mxu1 }
 0x17d   :  { %768 = vmatmul.bf16.gmra.mxu3 %v3212_v39  ;;  %v3727_v3 = vpack.c.bf16 %v820_v47, %v816_v36  ;;  %v640_v15 = vpop.f32.mrf.mxu2 }
 0x17e   :  { %v3730_v23 = vadd.f32 %v1486_v19, %v1398_v7  ;;  %1645 = vmatpush.bf16.msra.mxu3 %v2929_v42  ;;  %v641_v21 = vadd.f32 %v640_v15, %v3657_v17 }
 0x17f   :  { %4387 = vst [vmem:[#allocation35_spill] sm:$0xff] %v3727_v3 }
 0x180   :  { %4388 = vst [vmem:[#allocation36_spill] sm:$0xff] %v3730_v23  ;;  %v729_v63 = vpop.f32.mrf.mxu3  ;;  %v823_v7 = vmax.f32 %v641_v21, 0.0  ;;  %v2770_v21 = vld [vmem:[#allocation8 + $0x48] sm:$0xf0] }
 0x181   :  { %v730_v47 = vadd.f32 %v729_v63, %v3662_v53 }
 0x183   :  { %v1400_v13 = vpop.f32.mrf.mxu0  ;;  %v824_v15 = vmax.f32 %v730_v47, 0.0  ;;  %v3126_v47 = vld [vmem:[#allocation8 + $0xc4] sm:$0xf] }
 0x184   :  { %v1401_v39 = vadd.f32 %v1400_v13, %v3659_v12  ;;  %v1489_v36 = vpop.f32.mrf.mxu1 }
 0x185   :  { %v642_v24 = vpop.f32.mrf.mxu2 }
 0x186   :  { %v3735_v4 = vadd.f32 %v1489_v36, %v1401_v39  ;;  %v643_v19 = vadd.f32 %v642_v24, %v3657_v17  ;;  %1439 = vmatmul.bf16.gmra.mxu0 %v3588_v8 }
 0x187   :  { %1528 = vmatmul.bf16.gmra.mxu1 %v3591_v9  ;;  %v3110_v9 = vld [vmem:[#allocation8 + $0x44] sm:$0xf] }
 0x188   :  { %4389 = vst [vmem:[#allocation37_spill] sm:$0xff] %v3735_v4  ;;  %v731_v49 = vpop.f32.mrf.mxu3  ;;  %v827_v5 = vmax.f32 %v643_v19, 0.0  ;;  %v2773_v19 = vor.u32 %v3110_v9, %v2770_v21 }
 0x189   :  { %v732_v20 = vadd.f32 %v731_v49, %v3662_v53 }
 0x18a   :  { %684 = vmatmul.bf16.gmra.mxu2 %v3213_v45  ;;  %v3741_v42 = vpack.c.bf16 %v827_v5, %v823_v7  ;;  %1730 = vmatpush.bf16.msra.mxu0 %v2773_v19 }
 0x18b   :  { %v828_v6 = vmax.f32 %v732_v20, 0.0  ;;  %v1402_v63 = vpop.f32.mrf.mxu0  ;;  %v2834_v20 = vld [vmem:[#allocation8 + $0xc8] sm:$0xf0] }
 0x18c   :  { %4390 = vst [vmem:[#allocation38_spill] sm:$0xff] %v3741_v42  ;;  %v1403_v39 = vadd.f32 %v1402_v63, %v3659_v12  ;;  %v1491_v36 = vpop.f32.mrf.mxu1  ;;  %v2837_v4 = vor.u32 %v3126_v47, %v2834_v20  ;;  %v2826_v47 = vld [vmem:[#allocation8 + $0xb8] sm:$0xf0] }
 0x18d   :  { %773 = vmatmul.bf16.gmra.mxu3 %v3213_v45  ;;  %v3743_v13 = vpack.c.bf16 %v828_v6, %v824_v15  ;;  %v645_v24 = vpop.f32.mrf.mxu2 }
 0x18e   :  { %v3746_v8 = vadd.f32 %v1491_v36, %v1403_v39  ;;  %v646_v5 = vadd.f32 %v645_v24, %v3657_v17  ;;  %1819 = vmatpush.bf16.msra.mxu1 %v2837_v4  ;;  %v3108_v39 = vld [vmem:[#allocation8 + $0x34] sm:$0xf]  ;;  %v2762_v36 = vld [vmem:[#allocation8 + $0x38] sm:$0xf0] }
 0x18f   :  { %4391 = vst [vmem:[#allocation39_spill] sm:$0xff] %v3743_v13  ;;  %v2765_v19 = vor.u32 %v3108_v39, %v2762_v36 }
 0x190   :  { %4392 = vst [vmem:[#allocation40_spill] sm:$0xff] %v3746_v8  ;;  %v734_v49 = vpop.f32.mrf.mxu3  ;;  %v3124_v8 = vld [vmem:[#allocation8 + $0xb4] sm:$0xf]  ;;  %v831_v20 = vmax.f32 %v646_v5, 0.0 }
 0x191   :  { %v735_v45 = vadd.f32 %v734_v49, %v3662_v53  ;;  %v2829_v4 = vor.u32 %v3124_v8, %v2826_v47  ;;  %1731 = vmatpush.bf16.msra.mxu0 %v2765_v19 }
 0x193   :  { %v1405_v7 = vpop.f32.mrf.mxu0  ;;  %1820 = vmatpush.bf16.msra.mxu1 %v2829_v4  ;;  %v2746_v4 = vld [vmem:[#allocation8 + $0x18] sm:$0xf0] }
 0x194   :  { %v1406_v15 = vadd.f32 %v1405_v7, %v3659_v12  ;;  %v1494_v6 = vpop.f32.mrf.mxu1  ;;  %v832_v7 = vmax.f32 %v735_v45, 0.0 }
 0x195   :  { %v647_v63 = vpop.f32.mrf.mxu2 }
 0x196   :  { %v3751_v23 = vadd.f32 %v1494_v6, %v1406_v15  ;;  %v648_v9 = vadd.f32 %v647_v63, %v3657_v17  ;;  %1444 = vmatmul.bf16.gmra.mxu0 %v3608_v57  ;;  %v3106_v15 = vld [vmem:[#allocation8 + $0x24] sm:$0xf]  ;;  %v2754_v6 = vld [vmem:[#allocation8 + $0x28] sm:$0xf0] }
 0x197   :  { %1533 = vmatmul.bf16.gmra.mxu1 %v3611_v61  ;;  %v2757_v63 = vor.u32 %v3106_v15, %v2754_v6  ;;  %v2818_v57 = vld [vmem:[#allocation8 + $0xa8] sm:$0xf0]  ;;  %v2922_v61 = vld [vmem:[#allocation8 + $0x178] sm:$0xf0]  ;;  %v3120_v15 = vld [vmem:[#allocation8 + $0x94] sm:$0xf] }
 0x198   :  { %4393 = vst [vmem:[#allocation41_spill] sm:$0xff] %v3751_v23  ;;  %v736_v21 = vpop.f32.mrf.mxu3  ;;  %v835_v49 = vmax.f32 %v648_v9, 0.0  ;;  %v3214_v23 = vld [vmem:[#allocation2 + $0x70] sm:$0xff]  ;;  %v2821_v8 = vor.u32 %v3122_v22, %v2818_v57  ;;  %v2810_v57 = vld [vmem:[#allocation8 + $0x98] sm:$0xf0] }
 0x199   :  { %v737_v24 = vadd.f32 %v736_v21, %v3662_v53  ;;  %v3148_v21 = vld [vmem:[#allocation8 + $0x174] sm:$0xf]  ;;  %1732 = vmatpush.bf16.msra.mxu0 %v2757_v63  ;;  %v2813_v22 = vor.u32 %v3120_v15, %v2810_v57 }
 0x19a   :  { %689 = vmatmul.bf16.gmra.mxu2 %v3214_v23  ;;  %v3757_v39 = vpack.c.bf16 %v835_v49, %v831_v20  ;;  %v2925_v19 = vor.u32 %v3148_v21, %v2922_v61  ;;  %1821 = vmatpush.bf16.msra.mxu1 %v2821_v8  ;;  %v2986_v49 = vld [vmem:[#allocation8 + $0x1f8] sm:$0xf0]  ;;  %v3102_v61 = vld [vmem:[#allocation8 + $0x4] sm:$0xf]  ;;  %v2802_v21 = vld [vmem:[#allocation8 + $0x88] sm:$0xf0] }
 0x19b   :  { %v836_v41 = vmax.f32 %v737_v24, 0.0  ;;  %v1407_v36 = vpop.f32.mrf.mxu0  ;;  %v3104_v24 = vld [vmem:[#allocation8 + $0x14] sm:$0xf] }
 0x19c   :  { %v1408_v45 = vadd.f32 %v1407_v36, %v3659_v12  ;;  %v1496_v9 = vpop.f32.mrf.mxu1  ;;  %1905 = vmatpush.bf16.msrb.mxu2 %v2925_v19  ;;  %v2749_v28 = vor.u32 %v3104_v24, %v2746_v4  ;;  %v3118_v36 = vld [vmem:[#allocation8 + $0x84] sm:$0xf] }
 0x19d   :  { %778 = vmatmul.bf16.gmra.mxu3 %v3214_v23  ;;  %v3759_v5 = vpack.c.bf16 %v836_v41, %v832_v7  ;;  %v650_v47 = vpop.f32.mrf.mxu2  ;;  %v3164_v23 = vld [vmem:[#allocation8 + $0x1f4] sm:$0xf]  ;;  %v2738_v7 = vld [vmem:[#allocation8 + $0x8] sm:$0xf0]  ;;  %v2805_v1 = vor.u32 %v3118_v36, %v2802_v21 }
 0x19e   :  { %v3762_v6 = vadd.f32 %v1496_v9, %v1408_v45  ;;  %v2989_v41 = vor.u32 %v3164_v23, %v2986_v49  ;;  %1733 = vmatpush.bf16.msra.mxu0 %v2749_v28  ;;  %1822 = vmatpush.bf16.msra.mxu1 %v2813_v22  ;;  %v2741_v63 = vor.u32 %v3102_v61, %v2738_v7  ;;  %v3215_v61 = vld [vmem:[#allocation2 + $0x78] sm:$0xff] }
 0x19f   :  { %4394 = vst [vmem:[#allocation42_spill] sm:$0xff] %v3759_v5  ;;  %v651_v45 = vadd.f32 %v650_v47, %v3657_v17 }
 0x1a0   :  { %v739_v20 = vpop.f32.mrf.mxu3  ;;  %1994 = vmatpush.bf16.msrb.mxu3 %v2989_v41 }
 0x1a1   :  { %v740_v24 = vadd.f32 %v739_v20, %v3662_v53  ;;  %v839_v47 = vmax.f32 %v651_v45, 0.0 }
 0x1a2   :  { %1734 = vmatpush.bf16.msra.mxu0 %v2741_v63  ;;  %1823 = vmatpush.bf16.msra.mxu1 %v2805_v1 }
 0x1a3   :  { %v1410_v8 = vpop.f32.mrf.mxu0  ;;  %v840_v41 = vmax.f32 %v740_v24, 0.0 }
 0x1a4   :  { %v1411_v9 = vadd.f32 %v1410_v8, %v3659_v12  ;;  %v1499_v19 = vpop.f32.mrf.mxu1 }
 0x1a5   :  { %v652_v4 = vpop.f32.mrf.mxu2 }
 0x1a6   :  { %v3767_v28 = vadd.f32 %v1499_v19, %v1411_v9  ;;  %v653_v15 = vadd.f32 %v652_v4, %v3657_v17  ;;  %1449 = vmatmul.bf16.gmra.mxu0 %v3628_v56 }
 0x1a7   :  { %1538 = vmatmul.bf16.gmra.mxu1 %v3631_v59 }
 0x1a8   :  { %v741_v23 = vpop.f32.mrf.mxu3  ;;  %v843_v57 = vmax.f32 %v653_v15, 0.0 }
 0x1a9   :  { %v742_v49 = vadd.f32 %v741_v23, %v3662_v53 }
 0x1aa   :  { %694 = vmatmul.bf16.gmra.mxu2 %v3215_v61  ;;  %v3773_v20 = vpack.c.bf16 %v843_v57, %v839_v47 }
 0x1ab   :  { %v844_v22 = vmax.f32 %v742_v49, 0.0  ;;  %v1412_v1 = vpop.f32.mrf.mxu0 }
 0x1ac   :  { %4395 = vst [vmem:[#allocation43_spill] sm:$0xff] %v3773_v20  ;;  %v1413_v63 = vadd.f32 %v1412_v1, %v3659_v12  ;;  %v1501_v36 = vpop.f32.mrf.mxu1 }
 0x1ad   :  { %783 = vmatmul.bf16.gmra.mxu3 %v3215_v61  ;;  %v3775_v7 = vpack.c.bf16 %v844_v22, %v840_v41  ;;  %v655_v21 = vpop.f32.mrf.mxu2 }
 0x1ae   :  { %v3778_v8 = vadd.f32 %v1501_v36, %v1413_v63  ;;  %v656_v45 = vadd.f32 %v655_v21, %v3657_v17 }
 0x1af   :  { %4396 = vst [vmem:[#allocation44_spill] sm:$0xff] %v3775_v7 }
 0x1b0   :  { %v744_v9 = vpop.f32.mrf.mxu3  ;;  %v847_v22 = vmax.f32 %v656_v45, 0.0 }
 0x1b1   :  { %v745_v15 = vadd.f32 %v744_v9, %v3662_v53  ;;  %v3146_v9 = vld [vmem:[#allocation8 + $0x164] sm:$0xf] }
 0x1b3   :  { %v1415_v19 = vpop.f32.mrf.mxu0  ;;  %v848_v1 = vmax.f32 %v745_v15, 0.0 }
 0x1b4   :  { %v1416_v24 = vadd.f32 %v1415_v19, %v3659_v12  ;;  %v1504_v4 = vpop.f32.mrf.mxu1  ;;  %v2914_v19 = vld [vmem:[#allocation8 + $0x168] sm:$0xf0] }
 0x1b5   :  { %v657_v23 = vpop.f32.mrf.mxu2 }
 0x1b6   :  { %v3783_v49 = vadd.f32 %v1504_v4, %v1416_v24  ;;  %v658_v47 = vadd.f32 %v657_v23, %v3657_v17  ;;  %1454 = vmatmul.bf16.gmra.mxu0 %v3648_v60 }
 0x1b7   :  { %1543 = vmatmul.bf16.gmra.mxu1 %v3651_v51 }
 0x1b8   :  { %v746_v57 = vpop.f32.mrf.mxu3  ;;  %v851_v61 = vmax.f32 %v658_v47, 0.0  ;;  %v3162_v47 = vld [vmem:[#allocation8 + $0x1e4] sm:$0xf] }
 0x1b9   :  { %v747_v41 = vadd.f32 %v746_v57, %v3662_v53  ;;  %v2917_v57 = vor.u32 %v3146_v9, %v2914_v19 }
 0x1ba   :  { %1557 = vmatmul.bf16.vlgmr.msra.gmra.mxu2 %v3673_v44  ;;  %v3790_v36 = vpack.c.bf16 %v851_v61, %v847_v22 }
 0x1bb   :  { %v852_v63 = vmax.f32 %v747_v41, 0.0  ;;  %v1417_v21 = vpop.f32.mrf.mxu0  ;;  %1906 = vmatpush.bf16.msrb.mxu2 %v2917_v57  ;;  %v2978_v41 = vld [vmem:[#allocation8 + $0x1e8] sm:$0xf0] }
 0x1bc   :  { %v1418_v4 = vadd.f32 %v1417_v21, %v3659_v12  ;;  %v1506_v23 = vpop.f32.mrf.mxu1  ;;  %v2981_v22 = vor.u32 %v3162_v47, %v2978_v41 }
 0x1bd   :  { %1646 = vmatmul.bf16.vlgmr.msra.gmra.mxu3 %v3676_v46  ;;  %v3793_v24 = vpack.c.bf16 %v852_v63, %v848_v1  ;;  %v660_v51 = vpop.f32.mrf.mxu2 }
 0x1be   :  { %v3796_v45 = vadd.f32 %v1506_v23, %v1418_v4  ;;  %1995 = vmatpush.bf16.msrb.mxu3 %v2981_v22  ;;  %v661_v46 = vadd.f32 %v660_v51, %v3657_v17 }
 0x1c0   :  { %v749_v15 = vpop.f32.mrf.mxu3  ;;  %v855_v23 = vmax.f32 %v661_v46, 0.0 }
 0x1c1   :  { %v750_v63 = vadd.f32 %v749_v15, %v3662_v53 }
 0x1c3   :  { %v1420_v61 = vpop.f32.mrf.mxu0  ;;  %v856_v51 = vmax.f32 %v750_v63, 0.0 }
 0x1c4   :  { %v1421_v44 = vadd.f32 %v1420_v61, %v3659_v12  ;;  %v1509_v1 = vpop.f32.mrf.mxu1 }
 0x1c5   :  { %v662_v21 = vpop.f32.mrf.mxu2 }
 0x1c6   :  { %v3801_v60 = vadd.f32 %v1509_v1, %v1421_v44  ;;  %v663_v9 = vadd.f32 %v662_v21, %v3657_v17  ;;  %1735 = vmatmul.bf16.vlgmr.msra.gmra.mxu0 %v3498_v10 }
 0x1c7   :  { %1824 = vmatmul.bf16.vlgmr.msra.gmra.mxu1 %v3501_v16 }
 0x1c8   :  { %v751_v19 = vpop.f32.mrf.mxu3  ;;  %v859_v57 = vmax.f32 %v663_v9, 0.0 }
 0x1c9   :  { %v752_v4 = vadd.f32 %v751_v19, %v3662_v53 }
 0x1ca   :  { %1562 = vmatmul.bf16.gmra.mxu2 %v3692_v54  ;;  %v3808_v41 = vpack.c.bf16 %v859_v57, %v855_v23 }
 0x1cb   :  { %v860_v47 = vmax.f32 %v752_v4, 0.0  ;;  %v1422_v44 = vpop.f32.mrf.mxu0 }
 0x1cc   :  { %v1423_v22 = vadd.f32 %v1422_v44, %v3659_v12  ;;  %v1511_v10 = vpop.f32.mrf.mxu1 }
 0x1cd   :  { %1651 = vmatmul.bf16.gmra.mxu3 %v3695_v50  ;;  %v3811_v15 = vpack.c.bf16 %v860_v47, %v856_v51  ;;  %v665_v61 = vpop.f32.mrf.mxu2 }
 0x1ce   :  { %v3814_v1 = vadd.f32 %v1511_v10, %v1423_v22  ;;  %v666_v63 = vadd.f32 %v665_v61, %v3657_v17 }
 0x1d0   :  { %v754_v16 = vpop.f32.mrf.mxu3  ;;  %v863_v44 = vmax.f32 %v666_v63, 0.0 }
 0x1d1   :  { %v755_v19 = vadd.f32 %v754_v16, %v3662_v53 }
 0x1d3   :  { %v1425_v46 = vpop.f32.mrf.mxu0  ;;  %v864_v10 = vmax.f32 %v755_v19, 0.0 }
 0x1d4   :  { %v1426_v21 = vadd.f32 %v1425_v46, %v3659_v12  ;;  %v1514_v9 = vpop.f32.mrf.mxu1 }
 0x1d5   :  { %v667_v4 = vpop.f32.mrf.mxu2 }
 0x1d6   :  { %v3819_v23 = vadd.f32 %v1514_v9, %v1426_v21  ;;  %v668_v57 = vadd.f32 %v667_v4, %v3657_v17  ;;  %1740 = vmatmul.bf16.gmra.mxu0 %v3518_v43  ;;  %v3144_v21 = vld [vmem:[#allocation8 + $0x154] sm:$0xf]  ;;  %v2906_v9 = vld [vmem:[#allocation8 + $0x158] sm:$0xf0] }
 0x1d7   :  { %1829 = vmatmul.bf16.gmra.mxu1 %v3521_v48 }
 0x1d8   :  { %4397 = vst [vmem:[#allocation45_spill] sm:$0xff] %v3819_v23  ;;  %v756_v51 = vpop.f32.mrf.mxu3  ;;  %v867_v22 = vmax.f32 %v668_v57, 0.0  ;;  %v2909_v23 = vor.u32 %v3144_v21, %v2906_v9  ;;  %v3160_v57 = vld [vmem:[#allocation8 + $0x1d4] sm:$0xf] }
 0x1d9   :  { %v757_v47 = vadd.f32 %v756_v51, %v3662_v53 }
 0x1da   :  { %1567 = vmatmul.bf16.gmra.mxu2 %v3709_v14  ;;  %v3826_v46 = vpack.c.bf16 %v867_v22, %v863_v44 }
 0x1db   :  { %v868_v61 = vmax.f32 %v757_v47, 0.0  ;;  %v1427_v16 = vpop.f32.mrf.mxu0  ;;  %1907 = vmatpush.bf16.msrb.mxu2 %v2909_v23  ;;  %v2970_v47 = vld [vmem:[#allocation8 + $0x1d8] sm:$0xf0] }
 0x1dc   :  { %v1428_v43 = vadd.f32 %v1427_v16, %v3659_v12  ;;  %v1516_v51 = vpop.f32.mrf.mxu1  ;;  %v2973_v44 = vor.u32 %v3160_v57, %v2970_v47 }
 0x1dd   :  { %1656 = vmatmul.bf16.gmra.mxu3 %v3711_v18  ;;  %v3829_v4 = vpack.c.bf16 %v868_v61, %v864_v10  ;;  %v670_v48 = vpop.f32.mrf.mxu2 }
 0x1de   :  { %v3832_v63 = vadd.f32 %v1516_v51, %v1428_v43  ;;  %1996 = vmatpush.bf16.msrb.mxu3 %v2973_v44  ;;  %v671_v18 = vadd.f32 %v670_v48, %v3657_v17 }
 0x1e0   :  { %v759_v19 = vpop.f32.mrf.mxu3  ;;  %v871_v43 = vmax.f32 %v671_v18, 0.0 }
 0x1e1   :  { %v760_v61 = vadd.f32 %v759_v19, %v3662_v53 }
 0x1e3   :  { %v1430_v22 = vpop.f32.mrf.mxu0  ;;  %v872_v48 = vmax.f32 %v760_v61, 0.0 }
 0x1e4   :  { %v1431_v14 = vadd.f32 %v1430_v22, %v3659_v12  ;;  %v1519_v10 = vpop.f32.mrf.mxu1 }
 0x1e5   :  { %v672_v16 = vpop.f32.mrf.mxu2 }
 0x1e6   :  { %v3837_v50 = vadd.f32 %v1519_v10, %v1431_v14  ;;  %v673_v21 = vadd.f32 %v672_v16, %v3657_v17  ;;  %1745 = vmatmul.bf16.gmra.mxu0 %v3538_v25 }
 0x1e7   :  { %1834 = vmatmul.bf16.gmra.mxu1 %v3541_v31 }
 0x1e8   :  { %v761_v9 = vpop.f32.mrf.mxu3  ;;  %v875_v51 = vmax.f32 %v673_v21, 0.0 }
 0x1e9   :  { %v762_v23 = vadd.f32 %v761_v9, %v3662_v53 }
 0x1ea   :  { %1572 = vmatmul.bf16.gmra.mxu2 %v3725_v40  ;;  %v3844_v47 = vpack.c.bf16 %v875_v51, %v871_v43 }
 0x1eb   :  { %v876_v57 = vmax.f32 %v762_v23, 0.0  ;;  %v1432_v14 = vpop.f32.mrf.mxu0 }
 0x1ec   :  { %4398 = vst [vmem:[#allocation46_spill] sm:$0xff] %v3844_v47  ;;  %v1433_v44 = vadd.f32 %v1432_v14, %v3659_v12  ;;  %v1521_v25 = vpop.f32.mrf.mxu1 }
 0x1ed   :  { %1661 = vmatmul.bf16.gmra.mxu3 %v3727_v3  ;;  %v3847_v19 = vpack.c.bf16 %v876_v57, %v872_v48  ;;  %v675_v22 = vpop.f32.mrf.mxu2 }
 0x1ee   :  { %v3850_v10 = vadd.f32 %v1521_v25, %v1433_v44  ;;  %v676_v61 = vadd.f32 %v675_v22, %v3657_v17 }
 0x1ef   :  { %4399 = vst [vmem:[#allocation47_spill] sm:$0xff] %v3847_v19 }
 0x1f0   :  { %v764_v31 = vpop.f32.mrf.mxu3  ;;  %v879_v14 = vmax.f32 %v676_v61, 0.0 }
 0x1f1   :  { %v765_v9 = vadd.f32 %v764_v31, %v3662_v53 }
 0x1f3   :  { %v1435_v18 = vpop.f32.mrf.mxu0  ;;  %v880_v25 = vmax.f32 %v765_v9, 0.0 }
 0x1f4   :  { %v1436_v16 = vadd.f32 %v1435_v18, %v3659_v12  ;;  %v1524_v21 = vpop.f32.mrf.mxu1 }
 0x1f5   :  { %v677_v23 = vpop.f32.mrf.mxu2 }
 0x1f6   :  { %v3855_v43 = vadd.f32 %v1524_v21, %v1436_v16  ;;  %v678_v51 = vadd.f32 %v677_v23, %v3657_v17  ;;  %1750 = vmatmul.bf16.gmra.mxu0 %v3558_v0  ;;  %v3142_v16 = vld [vmem:[#allocation8 + $0x144] sm:$0xf]  ;;  %v2898_v21 = vld [vmem:[#allocation8 + $0x148] sm:$0xf0] }
 0x1f7   :  { %1839 = vmatmul.bf16.gmra.mxu1 %v3561_v52 }
 0x1f8   :  { %4400 = vst [vmem:[#allocation48_spill] sm:$0xff] %v3855_v43  ;;  %v766_v48 = vpop.f32.mrf.mxu3  ;;  %v883_v44 = vmax.f32 %v678_v51, 0.0  ;;  %v2901_v43 = vor.u32 %v3142_v16, %v2898_v21  ;;  %v3158_v51 = vld [vmem:[#allocation8 + $0x1c4] sm:$0xf] }
 0x1f9   :  { %v767_v57 = vadd.f32 %v766_v48, %v3662_v53 }
 0x1fa   :  { %1577 = vmatmul.bf16.gmra.mxu2 %v3741_v42  ;;  %v3862_v18 = vpack.c.bf16 %v883_v44, %v879_v14 }
 0x1fb   :  { %v884_v22 = vmax.f32 %v767_v57, 0.0  ;;  %v1437_v31 = vpop.f32.mrf.mxu0  ;;  %1908 = vmatpush.bf16.msrb.mxu2 %v2901_v43  ;;  %v2962_v57 = vld [vmem:[#allocation8 + $0x1c8] sm:$0xf0] }
 0x1fc   :  { %4401 = vst [vmem:[#allocation49_spill] sm:$0xff] %v3862_v18  ;;  %v1438_v0 = vadd.f32 %v1437_v31, %v3659_v12  ;;  %v1526_v48 = vpop.f32.mrf.mxu1  ;;  %v2965_v14 = vor.u32 %v3158_v51, %v2962_v57 }
 0x1fd   :  { %1666 = vmatmul.bf16.gmra.mxu3 %v3743_v13  ;;  %v3865_v23 = vpack.c.bf16 %v884_v22, %v880_v25  ;;  %v680_v52 = vpop.f32.mrf.mxu2 }
 0x1fe   :  { %v3868_v61 = vadd.f32 %v1526_v48, %v1438_v0  ;;  %1997 = vmatpush.bf16.msrb.mxu3 %v2965_v14  ;;  %v681_v13 = vadd.f32 %v680_v52, %v3657_v17 }
 0x1ff   :  { %4402 = vst [vmem:[#allocation50_spill] sm:$0xff] %v3865_v23 }
 0x200   :  { %v769_v9 = vpop.f32.mrf.mxu3  ;;  %v887_v0 = vmax.f32 %v681_v13, 0.0 }
 0x201   :  { %v770_v22 = vadd.f32 %v769_v9, %v3662_v53 }
 0x203   :  { %v1440_v44 = vpop.f32.mrf.mxu0  ;;  %v888_v52 = vmax.f32 %v770_v22, 0.0 }
 0x204   :  { %v1441_v42 = vadd.f32 %v1440_v44, %v3659_v12  ;;  %v1529_v25 = vpop.f32.mrf.mxu1 }
 0x205   :  { %v682_v31 = vpop.f32.mrf.mxu2 }
 0x206   :  { %v3873_v3 = vadd.f32 %v1529_v25, %v1441_v42  ;;  %v683_v16 = vadd.f32 %v682_v31, %v3657_v17  ;;  %1755 = vmatmul.bf16.gmra.mxu0 %v3578_v55 }
 0x207   :  { %1844 = vmatmul.bf16.gmra.mxu1 %v3581_v58 }
 0x208   :  { %v771_v21 = vpop.f32.mrf.mxu3  ;;  %v891_v48 = vmax.f32 %v683_v16, 0.0 }
 0x209   :  { %v772_v43 = vadd.f32 %v771_v21, %v3662_v53 }
 0x20a   :  { %1582 = vmatmul.bf16.gmra.mxu2 %v3757_v39  ;;  %v3880_v57 = vpack.c.bf16 %v891_v48, %v887_v0 }
 0x20b   :  { %v892_v51 = vmax.f32 %v772_v43, 0.0  ;;  %v1442_v42 = vpop.f32.mrf.mxu0 }
 0x20c   :  { %4403 = vst [vmem:[#allocation51_spill] sm:$0xff] %v3880_v57  ;;  %v1443_v14 = vadd.f32 %v1442_v42, %v3659_v12  ;;  %v1531_v55 = vpop.f32.mrf.mxu1 }
 0x20d   :  { %1671 = vmatmul.bf16.gmra.mxu3 %v3759_v5  ;;  %v3883_v9 = vpack.c.bf16 %v892_v51, %v888_v52  ;;  %v685_v44 = vpop.f32.mrf.mxu2 }
 0x20e   :  { %v3886_v25 = vadd.f32 %v1531_v55, %v1443_v14  ;;  %v686_v22 = vadd.f32 %v685_v44, %v3657_v17 }
 0x20f   :  { %4404 = vst [vmem:[#allocation52_spill] sm:$0xff] %v3883_v9 }
 0x210   :  { %v774_v58 = vpop.f32.mrf.mxu3  ;;  %v895_v42 = vmax.f32 %v686_v22, 0.0 }
 0x211   :  { %v775_v21 = vadd.f32 %v774_v58, %v3662_v53 }
 0x213   :  { %v1445_v13 = vpop.f32.mrf.mxu0  ;;  %v896_v55 = vmax.f32 %v775_v21, 0.0 }
 0x214   :  { %v1446_v31 = vadd.f32 %v1445_v13, %v3659_v12  ;;  %v1534_v16 = vpop.f32.mrf.mxu1 }
 0x215   :  { %v687_v43 = vpop.f32.mrf.mxu2 }
 0x216   :  { %v3891_v0 = vadd.f32 %v1534_v16, %v1446_v31  ;;  %v688_v48 = vadd.f32 %v687_v43, %v3657_v17  ;;  %1760 = vmatmul.bf16.gmra.mxu0 %v3598_v34  ;;  %v3140_v31 = vld [vmem:[#allocation8 + $0x134] sm:$0xf]  ;;  %v2890_v16 = vld [vmem:[#allocation8 + $0x138] sm:$0xf0] }
 0x217   :  { %1849 = vmatmul.bf16.gmra.mxu1 %v3601_v37 }
 0x218   :  { %4405 = vst [vmem:[#allocation53_spill] sm:$0xff] %v3891_v0  ;;  %v776_v52 = vpop.f32.mrf.mxu3  ;;  %v899_v14 = vmax.f32 %v688_v48, 0.0  ;;  %v2893_v0 = vor.u32 %v3140_v31, %v2890_v16  ;;  %v3156_v48 = vld [vmem:[#allocation8 + $0x1b4] sm:$0xf] }
 0x219   :  { %v777_v51 = vadd.f32 %v776_v52, %v3662_v53 }
 0x21a   :  { %1587 = vmatmul.bf16.gmra.mxu2 %v3773_v20  ;;  %v3898_v13 = vpack.c.bf16 %v899_v14, %v895_v42 }
 0x21b   :  { %v900_v44 = vmax.f32 %v777_v51, 0.0  ;;  %v1447_v58 = vpop.f32.mrf.mxu0  ;;  %1909 = vmatpush.bf16.msrb.mxu2 %v2893_v0  ;;  %v2954_v51 = vld [vmem:[#allocation8 + $0x1b8] sm:$0xf0] }
 0x21c   :  { %v1448_v34 = vadd.f32 %v1447_v58, %v3659_v12  ;;  %v1536_v52 = vpop.f32.mrf.mxu1  ;;  %v2957_v42 = vor.u32 %v3156_v48, %v2954_v51 }
 0x21d   :  { %1676 = vmatmul.bf16.gmra.mxu3 %v3775_v7  ;;  %v3901_v43 = vpack.c.bf16 %v900_v44, %v896_v55  ;;  %v690_v37 = vpop.f32.mrf.mxu2 }
 0x21e   :  { %v3904_v22 = vadd.f32 %v1536_v52, %v1448_v34  ;;  %1998 = vmatpush.bf16.msrb.mxu3 %v2957_v42  ;;  %v691_v7 = vadd.f32 %v690_v37, %v3657_v17 }
 0x21f   :  { %4406 = vst [vmem:[#allocation54_spill] sm:$0xff] %v3901_v43 }
 0x220   :  { %v779_v21 = vpop.f32.mrf.mxu3  ;;  %v903_v34 = vmax.f32 %v691_v7, 0.0  ;;  %v3173_v7 = vld [vmem:[#allocation10 + $0x38] sm:$0xff] }
 0x221   :  { %v780_v44 = vadd.f32 %v779_v21, %v3662_v53  ;;  %2311 = vmatpush.bf16.msrb.mxu0 %v3173_v7 }
 0x223   :  { %v1450_v14 = vpop.f32.mrf.mxu0  ;;  %v904_v37 = vmax.f32 %v780_v44, 0.0  ;;  %v3181_v44 = vld [vmem:[#allocation10 + $0x78] sm:$0xff] }
 0x224   :  { %v1451_v20 = vadd.f32 %v1450_v14, %v3659_v12  ;;  %v1539_v55 = vpop.f32.mrf.mxu1  ;;  %2400 = vmatpush.bf16.msrb.mxu1 %v3181_v44 }
 0x225   :  { %v692_v58 = vpop.f32.mrf.mxu2 }
 0x226   :  { %v3909_v5 = vadd.f32 %v1539_v55, %v1451_v20  ;;  %v693_v31 = vadd.f32 %v692_v58, %v3657_v17  ;;  %1765 = vmatmul.bf16.gmra.mxu0 %v3618_v32 }
 0x227   :  { %1854 = vmatmul.bf16.gmra.mxu1 %v3621_v35 }
 0x228   :  { %v781_v16 = vpop.f32.mrf.mxu3  ;;  %v907_v52 = vmax.f32 %v693_v31, 0.0 }
 0x229   :  { %v782_v0 = vadd.f32 %v781_v16, %v3662_v53 }
 0x22a   :  { %1592 = vmatmul.bf16.gmra.mxu2 %v3790_v36  ;;  %v3916_v51 = vpack.c.bf16 %v907_v52, %v903_v34 }
 0x22b   :  { %v908_v48 = vmax.f32 %v782_v0, 0.0  ;;  %v1452_v20 = vpop.f32.mrf.mxu0 }
 0x22c   :  { %v1453_v42 = vadd.f32 %v1452_v20, %v3659_v12  ;;  %v1541_v32 = vpop.f32.mrf.mxu1 }
 0x22d   :  { %1681 = vmatmul.bf16.gmra.mxu3 %v3793_v24  ;;  %v3919_v21 = vpack.c.bf16 %v908_v48, %v904_v37  ;;  %v695_v14 = vpop.f32.mrf.mxu2 }
 0x22e   :  { %v3922_v55 = vadd.f32 %v1541_v32, %v1453_v42  ;;  %v696_v31 = vadd.f32 %v695_v14, %v3657_v17 }
 0x22f   :  { %4407 = vst [vmem:[#allocation55_spill] sm:$0xff] %v3919_v21 }
 0x230   :  { %v784_v35 = vpop.f32.mrf.mxu3  ;;  %v911_v32 = vmax.f32 %v696_v31, 0.0 }
 0x231   :  { %v785_v34 = vadd.f32 %v784_v35, %v3662_v53 }
 0x233   :  { %v1455_v58 = vpop.f32.mrf.mxu0  ;;  %v912_v7 = vmax.f32 %v785_v34, 0.0 }
 0x234   :  { %v1456_v16 = vadd.f32 %v1455_v58, %v3659_v12  ;;  %v1544_v0 = vpop.f32.mrf.mxu1 }
 0x235   :  { %v697_v52 = vpop.f32.mrf.mxu2 }
 0x236   :  { %v3927_v37 = vadd.f32 %v1544_v0, %v1456_v16  ;;  %v698_v48 = vadd.f32 %v697_v52, %v3657_v17  ;;  %1770 = vmatmul.bf16.gmra.mxu0 %v3638_v33  ;;  %v3138_v16 = vld [vmem:[#allocation8 + $0x124] sm:$0xf]  ;;  %v2882_v17 = vld [vmem:[#allocation8 + $0x128] sm:$0xf0] }
 0x237   :  { %1859 = vmatmul.bf16.gmra.mxu1 %v3641_v38  ;;  %v2885_v52 = vor.u32 %v3138_v16, %v2882_v17 }
 0x238   :  { %v786_v20 = vpop.f32.mrf.mxu3  ;;  %v915_v14 = vmax.f32 %v698_v48, 0.0 }
 0x239   :  { %v787_v42 = vadd.f32 %v786_v20, %v3662_v53  ;;  %1910 = vmatpush.bf16.msrb.mxu2 %v2885_v52  ;;  %v3154_v20 = vld [vmem:[#allocation8 + $0x1a4] sm:$0xf] }
 0x23a   :  { %1597 = vmatmul.bf16.gmra.mxu2 %v3808_v41  ;;  %v3934_v44 = vpack.c.bf16 %v915_v14, %v911_v32 }
 0x23b   :  { %v916_v58 = vmax.f32 %v787_v42, 0.0  ;;  %v1457_v35 = vpop.f32.mrf.mxu0  ;;  %v2946_v42 = vld [vmem:[#allocation8 + $0x1a8] sm:$0xf0] }
 0x23c   :  { %v1458_v33 = vadd.f32 %v1457_v35, %v3659_v12  ;;  %v1546_v53 = vpop.f32.mrf.mxu1  ;;  %v2949_v32 = vor.u32 %v3154_v20, %v2946_v42 }
 0x23d   :  { %1686 = vmatmul.bf16.gmra.mxu3 %v3811_v15  ;;  %v3937_v0 = vpack.c.bf16 %v916_v58, %v912_v7  ;;  %v1558_v38 = vpop.f32.mrf.mxu2  ;;  %v3216_v7 = vld [vmem:[%s4333_s4] sm:$0x3] }
 0x23e   :  { %v3940_v31 = vadd.f32 %v1546_v53, %v1458_v33  ;;  %v1559_v34 = vadd.f32 %v1558_v38, %v3667_v26  ;;  %v3946_v58 = vperm.slane %v3216_v7, 1  ;;  %1999 = vmatpush.bf16.msrb.mxu3 %v2949_v32 }
 0x23f   :  { %4408 = vst [vmem:[#allocation56_spill] sm:$0xff] %v3937_v0 }
 0x240   :  { %v1647_v48 = vpop.f32.mrf.mxu3 }
 0x241   :  { %v1648_v14 = vadd.f32 %v1647_v48, %v1559_v34 }
 0x243   :  { %v1736_v12 = vpop.f32.mrf.mxu0  ;;  %v2083_v38 = vmax.f32 %v1648_v14, 0.0  ;;  %v3180_v14 = vld [vmem:[#allocation10 + $0x70] sm:$0xff] }
 0x244   :  { %v1737_v35 = vadd.f32 %v1736_v12, %v3946_v58  ;;  %v1825_v16 = vpop.f32.mrf.mxu1  ;;  %2401 = vmatpush.bf16.msrb.mxu1 %v3180_v14 }
 0x245   :  { %v1560_v17 = vpop.f32.mrf.mxu2 }
 0x246   :  { %v3949_v33 = vadd.f32 %v1825_v16, %v1737_v35  ;;  %v1561_v26 = vadd.f32 %v1560_v17, %v3680_v2  ;;  %1775 = vmatmul.bf16.gmra.mxu0 %v3508_v27 }
 0x247   :  { %1864 = vmatmul.bf16.gmra.mxu1 %v3511_v29  ;;  %v3172_v29 = vld [vmem:[#allocation10 + $0x30] sm:$0xff] }
 0x248   :  { %v1649_v53 = vpop.f32.mrf.mxu3  ;;  %2312 = vmatpush.bf16.msrb.mxu0 %v3172_v29 }
 0x249   :  { %v1650_v52 = vadd.f32 %v1649_v53, %v1561_v26 }
 0x24a   :  { %1602 = vmatmul.bf16.gmra.mxu2 %v3826_v46 }
 0x24b   :  { %v2085_v34 = vmax.f32 %v1650_v52, 0.0  ;;  %v1738_v48 = vpop.f32.mrf.mxu0 }
 0x24c   :  { %v1739_v42 = vadd.f32 %v1738_v48, %v3946_v58  ;;  %v1827_v32 = vpop.f32.mrf.mxu1  ;;  %v4410_v48 = vld [vmem:[#allocation16_spill] sm:$0xff] }
 0x24d   :  { %1691 = vmatmul.bf16.gmra.mxu3 %v3829_v4  ;;  %v3956_v20 = vpack.c.bf16 %v2085_v34, %v2083_v38  ;;  %v1563_v7 = vpop.f32.mrf.mxu2 }
 0x24e   :  { %v3959_v2 = vadd.f32 %v1827_v32, %v1739_v42  ;;  %v1564_v27 = vadd.f32 %v1563_v7, %v3685_v30 }
 0x250   :  { %v1652_v12 = vpop.f32.mrf.mxu3 }
 0x251   :  { %v1653_v35 = vadd.f32 %v1652_v12, %v1564_v27  ;;  %v3136_v27 = vld [vmem:[#allocation8 + $0x114] sm:$0xf]  ;;  %v2874_v12 = vld [vmem:[#allocation8 + $0x118] sm:$0xf0] }
 0x253   :  { %v1741_v16 = vpop.f32.mrf.mxu0  ;;  %v2087_v42 = vmax.f32 %v1653_v35, 0.0 }
 0x254   :  { %v1742_v17 = vadd.f32 %v1741_v16, %v3946_v58  ;;  %v1830_v26 = vpop.f32.mrf.mxu1  ;;  %v2877_v16 = vor.u32 %v3136_v27, %v2874_v12 }
 0x255   :  { %v1565_v53 = vpop.f32.mrf.mxu2 }
 0x256   :  { %v3963_v52 = vadd.f32 %v1830_v26, %v1742_v17  ;;  %v1566_v38 = vadd.f32 %v1565_v53, %v3698_v11  ;;  %1780 = vmatmul.bf16.gmra.mxu0 %v3528_v62  ;;  %v4411_v26 = vld [vmem:[#allocation30_spill] sm:$0xff]  ;;  %1911 = vmatpush.bf16.msrb.mxu2 %v2877_v16 }
 0x257   :  { %1869 = vmatmul.bf16.gmra.mxu1 %v4410_v48 }
 0x258   :  { %4409 = vst [vmem:[#allocation57_spill] sm:$0xff] %v3963_v52  ;;  %v1654_v34 = vpop.f32.mrf.mxu3 }
 0x259   :  { %v1655_v30 = vadd.f32 %v1654_v34, %v1566_v38  ;;  %v3152_v38 = vld [vmem:[#allocation8 + $0x194] sm:$0xf]  ;;  %v2938_v34 = vld [vmem:[#allocation8 + $0x198] sm:$0xf0] }
 0x25a   :  { %1607 = vmatmul.bf16.gmra.mxu2 %v3844_v47  ;;  %v2941_v48 = vor.u32 %v3152_v38, %v2938_v34  ;;  %v4416_v34 = vld [vmem:[#allocation34_spill] sm:$0xff] }
 0x25b   :  { %v2089_v32 = vmax.f32 %v1655_v30, 0.0  ;;  %v1743_v7 = vpop.f32.mrf.mxu0 }
 0x25c   :  { %v1744_v29 = vadd.f32 %v1743_v7, %v3946_v58  ;;  %v1832_v14 = vpop.f32.mrf.mxu1  ;;  %2000 = vmatpush.bf16.msrb.mxu3 %v2941_v48 }
 0x25d   :  { %1696 = vmatmul.bf16.gmra.mxu3 %v3847_v19  ;;  %v3971_v11 = vpack.c.bf16 %v2089_v32, %v2087_v42  ;;  %v1568_v17 = vpop.f32.mrf.mxu2  ;;  %v4412_v42 = vld [vmem:[#allocation33_spill] sm:$0xff] }
 0x25e   :  { %v3973_v62 = vadd.f32 %v1832_v14, %v1744_v29  ;;  %v1569_v53 = vadd.f32 %v1568_v17, %v4411_v26  ;;  %v4413_v29 = vld [vmem:[#allocation17_spill] sm:$0xff]  ;;  %v4414_v14 = vld [vmem:[#allocation18_spill] sm:$0xff] }
 0x260   :  { %v1657_v35 = vpop.f32.mrf.mxu3 }
 0x261   :  { %v1658_v30 = vadd.f32 %v1657_v35, %v1569_v53 }
 0x263   :  { %v1746_v19 = vpop.f32.mrf.mxu0  ;;  %v2091_v17 = vmax.f32 %v1658_v30, 0.0  ;;  %v3179_v30 = vld [vmem:[#allocation10 + $0x68] sm:$0xff] }
 0x264   :  { %v1747_v47 = vadd.f32 %v1746_v19, %v3946_v58  ;;  %v1835_v7 = vpop.f32.mrf.mxu1  ;;  %2402 = vmatpush.bf16.msrb.mxu1 %v3179_v30  ;;  %v2866_v30 = vld [vmem:[#allocation8 + $0x108] sm:$0xf0] }
 0x265   :  { %v1570_v52 = vpop.f32.mrf.mxu2 }
 0x266   :  { %v3977_v27 = vadd.f32 %v1835_v7, %v1747_v47  ;;  %v1571_v32 = vadd.f32 %v1570_v52, %v4412_v42  ;;  %1785 = vmatmul.bf16.gmra.mxu0 %v4413_v29  ;;  %v3171_v42 = vld [vmem:[#allocation10 + $0x28] sm:$0xff] }
 0x267   :  { %1874 = vmatmul.bf16.gmra.mxu1 %v4414_v14  ;;  %2313 = vmatpush.bf16.msrb.mxu0 %v3171_v42  ;;  %v3134_v42 = vld [vmem:[#allocation8 + $0x104] sm:$0xf] }
 0x268   :  { %v1659_v12 = vpop.f32.mrf.mxu3 }
 0x269   :  { %v1660_v16 = vadd.f32 %v1659_v12, %v1571_v32 }
 0x26a   :  { %1612 = vmatmul.bf16.gmra.mxu2 %v3862_v18 }
 0x26b   :  { %v2093_v26 = vmax.f32 %v1660_v16, 0.0  ;;  %v1748_v53 = vpop.f32.mrf.mxu0 }
 0x26c   :  { %v1749_v19 = vadd.f32 %v1748_v53, %v3946_v58  ;;  %v1837_v35 = vpop.f32.mrf.mxu1 }
 0x26d   :  { %1701 = vmatmul.bf16.gmra.mxu3 %v3865_v23  ;;  %v3985_v47 = vpack.c.bf16 %v2093_v26, %v2091_v17  ;;  %v1573_v38 = vpop.f32.mrf.mxu2  ;;  %v4418_v17 = vld [vmem:[#allocation36_spill] sm:$0xff] }
 0x26e   :  { %v3987_v52 = vadd.f32 %v1837_v35, %v1749_v19  ;;  %v1574_v48 = vadd.f32 %v1573_v38, %v4416_v34  ;;  %v4419_v19 = vld [vmem:[#allocation19_spill] sm:$0xff]  ;;  %v4420_v35 = vld [vmem:[#allocation20_spill] sm:$0xff] }
 0x270   :  { %4415 = vst [vmem:[#allocation16_spill] sm:$0xff] %v3987_v52  ;;  %v1662_v7 = vpop.f32.mrf.mxu3 }
 0x271   :  { %v1663_v32 = vadd.f32 %v1662_v7, %v1574_v48 }
 0x273   :  { %v1751_v12 = vpop.f32.mrf.mxu0  ;;  %v2095_v34 = vmax.f32 %v1663_v32, 0.0 }
 0x274   :  { %v1752_v29 = vadd.f32 %v1751_v12, %v3946_v58  ;;  %v1840_v14 = vpop.f32.mrf.mxu1 }
 0x275   :  { %v1575_v16 = vpop.f32.mrf.mxu2 }
 0x276   :  { %v3991_v53 = vadd.f32 %v1840_v14, %v1752_v29  ;;  %v1576_v26 = vadd.f32 %v1575_v16, %v4418_v17  ;;  %1790 = vmatmul.bf16.gmra.mxu0 %v4419_v19  ;;  %v2869_v14 = vor.u32 %v3134_v42, %v2866_v30 }
 0x277   :  { %1879 = vmatmul.bf16.gmra.mxu1 %v4420_v35  ;;  %v4421_v35 = vld [vmem:[#allocation37_spill] sm:$0xff] }
 0x278   :  { %4417 = vst [vmem:[#allocation30_spill] sm:$0xff] %v3991_v53  ;;  %v1664_v23 = vpop.f32.mrf.mxu3  ;;  %1912 = vmatpush.bf16.msrb.mxu2 %v2869_v14 }
 0x279   :  { %v1665_v38 = vadd.f32 %v1664_v23, %v1576_v26  ;;  %v3150_v26 = vld [vmem:[#allocation8 + $0x184] sm:$0xf] }
 0x27a   :  { %1617 = vmatmul.bf16.gmra.mxu2 %v3880_v57 }
 0x27b   :  { %v2097_v48 = vmax.f32 %v1665_v38, 0.0  ;;  %v1753_v7 = vpop.f32.mrf.mxu0  ;;  %v2930_v38 = vld [vmem:[#allocation8 + $0x188] sm:$0xf0] }
 0x27c   :  { %v1754_v12 = vadd.f32 %v1753_v7, %v3946_v58  ;;  %v1842_v29 = vpop.f32.mrf.mxu1  ;;  %v2933_v57 = vor.u32 %v3150_v26, %v2930_v38  ;;  %v3170_v38 = vld [vmem:[#allocation10 + $0x20] sm:$0xff] }
 0x27d   :  { %1706 = vmatmul.bf16.gmra.mxu3 %v3883_v9  ;;  %v3999_v16 = vpack.c.bf16 %v2097_v48, %v2095_v34  ;;  %v1578_v17 = vpop.f32.mrf.mxu2  ;;  %v4422_v34 = vld [vmem:[#allocation40_spill] sm:$0xff]  ;;  %2314 = vmatpush.bf16.msrb.mxu0 %v3170_v38  ;;  %v3168_v38 = vld [vmem:[#allocation10 + $0x10] sm:$0xff] }
 0x27e   :  { %v4001_v19 = vadd.f32 %v1842_v29, %v1754_v12  ;;  %v1579_v23 = vadd.f32 %v1578_v17, %v4421_v35  ;;  %2001 = vmatpush.bf16.msrb.mxu3 %v2933_v57  ;;  %v4423_v12 = vld [vmem:[#allocation21_spill] sm:$0xff]  ;;  %v4424_v29 = vld [vmem:[#allocation22_spill] sm:$0xff] }
 0x280   :  { %v1667_v32 = vpop.f32.mrf.mxu3 }
 0x281   :  { %v1668_v9 = vadd.f32 %v1667_v32, %v1579_v23 }
 0x283   :  { %v1756_v53 = vpop.f32.mrf.mxu0  ;;  %v2099_v17 = vmax.f32 %v1668_v9, 0.0 }
 0x284   :  { %v1757_v18 = vadd.f32 %v1756_v53, %v3946_v58  ;;  %v1845_v7 = vpop.f32.mrf.mxu1 }
 0x285   :  { %v1580_v52 = vpop.f32.mrf.mxu2 }
 0x286   :  { %v4005_v42 = vadd.f32 %v1845_v7, %v1757_v18  ;;  %v1581_v48 = vadd.f32 %v1580_v52, %v4422_v34  ;;  %1795 = vmatmul.bf16.gmra.mxu0 %v4423_v12  ;;  %v4425_v52 = vld [vmem:[#allocation41_spill] sm:$0xff]  ;;  %v3178_v34 = vld [vmem:[#allocation10 + $0x60] sm:$0xff] }
 0x287   :  { %1884 = vmatmul.bf16.gmra.mxu1 %v4424_v29 }
 0x288   :  { %v1669_v30 = vpop.f32.mrf.mxu3  ;;  %2403 = vmatpush.bf16.msrb.mxu1 %v3178_v34 }
 0x289   :  { %v1670_v14 = vadd.f32 %v1669_v30, %v1581_v48 }
 0x28a   :  { %1622 = vmatmul.bf16.gmra.mxu2 %v3898_v13 }
 0x28b   :  { %v2101_v35 = vmax.f32 %v1670_v14, 0.0  ;;  %v4012_v57 = vpop.f32.mrf.mxu0 }
 0x28c   :  { %v4014_v53 = vpop.f32.mrf.mxu1 }
 0x28d   :  { %1711 = vmatmul.bf16.gmra.mxu3 %v3901_v43  ;;  %v4016_v18 = vpack.c.bf16 %v2101_v35, %v2099_v17  ;;  %v1583_v23 = vpop.f32.mrf.mxu2  ;;  %v4426_v35 = vld [vmem:[#allocation23_spill] sm:$0xff] }
 0x28e   :  { %v1584_v32 = vadd.f32 %v1583_v23, %v4425_v52  ;;  %v3169_v43 = vld [vmem:[#allocation10 + $0x18] sm:$0xff]  ;;  %v4427_v23 = vld [vmem:[#allocation24_spill] sm:$0xff] }
 0x28f   :  { %2315 = vmatpush.bf16.msrb.mxu0 %v3169_v43 }
 0x290   :  { %v1672_v26 = vpop.f32.mrf.mxu3 }
 0x291   :  { %v1673_v7 = vadd.f32 %v1672_v26, %v1584_v32 }
 0x293   :  { %v1761_v9 = vpop.f32.mrf.mxu0  ;;  %v2103_v32 = vmax.f32 %v1673_v7, 0.0  ;;  %2316 = vmatpush.bf16.msrb.mxu0 %v3168_v38  ;;  %v3166_v7 = vld [vmem:[#allocation10] sm:$0xff] }
 0x294   :  { %v1762_v48 = vadd.f32 %v1761_v9, %v3946_v58  ;;  %v1850_v30 = vpop.f32.mrf.mxu1 }
 0x295   :  { %v1585_v12 = vpop.f32.mrf.mxu2 }
 0x296   :  { %v4020_v29 = vadd.f32 %v1850_v30, %v1762_v48  ;;  %v1586_v14 = vadd.f32 %v1585_v12, %v3762_v6  ;;  %1800 = vmatmul.bf16.gmra.mxu0 %v4426_v35 }
 0x297   :  { %1889 = vmatmul.bf16.gmra.mxu1 %v4427_v23 }
 0x298   :  { %v1674_v17 = vpop.f32.mrf.mxu3 }
 0x299   :  { %v1675_v52 = vadd.f32 %v1674_v17, %v1586_v14  ;;  %v3167_v14 = vld [vmem:[#allocation10 + $0x8] sm:$0xff] }
 0x29a   :  { %1627 = vmatmul.bf16.gmra.mxu2 %v3916_v51  ;;  %2317 = vmatpush.bf16.msrb.mxu0 %v3167_v14 }
 0x29b   :  { %v2105_v26 = vmax.f32 %v1675_v52, 0.0  ;;  %v4027_v34 = vpop.f32.mrf.mxu0 }
 0x29c   :  { %v4029_v9 = vpop.f32.mrf.mxu1 }
 0x29d   :  { %1716 = vmatmul.bf16.gmra.mxu3 %v3919_v21  ;;  %v4031_v6 = vpack.c.bf16 %v2105_v26, %v2103_v32  ;;  %v1588_v48 = vpop.f32.mrf.mxu2 }
 0x29e   :  { %v1589_v30 = vadd.f32 %v1588_v48, %v3767_v28  ;;  %2318 = vmatpush.bf16.msrb.mxu0 %v3166_v7 }
 0x2a0   :  { %v1677_v12 = vpop.f32.mrf.mxu3 }
 0x2a1   :  { %v1678_v43 = vadd.f32 %v1677_v12, %v1589_v30 }
 0x2a3   :  { %v1766_v17 = vpop.f32.mrf.mxu0  ;;  %v2107_v26 = vmax.f32 %v1678_v43, 0.0 }
 0x2a4   :  { %v1767_v35 = vadd.f32 %v1766_v17, %v3946_v58  ;;  %v1855_v23 = vpop.f32.mrf.mxu1 }
 0x2a5   :  { %v1590_v52 = vpop.f32.mrf.mxu2 }
 0x2a6   :  { %v4035_v21 = vadd.f32 %v1855_v23, %v1767_v35  ;;  %v1591_v38 = vadd.f32 %v1590_v52, %v3778_v8  ;;  %1805 = vmatmul.bf16.gmra.mxu0 %v3628_v56  ;;  %v3177_v35 = vld [vmem:[#allocation10 + $0x58] sm:$0xff] }
 0x2a7   :  { %1894 = vmatmul.bf16.gmra.mxu1 %v3631_v59 }
 0x2a8   :  { %v1679_v32 = vpop.f32.mrf.mxu3  ;;  %2404 = vmatpush.bf16.msrb.mxu1 %v3177_v35 }
 0x2a9   :  { %v1680_v28 = vadd.f32 %v1679_v32, %v1591_v38 }
 0x2aa   :  { %1632 = vmatmul.bf16.gmra.mxu2 %v3934_v44 }
 0x2ab   :  { %v2109_v48 = vmax.f32 %v1680_v28, 0.0  ;;  %v4042_v30 = vpop.f32.mrf.mxu0 }
 0x2ac   :  { %v4044_v12 = vpop.f32.mrf.mxu1 }
 0x2ad   :  { %1721 = vmatmul.bf16.gmra.mxu3 %v3937_v0  ;;  %v4046_v14 = vpack.c.bf16 %v2109_v48, %v2107_v26  ;;  %v1593_v7 = vpop.f32.mrf.mxu2  ;;  %v4429_v0 = vld [vmem:[#allocation25_spill] sm:$0xff]  ;;  %v4430_v26 = vld [vmem:[#allocation26_spill] sm:$0xff] }
 0x2ae   :  { %v1594_v8 = vadd.f32 %v1593_v7, %v3783_v49 }
 0x2b0   :  { %v1682_v17 = vpop.f32.mrf.mxu3 }
 0x2b1   :  { %v1683_v56 = vadd.f32 %v1682_v17, %v1594_v8  ;;  %v4431_v8 = vld [vmem:[#allocation27_spill] sm:$0xff]  ;;  %v4432_v17 = vld [vmem:[#allocation28_spill] sm:$0xff] }
 0x2b3   :  { %v1771_v59 = vpop.f32.mrf.mxu0  ;;  %v2111_v49 = vmax.f32 %v1683_v56, 0.0 }
 0x2b4   :  { %v1772_v43 = vadd.f32 %v1771_v59, %v3946_v58  ;;  %v1860_v23 = vpop.f32.mrf.mxu1 }
 0x2b5   :  { %v1595_v52 = vpop.f32.mrf.mxu2 }
 0x2b6   :  { %v4050_v38 = vadd.f32 %v1860_v23, %v1772_v43  ;;  %v1596_v32 = vadd.f32 %v1595_v52, %v3796_v45  ;;  %1810 = vmatmul.bf16.gmra.mxu0 %v4429_v0 }
 0x2b7   :  { %1899 = vmatmul.bf16.gmra.mxu1 %v4430_v26 }
 0x2b8   :  { %4428 = vst [vmem:[#allocation33_spill] sm:$0xff] %v4050_v38  ;;  %v1684_v28 = vpop.f32.mrf.mxu3 }
 0x2b9   :  { %v1685_v48 = vadd.f32 %v1684_v28, %v1596_v32 }
 0x2ba   :  { %1913 = vmatmul.bf16.vlgmr.msrb.gmra.mxu2 %v4431_v8 }
 0x2bb   :  { %v2113_v7 = vmax.f32 %v1685_v48, 0.0  ;;  %v4057_v59 = vpop.f32.mrf.mxu0 }
 0x2bc   :  { %v4059_v35 = vpop.f32.mrf.mxu1 }
 0x2bd   :  { %2002 = vmatmul.bf16.vlgmr.msrb.gmra.mxu3 %v4432_v17  ;;  %v4061_v43 = vpack.c.bf16 %v2113_v7, %v2111_v49  ;;  %v1598_v23 = vpop.f32.mrf.mxu2 }
 0x2be   :  { %v1599_v45 = vadd.f32 %v1598_v23, %v3801_v60  ;;  %v4434_v60 = vld [vmem:[#allocation29_spill] sm:$0xff] }
 0x2c0   :  { %v1687_v52 = vpop.f32.mrf.mxu3 }
 0x2c1   :  { %v1688_v0 = vadd.f32 %v1687_v52, %v1599_v45 }
 0x2c3   :  { %v1776_v38 = vpop.f32.mrf.mxu0  ;;  %v2115_v49 = vmax.f32 %v1688_v0, 0.0 }
 0x2c4   :  { %v1777_v32 = vadd.f32 %v1776_v38, %v3946_v58  ;;  %v1865_v56 = vpop.f32.mrf.mxu1 }
 0x2c5   :  { %v1600_v28 = vpop.f32.mrf.mxu2 }
 0x2c6   :  { %v4065_v26 = vadd.f32 %v1865_v56, %v1777_v32  ;;  %v1601_v48 = vadd.f32 %v1600_v28, %v3814_v1  ;;  %2319 = vmatmul.bf16.vlgmr.msrb.gmra.mxu0 %v3956_v20  ;;  %v4436_v32 = vld [vmem:[#allocation45_spill] sm:$0xff] }
 0x2c8   :  { %4433 = vst [vmem:[#allocation17_spill] sm:$0xff] %v4065_v26  ;;  %v1689_v8 = vpop.f32.mrf.mxu3  ;;  %v3176_v26 = vld [vmem:[#allocation10 + $0x50] sm:$0xff] }
 0x2c9   :  { %v1690_v17 = vadd.f32 %v1689_v8, %v1601_v48  ;;  %2405 = vmatpush.bf16.msrb.mxu1 %v3176_v26 }
 0x2ca   :  { %1918 = vmatmul.bf16.gmra.mxu2 %v3692_v54 }
 0x2cb   :  { %v2117_v7 = vmax.f32 %v1690_v17, 0.0  ;;  %v4071_v23 = vpop.f32.mrf.mxu0 }
 0x2cc   :  { %v4073_v45 = vpop.f32.mrf.mxu1 }
 0x2cd   :  { %2007 = vmatmul.bf16.gmra.mxu3 %v4434_v60  ;;  %4435 = vst [vmem:[#allocation18_spill] sm:$0xff] %v4073_v45  ;;  %v4075_v38 = vpack.c.bf16 %v2117_v7, %v2115_v49  ;;  %v1603_v52 = vpop.f32.mrf.mxu2 }
 0x2ce   :  { %v1604_v56 = vadd.f32 %v1603_v52, %v4436_v32  ;;  %v4437_v52 = vld [vmem:[#allocation31_spill] sm:$0xff]  ;;  %v4438_v32 = vld [vmem:[#allocation32_spill] sm:$0xff] }
 0x2d0   :  { %v1692_v1 = vpop.f32.mrf.mxu3 }
 0x2d1   :  { %v1693_v28 = vadd.f32 %v1692_v1, %v1604_v56 }
 0x2d3   :  { %v1781_v20 = vpop.f32.mrf.mxu0  ;;  %v2119_v7 = vmax.f32 %v1693_v28, 0.0 }
 0x2d4   :  { %v1782_v0 = vadd.f32 %v1781_v20, %v3946_v58  ;;  %v1870_v48 = vpop.f32.mrf.mxu1 }
 0x2d5   :  { %v1605_v54 = vpop.f32.mrf.mxu2 }
 0x2d6   :  { %v4079_v8 = vadd.f32 %v1870_v48, %v1782_v0  ;;  %v1606_v17 = vadd.f32 %v1605_v54, %v3832_v63  ;;  %2324 = vmatmul.bf16.gmra.mxu0 %v3971_v11 }
 0x2d8   :  { %v1694_v60 = vpop.f32.mrf.mxu3 }
 0x2d9   :  { %v1695_v49 = vadd.f32 %v1694_v60, %v1606_v17 }
 0x2da   :  { %1923 = vmatmul.bf16.gmra.mxu2 %v4437_v52 }
 0x2db   :  { %v2121_v45 = vmax.f32 %v1695_v49, 0.0  ;;  %v4085_v56 = vpop.f32.mrf.mxu0 }
 0x2dc   :  { %v4087_v1 = vpop.f32.mrf.mxu1 }
 0x2dd   :  { %2012 = vmatmul.bf16.gmra.mxu3 %v4438_v32  ;;  %v4089_v26 = vpack.c.bf16 %v2121_v45, %v2119_v7  ;;  %v1608_v20 = vpop.f32.mrf.mxu2 }
 0x2de   :  { %v1609_v0 = vadd.f32 %v1608_v20, %v3837_v50  ;;  %v4440_v50 = vld [vmem:[#allocation35_spill] sm:$0xff] }
 0x2e0   :  { %v1697_v63 = vpop.f32.mrf.mxu3 }
 0x2e1   :  { %v1698_v48 = vadd.f32 %v1697_v63, %v1609_v0 }
 0x2e3   :  { %v1786_v54 = vpop.f32.mrf.mxu0  ;;  %v2123_v45 = vmax.f32 %v1698_v48, 0.0 }
 0x2e4   :  { %v1787_v11 = vadd.f32 %v1786_v54, %v3946_v58  ;;  %v1875_v28 = vpop.f32.mrf.mxu1 }
 0x2e5   :  { %v1610_v17 = vpop.f32.mrf.mxu2 }
 0x2e6   :  { %v4093_v60 = vadd.f32 %v1875_v28, %v1787_v11  ;;  %v1611_v49 = vadd.f32 %v1610_v17, %v3850_v10  ;;  %2329 = vmatmul.bf16.gmra.mxu0 %v3985_v47  ;;  %v4442_v11 = vld [vmem:[#allocation48_spill] sm:$0xff] }
 0x2e8   :  { %4439 = vst [vmem:[#allocation34_spill] sm:$0xff] %v4093_v60  ;;  %v1699_v52 = vpop.f32.mrf.mxu3  ;;  %v3175_v60 = vld [vmem:[#allocation10 + $0x48] sm:$0xff] }
 0x2e9   :  { %v1700_v32 = vadd.f32 %v1699_v52, %v1611_v49  ;;  %2406 = vmatpush.bf16.msrb.mxu1 %v3175_v60 }
 0x2ea   :  { %1928 = vmatmul.bf16.gmra.mxu2 %v3725_v40 }
 0x2eb   :  { %v2125_v7 = vmax.f32 %v1700_v32, 0.0  ;;  %v4099_v20 = vpop.f32.mrf.mxu0 }
 0x2ec   :  { %v4101_v0 = vpop.f32.mrf.mxu1 }
 0x2ed   :  { %2017 = vmatmul.bf16.gmra.mxu3 %v4440_v50  ;;  %4441 = vst [vmem:[#allocation36_spill] sm:$0xff] %v4101_v0  ;;  %v4103_v63 = vpack.c.bf16 %v2125_v7, %v2123_v45  ;;  %v1613_v54 = vpop.f32.mrf.mxu2 }
 0x2ee   :  { %v1614_v28 = vadd.f32 %v1613_v54, %v4442_v11  ;;  %v4443_v54 = vld [vmem:[#allocation38_spill] sm:$0xff]  ;;  %v4444_v11 = vld [vmem:[#allocation39_spill] sm:$0xff] }
 0x2f0   :  { %v1702_v10 = vpop.f32.mrf.mxu3 }
 0x2f1   :  { %v1703_v17 = vadd.f32 %v1702_v10, %v1614_v28 }
 0x2f3   :  { %v1791_v47 = vpop.f32.mrf.mxu0  ;;  %v2127_v7 = vmax.f32 %v1703_v17, 0.0 }
 0x2f4   :  { %v1792_v48 = vadd.f32 %v1791_v47, %v3946_v58  ;;  %v1880_v49 = vpop.f32.mrf.mxu1 }
 0x2f5   :  { %v1615_v40 = vpop.f32.mrf.mxu2 }
 0x2f6   :  { %v4107_v52 = vadd.f32 %v1880_v49, %v1792_v48  ;;  %v1616_v32 = vadd.f32 %v1615_v40, %v3868_v61  ;;  %2334 = vmatmul.bf16.gmra.mxu0 %v3999_v16 }
 0x2f8   :  { %v1704_v50 = vpop.f32.mrf.mxu3 }
 0x2f9   :  { %v1705_v45 = vadd.f32 %v1704_v50, %v1616_v32 }
 0x2fa   :  { %1933 = vmatmul.bf16.gmra.mxu2 %v4443_v54 }
 0x2fb   :  { %v2129_v0 = vmax.f32 %v1705_v45, 0.0  ;;  %v4113_v28 = vpop.f32.mrf.mxu0 }
 0x2fc   :  { %v4115_v10 = vpop.f32.mrf.mxu1 }
 0x2fd   :  { %2022 = vmatmul.bf16.gmra.mxu3 %v4444_v11  ;;  %v4117_v60 = vpack.c.bf16 %v2129_v0, %v2127_v7  ;;  %v1618_v47 = vpop.f32.mrf.mxu2 }
 0x2fe   :  { %v1619_v48 = vadd.f32 %v1618_v47, %v3873_v3  ;;  %v4446_v3 = vld [vmem:[#allocation42_spill] sm:$0xff] }
 0x300   :  { %v1707_v61 = vpop.f32.mrf.mxu3 }
 0x301   :  { %v1708_v49 = vadd.f32 %v1707_v61, %v1619_v48 }
 0x303   :  { %v1796_v40 = vpop.f32.mrf.mxu0  ;;  %v2131_v0 = vmax.f32 %v1708_v49, 0.0 }
 0x304   :  { %v1797_v16 = vadd.f32 %v1796_v40, %v3946_v58  ;;  %v1885_v17 = vpop.f32.mrf.mxu1 }
 0x305   :  { %v1620_v32 = vpop.f32.mrf.mxu2 }
 0x306   :  { %v4121_v50 = vadd.f32 %v1885_v17, %v1797_v16  ;;  %v1621_v45 = vadd.f32 %v1620_v32, %v3886_v25  ;;  %2339 = vmatmul.bf16.gmra.mxu0 %v4016_v18  ;;  %v4448_v16 = vld [vmem:[#allocation53_spill] sm:$0xff] }
 0x308   :  { %4445 = vst [vmem:[#allocation19_spill] sm:$0xff] %v4121_v50  ;;  %v1709_v54 = vpop.f32.mrf.mxu3  ;;  %v3174_v50 = vld [vmem:[#allocation10 + $0x40] sm:$0xff] }
 0x309   :  { %v1710_v11 = vadd.f32 %v1709_v54, %v1621_v45  ;;  %2407 = vmatpush.bf16.msrb.mxu1 %v3174_v50 }
 0x30a   :  { %1938 = vmatmul.bf16.gmra.mxu2 %v3757_v39 }
 0x30b   :  { %v2133_v7 = vmax.f32 %v1710_v11, 0.0  ;;  %v4127_v47 = vpop.f32.mrf.mxu0 }
 0x30c   :  { %v4129_v48 = vpop.f32.mrf.mxu1 }
 0x30d   :  { %2027 = vmatmul.bf16.gmra.mxu3 %v4446_v3  ;;  %4447 = vst [vmem:[#allocation20_spill] sm:$0xff] %v4129_v48  ;;  %v4131_v61 = vpack.c.bf16 %v2133_v7, %v2131_v0  ;;  %v1623_v40 = vpop.f32.mrf.mxu2 }
 0x30e   :  { %v1624_v17 = vadd.f32 %v1623_v40, %v4448_v16  ;;  %v4449_v40 = vld [vmem:[#allocation43_spill] sm:$0xff]  ;;  %v4450_v16 = vld [vmem:[#allocation44_spill] sm:$0xff] }
 0x310   :  { %v1712_v25 = vpop.f32.mrf.mxu3 }
 0x311   :  { %v1713_v32 = vadd.f32 %v1712_v25, %v1624_v17 }
 0x313   :  { %v1801_v18 = vpop.f32.mrf.mxu0  ;;  %v2135_v7 = vmax.f32 %v1713_v32, 0.0 }
 0x314   :  { %v1802_v49 = vadd.f32 %v1801_v18, %v3946_v58  ;;  %v1890_v45 = vpop.f32.mrf.mxu1 }
 0x315   :  { %v1625_v39 = vpop.f32.mrf.mxu2 }
 0x316   :  { %v4135_v54 = vadd.f32 %v1890_v45, %v1802_v49  ;;  %v1626_v11 = vadd.f32 %v1625_v39, %v3904_v22  ;;  %2344 = vmatmul.bf16.gmra.mxu0 %v4031_v6 }
 0x318   :  { %v1714_v3 = vpop.f32.mrf.mxu3 }
 0x319   :  { %v1715_v0 = vadd.f32 %v1714_v3, %v1626_v11 }
 0x31a   :  { %1943 = vmatmul.bf16.gmra.mxu2 %v4449_v40 }
 0x31b   :  { %v2137_v48 = vmax.f32 %v1715_v0, 0.0  ;;  %v4141_v17 = vpop.f32.mrf.mxu0 }
 0x31c   :  { %v4143_v25 = vpop.f32.mrf.mxu1 }
 0x31d   :  { %2032 = vmatmul.bf16.gmra.mxu3 %v4450_v16  ;;  %v4145_v50 = vpack.c.bf16 %v2137_v48, %v2135_v7  ;;  %v1628_v18 = vpop.f32.mrf.mxu2 }
 0x31e   :  { %v1629_v49 = vadd.f32 %v1628_v18, %v3909_v5 }
 0x320   :  { %v1717_v22 = vpop.f32.mrf.mxu3 }
 0x321   :  { %v1718_v45 = vadd.f32 %v1717_v22, %v1629_v49 }
 0x323   :  { %v1806_v39 = vpop.f32.mrf.mxu0  ;;  %v2139_v48 = vmax.f32 %v1718_v45, 0.0 }
 0x324   :  { %v1807_v6 = vadd.f32 %v1806_v39, %v3946_v58  ;;  %v1895_v32 = vpop.f32.mrf.mxu1 }
 0x325   :  { %v1630_v11 = vpop.f32.mrf.mxu2 }
 0x326   :  { %v4149_v3 = vadd.f32 %v1895_v32, %v1807_v6  ;;  %v1631_v0 = vadd.f32 %v1630_v11, %v3922_v55  ;;  %2349 = vmatmul.bf16.gmra.mxu0 %v4046_v14 }
 0x328   :  { %v1719_v40 = vpop.f32.mrf.mxu3 }
 0x329   :  { %v1720_v16 = vadd.f32 %v1719_v40, %v1631_v0 }
 0x32a   :  { %1948 = vmatmul.bf16.gmra.mxu2 %v3790_v36 }
 0x32b   :  { %v2141_v7 = vmax.f32 %v1720_v16, 0.0  ;;  %v4155_v5 = vpop.f32.mrf.mxu0 }
 0x32c   :  { %v4157_v18 = vpop.f32.mrf.mxu1 }
 0x32d   :  { %2037 = vmatmul.bf16.gmra.mxu3 %v3793_v24  ;;  %v4159_v49 = vpack.c.bf16 %v2141_v7, %v2139_v48  ;;  %v1633_v22 = vpop.f32.mrf.mxu2 }
 0x32e   :  { %v1634_v39 = vadd.f32 %v1633_v22, %v3927_v37 }
 0x330   :  { %v1722_v55 = vpop.f32.mrf.mxu3 }
 0x331   :  { %v1723_v6 = vadd.f32 %v1722_v55, %v1634_v39 }
 0x333   :  { %v1811_v32 = vpop.f32.mrf.mxu0  ;;  %v2143_v16 = vmax.f32 %v1723_v6, 0.0 }
 0x334   :  { %v1812_v14 = vadd.f32 %v1811_v32, %v3946_v58  ;;  %v1900_v45 = vpop.f32.mrf.mxu1 }
 0x335   :  { %v1635_v11 = vpop.f32.mrf.mxu2 }
 0x336   :  { %v4163_v0 = vadd.f32 %v1900_v45, %v1812_v14  ;;  %v1636_v36 = vadd.f32 %v1635_v11, %v3940_v31  ;;  %2354 = vmatmul.bf16.gmra.mxu0 %v4061_v43 }
 0x338   :  { %v1724_v24 = vpop.f32.mrf.mxu3 }
 0x339   :  { %v1725_v40 = vadd.f32 %v1724_v24, %v1636_v36  ;;  %v4451_v36 = vld [vmem:[#allocation57_spill] sm:$0xff] }
 0x33a   :  { %1953 = vmatmul.bf16.gmra.mxu2 %v3808_v41 }
 0x33b   :  { %v2145_v48 = vmax.f32 %v1725_v40, 0.0 }
 0x33d   :  { %2042 = vmatmul.bf16.gmra.mxu3 %v3811_v15  ;;  %v4169_v37 = vpack.c.bf16 %v2145_v48, %v2143_v16  ;;  %v1914_v7 = vpop.f32.mrf.mxu2 }
 0x33e   :  { %v1915_v39 = vadd.f32 %v1914_v7, %v3949_v33 }
 0x340   :  { %v2003_v22 = vpop.f32.mrf.mxu3 }
 0x341   :  { %v2004_v32 = vadd.f32 %v2003_v22, %v1915_v39  ;;  %v4452_v22 = vld [vmem:[#allocation46_spill] sm:$0xff] }
 0x343   :  { %v2084_v6 = vmax.f32 %v2004_v32, 0.0 }
 0x345   :  { %v1916_v55 = vpop.f32.mrf.mxu2 }
 0x346   :  { %v1917_v31 = vadd.f32 %v1916_v55, %v3959_v2  ;;  %2359 = vmatmul.bf16.gmra.mxu0 %v4075_v38 }
 0x348   :  { %v2005_v14 = vpop.f32.mrf.mxu3 }
 0x349   :  { %v2006_v43 = vadd.f32 %v2005_v14, %v1917_v31  ;;  %v4182_v14 = vpop.f32.mrf.mxu0 }
 0x34a   :  { %1958 = vmatmul.bf16.gmra.mxu2 %v3826_v46  ;;  %v4453_v46 = vld [vmem:[#allocation47_spill] sm:$0xff] }
 0x34b   :  { %v2086_v45 = vmax.f32 %v2006_v43, 0.0  ;;  %v4454_v43 = vld [vmem:[#allocation16_spill] sm:$0xff] }
 0x34d   :  { %2047 = vmatmul.bf16.gmra.mxu3 %v3829_v4  ;;  %v2148_v41 = vpack.c.bf16 %v2086_v45, %v2084_v6  ;;  %v1919_v15 = vpop.f32.mrf.mxu2 }
 0x34e   :  { %v1920_v33 = vadd.f32 %v1919_v15, %v4451_v36  ;;  %v4456_v36 = vld [vmem:[#allocation50_spill] sm:$0xff] }
 0x34f   :  { %2408 = vmatmul.bf16.vlgmr.msrb.gmra.mxu1 %v2148_v41 }
 0x350   :  { %v2008_v11 = vpop.f32.mrf.mxu3 }
 0x351   :  { %v2009_v40 = vadd.f32 %v2008_v11, %v1920_v33  ;;  %v4455_v11 = vld [vmem:[#allocation49_spill] sm:$0xff] }
 0x353   :  { %v2088_v48 = vmax.f32 %v2009_v40, 0.0 }
 0x355   :  { %v1921_v24 = vpop.f32.mrf.mxu2 }
 0x356   :  { %v1922_v2 = vadd.f32 %v1921_v24, %v3973_v62  ;;  %2364 = vmatmul.bf16.gmra.mxu0 %v4089_v26 }
 0x358   :  { %v2010_v16 = vpop.f32.mrf.mxu3 }
 0x359   :  { %v2011_v38 = vadd.f32 %v2010_v16, %v1922_v2  ;;  %v4457_v2 = vld [vmem:[#allocation30_spill] sm:$0xff] }
 0x35a   :  { %1963 = vmatmul.bf16.gmra.mxu2 %v4452_v22 }
 0x35b   :  { %v2090_v7 = vmax.f32 %v2011_v38, 0.0 }
 0x35d   :  { %2052 = vmatmul.bf16.gmra.mxu3 %v4453_v46  ;;  %v2150_v4 = vpack.c.bf16 %v2090_v7, %v2088_v48  ;;  %v1924_v39 = vpop.f32.mrf.mxu2 }
 0x35e   :  { %v1925_v32 = vadd.f32 %v1924_v39, %v3977_v27  ;;  %v4188_v27 = vpop.f32.mrf.mxu0 }
 0x35f   :  { %2413 = vmatmul.bf16.gmra.mxu1 %v2150_v4 }
 0x360   :  { %v2013_v55 = vpop.f32.mrf.mxu3 }
 0x361   :  { %v2014_v62 = vadd.f32 %v2013_v55, %v1925_v32  ;;  %v4458_v55 = vld [vmem:[#allocation51_spill] sm:$0xff]  ;;  %v4459_v32 = vld [vmem:[#allocation52_spill] sm:$0xff] }
 0x363   :  { %v2092_v41 = vmax.f32 %v2014_v62, 0.0 }
 0x365   :  { %v1926_v31 = vpop.f32.mrf.mxu2 }
 0x366   :  { %v1927_v6 = vadd.f32 %v1926_v31, %v4454_v43  ;;  %2369 = vmatmul.bf16.gmra.mxu0 %v4103_v63  ;;  %v4193_v46 = vpop.f32.mrf.mxu0 }
 0x368   :  { %v2015_v26 = vpop.f32.mrf.mxu3 }
 0x369   :  { %v2016_v45 = vadd.f32 %v2015_v26, %v1927_v6  ;;  %v1759_v6 = vadd.f32 %v4012_v57, %v3946_v58 }
 0x36a   :  { %1968 = vmatmul.bf16.gmra.mxu2 %v4455_v11 }
 0x36b   :  { %v2094_v15 = vmax.f32 %v2016_v45, 0.0 }
 0x36d   :  { %2057 = vmatmul.bf16.gmra.mxu3 %v4456_v36  ;;  %v2152_v33 = vpack.c.bf16 %v2094_v15, %v2092_v41  ;;  %v1929_v24 = vpop.f32.mrf.mxu2 }
 0x36e   :  { %v1930_v16 = vadd.f32 %v1929_v24, %v4457_v2  ;;  %v4201_v26 = vpop.f32.mrf.mxu0 }
 0x36f   :  { %2418 = vmatmul.bf16.gmra.mxu1 %v2152_v33 }
 0x370   :  { %v2018_v40 = vpop.f32.mrf.mxu3 }
 0x371   :  { %v2019_v48 = vadd.f32 %v2018_v40, %v1930_v16  ;;  %v4460_v40 = vld [vmem:[#allocation54_spill] sm:$0xff]  ;;  %v1764_v16 = vadd.f32 %v4027_v34, %v3946_v58 }
 0x373   :  { %v2096_v4 = vmax.f32 %v2019_v48, 0.0 }
 0x375   :  { %v1931_v38 = vpop.f32.mrf.mxu2 }
 0x376   :  { %v1932_v7 = vadd.f32 %v1931_v38, %v4001_v19  ;;  %2374 = vmatmul.bf16.gmra.mxu0 %v4117_v60  ;;  %v1848_v60 = vadd.f32 %v4014_v53, %v1759_v6 }
 0x378   :  { %v2020_v63 = vpop.f32.mrf.mxu3 }
 0x379   :  { %v2021_v22 = vadd.f32 %v2020_v63, %v1932_v7 }
 0x37a   :  { %1973 = vmatmul.bf16.gmra.mxu2 %v4458_v55 }
 0x37b   :  { %v2098_v39 = vmax.f32 %v2021_v22, 0.0 }
 0x37d   :  { %2062 = vmatmul.bf16.gmra.mxu3 %v4459_v32  ;;  %v2154_v31 = vpack.c.bf16 %v2098_v39, %v2096_v4  ;;  %v1934_v62 = vpop.f32.mrf.mxu2  ;;  %v4461_v32 = vld [vmem:[#allocation55_spill] sm:$0xff] }
 0x37e   :  { %v1935_v19 = vadd.f32 %v1934_v62, %v4005_v42  ;;  %v4206_v42 = vpop.f32.mrf.mxu0 }
 0x37f   :  { %2423 = vmatmul.bf16.gmra.mxu1 %v2154_v31 }
 0x380   :  { %v2023_v43 = vpop.f32.mrf.mxu3 }
 0x381   :  { %v2024_v41 = vadd.f32 %v2023_v43, %v1935_v19 }
 0x383   :  { %v2100_v33 = vmax.f32 %v2024_v41, 0.0 }
 0x385   :  { %v1936_v45 = vpop.f32.mrf.mxu2 }
 0x386   :  { %v1937_v15 = vadd.f32 %v1936_v45, %v1848_v60  ;;  %2379 = vmatmul.bf16.gmra.mxu0 %v4131_v61  ;;  %v1853_v61 = vadd.f32 %v4029_v9, %v1764_v16  ;;  %v1769_v9 = vadd.f32 %v4042_v30, %v3946_v58 }
 0x388   :  { %v2025_v11 = vpop.f32.mrf.mxu3  ;;  %v1858_v43 = vadd.f32 %v4044_v12, %v1769_v9  ;;  %v1774_v12 = vadd.f32 %v4057_v59, %v3946_v58  ;;  %v1779_v59 = vadd.f32 %v4071_v23, %v3946_v58 }
 0x389   :  { %v2026_v36 = vadd.f32 %v2025_v11, %v1937_v15  ;;  %v4462_v11 = vld [vmem:[#allocation56_spill] sm:$0xff] }
 0x38a   :  { %1978 = vmatmul.bf16.gmra.mxu2 %v3898_v13  ;;  %v4213_v13 = vpop.f32.mrf.mxu0 }
 0x38b   :  { %v2102_v24 = vmax.f32 %v2026_v36, 0.0 }
 0x38d   :  { %2067 = vmatmul.bf16.gmra.mxu3 %v4460_v40  ;;  %v2156_v57 = vpack.c.bf16 %v2102_v24, %v2100_v33  ;;  %v1939_v2 = vpop.f32.mrf.mxu2  ;;  %v4463_v24 = vld [vmem:[#allocation33_spill] sm:$0xff] }
 0x38e   :  { %v1940_v38 = vadd.f32 %v1939_v2, %v4020_v29 }
 0x38f   :  { %2428 = vmatmul.bf16.gmra.mxu1 %v2156_v57 }
 0x390   :  { %v2028_v53 = vpop.f32.mrf.mxu3 }
 0x391   :  { %v2029_v7 = vadd.f32 %v2028_v53, %v1940_v38 }
 0x392   :  { %v4219_v62 = vpop.f32.mrf.mxu0 }
 0x393   :  { %v2104_v39 = vmax.f32 %v2029_v7, 0.0 }
 0x395   :  { %v1941_v48 = vpop.f32.mrf.mxu2 }
 0x396   :  { %v1942_v63 = vadd.f32 %v1941_v48, %v1853_v61  ;;  %2384 = vmatmul.bf16.gmra.mxu0 %v4145_v50 }
 0x398   :  { %v2030_v22 = vpop.f32.mrf.mxu3 }
 0x399   :  { %v2031_v4 = vadd.f32 %v2030_v22, %v1942_v63 }
 0x39a   :  { %1983 = vmatmul.bf16.gmra.mxu2 %v3916_v51  ;;  %v4226_v30 = vpop.f32.mrf.mxu0 }
 0x39b   :  { %v2106_v55 = vmax.f32 %v2031_v4, 0.0  ;;  %v4464_v4 = vld [vmem:[#allocation17_spill] sm:$0xff] }
 0x39d   :  { %2072 = vmatmul.bf16.gmra.mxu3 %v4461_v32  ;;  %v2158_v34 = vpack.c.bf16 %v2106_v55, %v2104_v39  ;;  %v1944_v31 = vpop.f32.mrf.mxu2  ;;  %v4238_v39 = vpop.f32.mrf.mxu1  ;;  %v4465_v55 = vld [vmem:[#allocation18_spill] sm:$0xff] }
 0x39e   :  { %v1945_v50 = vadd.f32 %v1944_v31, %v4035_v21  ;;  %v1868_v32 = vadd.f32 %v4465_v55, %v1779_v59 }
 0x39f   :  { %2433 = vmatmul.bf16.gmra.mxu1 %v2158_v34 }
 0x3a0   :  { %v2033_v29 = vpop.f32.mrf.mxu3 }
 0x3a1   :  { %v2034_v19 = vadd.f32 %v2033_v29, %v1945_v50 }
 0x3a2   :  { %v4232_v2 = vpop.f32.mrf.mxu0 }
 0x3a3   :  { %v2108_v41 = vmax.f32 %v2034_v19, 0.0 }
 0x3a5   :  { %v1946_v6 = vpop.f32.mrf.mxu2 }
 0x3a6   :  { %v1947_v60 = vadd.f32 %v1946_v6, %v1858_v43  ;;  %2389 = vmatmul.bf16.gmra.mxu0 %v4159_v49  ;;  %v1863_v49 = vadd.f32 %v4059_v35, %v1774_v12 }
 0x3a8   :  { %v2035_v45 = vpop.f32.mrf.mxu3 }
 0x3a9   :  { %v2036_v51 = vadd.f32 %v2035_v45, %v1947_v60 }
 0x3aa   :  { %1988 = vmatmul.bf16.gmra.mxu2 %v3934_v44 }
 0x3ab   :  { %v2110_v15 = vmax.f32 %v2036_v51, 0.0 }
 0x3ad   :  { %2077 = vmatmul.bf16.gmra.mxu3 %v4462_v11  ;;  %v2160_v36 = vpack.c.bf16 %v2110_v15, %v2108_v41  ;;  %v1949_v33 = vpop.f32.mrf.mxu2  ;;  %v1784_v15 = vadd.f32 %v4085_v56, %v3946_v58 }
 0x3ae   :  { %v1950_v40 = vadd.f32 %v1949_v33, %v4463_v24 }
 0x3af   :  { %2438 = vmatmul.bf16.gmra.mxu1 %v2160_v36 }
 0x3b0   :  { %v2038_v21 = vpop.f32.mrf.mxu3 }
 0x3b1   :  { %v2039_v53 = vadd.f32 %v2038_v21, %v1950_v40 }
 0x3b3   :  { %v2112_v61 = vmax.f32 %v2039_v53, 0.0  ;;  %v4254_v53 = vpop.f32.mrf.mxu0 }
 0x3b5   :  { %v1951_v57 = vpop.f32.mrf.mxu2 }
 0x3b6   :  { %v1952_v44 = vadd.f32 %v1951_v57, %v1863_v49  ;;  %2394 = vmatmul.bf16.gmra.mxu0 %v4169_v37  ;;  %v4244_v37 = vld [vmem:[%s4335_s6] ss:$0 sm:$0xff]  ;;  %s3380_s6 = smov [#allocation11]  }
 0x3b7   :  { %v2321_v43 = vadd.f32 %v4244_v37, %v4188_v27  ;;  %v2323_v11 = vadd.f32 %v4244_v37, %v4193_v46  ;;  %v1873_v27 = vadd.f32 %v4087_v1, %v1784_v15  ;;  %v2326_v56 = vadd.f32 %v4244_v37, %v4201_v26  ;;  %s2525_s9 = sshll.u32 %s3380_s6, 4  ;;  %s2526_s9 = int_to_ptr.vmem [resolvable:$true] %s2525_s9 }
 0x3b8   :  { %v2040_v16 = vpop.f32.mrf.mxu3 }
 0x3b9   :  { %v2041_v38 = vadd.f32 %v2040_v16, %v1952_v44 }
 0x3bb   :  { %v2114_v48 = vmax.f32 %v2041_v38, 0.0  ;;  %v4263_v59 = vpop.f32.mrf.mxu0 }
 0x3bd   :  { %v2162_v7 = vpack.c.bf16 %v2114_v48, %v2112_v61  ;;  %v1954_v63 = vpop.f32.mrf.mxu2  ;;  %v1789_v48 = vadd.f32 %v4099_v20, %v3946_v58  ;;  %v2331_v20 = vadd.f32 %v4244_v37, %v4213_v13 }
 0x3be   :  { %v1955_v35 = vadd.f32 %v1954_v63, %v4464_v4  ;;  %v4466_v63 = vld [vmem:[#allocation34_spill] sm:$0xff]  ;;  %v4467_v4 = vld [vmem:[#allocation36_spill] sm:$0xff] }
 0x3bf   :  { %2443 = vmatmul.bf16.gmra.mxu1 %v2162_v7  ;;  %v2328_v7 = vadd.f32 %v4244_v37, %v4206_v42 }
 0x3c0   :  { %v2043_v22 = vpop.f32.mrf.mxu3 }
 0x3c1   :  { %v2044_v31 = vadd.f32 %v2043_v22, %v1955_v35  ;;  %v1878_v35 = vadd.f32 %v4467_v4, %v1789_v48 }
 0x3c3   :  { %v2116_v23 = vmax.f32 %v2044_v31, 0.0 }
 0x3c5   :  { %v1956_v34 = vpop.f32.mrf.mxu2 }
 0x3c6   :  { %v1957_v29 = vadd.f32 %v1956_v34, %v1868_v32 }
 0x3c8   :  { %v2045_v9 = vpop.f32.mrf.mxu3 }
 0x3c9   :  { %v2046_v50 = vadd.f32 %v2045_v9, %v1957_v29 }
 0x3cb   :  { %v2118_v6 = vmax.f32 %v2046_v50, 0.0 }
 0x3cc   :  { %v2409_v19 = vpop.f32.mrf.mxu1 }
 0x3cd   :  { %v2164_v60 = vpack.c.bf16 %v2118_v6, %v2116_v23  ;;  %v2410_v45 = vadd.f32 %v2409_v19, %v2321_v43  ;;  %v1959_v51 = vpop.f32.mrf.mxu2  ;;  %v4268_v19 = vpop.f32.mrf.mxu0 }
 0x3ce   :  { %v1960_v36 = vadd.f32 %v1959_v51, %v4079_v8  ;;  %v1794_v51 = vadd.f32 %v4113_v28, %v3946_v58 }
 0x3cf   :  { %2489 = vst [vmem:[#allocation11] sm:$0xff] %v2410_v45  ;;  %2448 = vmatmul.bf16.gmra.mxu1 %v2164_v60 }
 0x3d0   :  { %v2048_v41 = vpop.f32.mrf.mxu3 }
 0x3d1   :  { %v2049_v24 = vadd.f32 %v2048_v41, %v1960_v36  ;;  %v2333_v41 = vadd.f32 %v4244_v37, %v4219_v62 }
 0x3d3   :  { %v2120_v44 = vmax.f32 %v2049_v24, 0.0 }
 0x3d4   :  { %v2411_v33 = vpop.f32.mrf.mxu1 }
 0x3d5   :  { %v2412_v21 = vadd.f32 %v2411_v33, %v2323_v11  ;;  %v1961_v12 = vpop.f32.mrf.mxu2  ;;  %v1883_v11 = vadd.f32 %v4115_v10, %v1794_v51  ;;  %v2347_v24 = vpop.f32.mrf.mxu0  ;;  %v1799_v10 = vadd.f32 %v4127_v47, %v3946_v58 }
 0x3d6   :  { %v1962_v40 = vadd.f32 %v1961_v12, %v1873_v27 }
 0x3d7   :  { %2490 = vst [vmem:[#allocation11 + $0x8] sm:$0xff] %v2412_v21 }
 0x3d8   :  { %v2050_v49 = vpop.f32.mrf.mxu3 }
 0x3d9   :  { %v2051_v57 = vadd.f32 %v2050_v49, %v1962_v40  ;;  %v2336_v49 = vadd.f32 %v4244_v37, %v4226_v30  ;;  %v4469_v30 = vld [vmem:[#allocation20_spill] sm:$0xff] }
 0x3da   :  { %v1888_v48 = vadd.f32 %v4469_v30, %v1799_v10 }
 0x3db   :  { %v2122_v16 = vmax.f32 %v2051_v57, 0.0 }
 0x3dc   :  { %v2414_v46 = vpop.f32.mrf.mxu1 }
 0x3dd   :  { %v2166_v38 = vpack.c.bf16 %v2122_v16, %v2120_v44  ;;  %v2415_v8 = vadd.f32 %v2414_v46, %v2326_v56  ;;  %v1964_v61 = vpop.f32.mrf.mxu2  ;;  %v2350_v46 = vpop.f32.mrf.mxu0 }
 0x3de   :  { %v1965_v22 = vadd.f32 %v1964_v61, %v4466_v63 }
 0x3df   :  { %2491 = vst [vmem:[#allocation11 + $0x10] sm:$0xff] %v2415_v8  ;;  %2453 = vmatmul.bf16.gmra.mxu1 %v2166_v38  ;;  %v2338_v38 = vadd.f32 %v4244_v37, %v4232_v2  ;;  %v4468_v8 = vld [vmem:[#allocation19_spill] sm:$0xff] }
 0x3e0   :  { %v2053_v1 = vpop.f32.mrf.mxu3 }
 0x3e1   :  { %v2054_v34 = vadd.f32 %v2053_v1, %v1965_v22 }
 0x3e3   :  { %v2124_v50 = vmax.f32 %v2054_v34, 0.0 }
 0x3e4   :  { %v2416_v26 = vpop.f32.mrf.mxu1 }
 0x3e5   :  { %v2417_v55 = vadd.f32 %v2416_v26, %v2328_v7  ;;  %v1966_v32 = vpop.f32.mrf.mxu2  ;;  %v2352_v34 = vpop.f32.mrf.mxu0 }
 0x3e6   :  { %v1967_v31 = vadd.f32 %v1966_v32, %v1878_v35 }
 0x3e7   :  { %2492 = vst [vmem:[#allocation11 + $0x18] sm:$0xff] %v2417_v55  ;;  %v2341_v55 = vadd.f32 %v4244_v37, %v4254_v53 }
 0x3e8   :  { %v2055_v29 = vpop.f32.mrf.mxu3 }
 0x3e9   :  { %v2056_v9 = vadd.f32 %v2055_v29, %v1967_v31 }
 0x3eb   :  { %v2126_v43 = vmax.f32 %v2056_v9, 0.0 }
 0x3ec   :  { %v2419_v42 = vpop.f32.mrf.mxu1 }
 0x3ed   :  { %v2168_v23 = vpack.c.bf16 %v2126_v43, %v2124_v50  ;;  %v2420_v6 = vadd.f32 %v2419_v42, %v2331_v20  ;;  %v1969_v60 = vpop.f32.mrf.mxu2  ;;  %v1804_v50 = vadd.f32 %v4141_v17, %v3946_v58  ;;  %v2343_v43 = vadd.f32 %v4244_v37, %v4263_v59 }
 0x3ee   :  { %v1970_v15 = vadd.f32 %v1969_v60, %v4107_v52  ;;  %v2355_v60 = vpop.f32.mrf.mxu0 }
 0x3ef   :  { %2493 = vst [vmem:[#allocation11 + $0x20] sm:$0xff] %v2420_v6  ;;  %2458 = vmatmul.bf16.gmra.mxu1 %v2168_v23  ;;  %v1893_v53 = vadd.f32 %v4143_v25, %v1804_v50 }
 0x3f0   :  { %v2058_v45 = vpop.f32.mrf.mxu3 }
 0x3f1   :  { %v2059_v27 = vadd.f32 %v2058_v45, %v1970_v15 }
 0x3f3   :  { %v2128_v28 = vmax.f32 %v2059_v27, 0.0 }
 0x3f4   :  { %v2421_v13 = vpop.f32.mrf.mxu1 }
 0x3f5   :  { %v2422_v36 = vadd.f32 %v2421_v13, %v2333_v41  ;;  %v1971_v33 = vpop.f32.mrf.mxu2 }
 0x3f6   :  { %v1972_v21 = vadd.f32 %v1971_v33, %v1883_v11  ;;  %v2346_v11 = vadd.f32 %v4244_v37, %v4268_v19  ;;  %v2357_v25 = vpop.f32.mrf.mxu0 }
 0x3f7   :  { %2494 = vst [vmem:[#allocation11 + $0x28] sm:$0xff] %v2422_v36 }
 0x3f8   :  { %v2060_v12 = vpop.f32.mrf.mxu3 }
 0x3f9   :  { %v2061_v40 = vadd.f32 %v2060_v12, %v1972_v21  ;;  %v1809_v12 = vadd.f32 %v4155_v5, %v3946_v58 }
 0x3fb   :  { %v2130_v57 = vmax.f32 %v2061_v40, 0.0  ;;  %v2348_v40 = vadd.f32 %v4244_v37, %v2347_v24  ;;  %v1898_v19 = vadd.f32 %v4157_v18, %v1809_v12  ;;  %v1814_v18 = vadd.f32 %v4182_v14, %v3946_v58 }
 0x3fc   :  { %v2424_v56 = vpop.f32.mrf.mxu1 }
 0x3fd   :  { %v2170_v62 = vpack.c.bf16 %v2130_v57, %v2128_v28  ;;  %v2425_v44 = vadd.f32 %v2424_v56, %v2336_v49  ;;  %v1974_v52 = vpop.f32.mrf.mxu2 }
 0x3fe   :  { %v1975_v61 = vadd.f32 %v1974_v52, %v4468_v8  ;;  %v2360_v10 = vpop.f32.mrf.mxu0 }
 0x3ff   :  { %2495 = vst [vmem:[#allocation11 + $0x30] sm:$0xff] %v2425_v44  ;;  %2463 = vmatmul.bf16.gmra.mxu1 %v2170_v62 }
 0x400   :  { %v2063_v16 = vpop.f32.mrf.mxu3 }
 0x401   :  { %v2064_v22 = vadd.f32 %v2063_v16, %v1975_v61 }
 0x403   :  { %v2132_v47 = vmax.f32 %v2064_v22, 0.0 }
 0x404   :  { %v2426_v1 = vpop.f32.mrf.mxu1 }
 0x405   :  { %v2427_v7 = vadd.f32 %v2426_v1, %v2338_v38  ;;  %v1976_v63 = vpop.f32.mrf.mxu2  ;;  %v2351_v38 = vadd.f32 %v4244_v37, %v2350_v46  ;;  %v1903_v46 = vadd.f32 %v4238_v39, %v1814_v18 }
 0x406   :  { %v1977_v26 = vadd.f32 %v1976_v63, %v1888_v48  ;;  %v2353_v48 = vadd.f32 %v4244_v37, %v2352_v34  ;;  %v2362_v63 = vpop.f32.mrf.mxu0 }
 0x407   :  { %2496 = vst [vmem:[#allocation11 + $0x38] sm:$0xff] %v2427_v7 }
 0x408   :  { %v2065_v4 = vpop.f32.mrf.mxu3 }
 0x409   :  { %v2066_v35 = vadd.f32 %v2065_v4, %v1977_v26 }
 0x40b   :  { %v2134_v32 = vmax.f32 %v2066_v35, 0.0 }
 0x40c   :  { %v2429_v31 = vpop.f32.mrf.mxu1 }
 0x40d   :  { %v2172_v2 = vpack.c.bf16 %v2134_v32, %v2132_v47  ;;  %v2430_v29 = vadd.f32 %v2429_v31, %v2341_v55  ;;  %v1979_v9 = vpop.f32.mrf.mxu2  ;;  %v2356_v31 = vadd.f32 %v4244_v37, %v2355_v60 }
 0x40e   :  { %v1980_v42 = vadd.f32 %v1979_v9, %v4135_v54  ;;  %v2365_v9 = vpop.f32.mrf.mxu0 }
 0x40f   :  { %2497 = vst [vmem:[#allocation11 + $0x40] sm:$0xff] %v2430_v29  ;;  %2468 = vmatmul.bf16.gmra.mxu1 %v2172_v2 }
 0x410   :  { %v2068_v20 = vpop.f32.mrf.mxu3 }
 0x411   :  { %v2069_v51 = vadd.f32 %v2068_v20, %v1980_v42 }
 0x413   :  { %v2136_v17 = vmax.f32 %v2069_v51, 0.0  ;;  %v2366_v51 = vadd.f32 %v4244_v37, %v2365_v9 }
 0x414   :  { %v2431_v23 = vpop.f32.mrf.mxu1 }
 0x415   :  { %v2432_v6 = vadd.f32 %v2431_v23, %v2343_v43  ;;  %v1981_v45 = vpop.f32.mrf.mxu2  ;;  %v2361_v43 = vadd.f32 %v4244_v37, %v2360_v10 }
 0x416   :  { %v1982_v41 = vadd.f32 %v1981_v45, %v1893_v53  ;;  %v2367_v50 = vpop.f32.mrf.mxu0 }
 0x417   :  { %2498 = vst [vmem:[#allocation11 + $0x48] sm:$0xff] %v2432_v6  ;;  %v2363_v6 = vadd.f32 %v4244_v37, %v2362_v63 }
 0x418   :  { %v2070_v15 = vpop.f32.mrf.mxu3 }
 0x419   :  { %v2071_v13 = vadd.f32 %v2070_v15, %v1982_v41 }
 0x41b   :  { %v2138_v36 = vmax.f32 %v2071_v13, 0.0 }
 0x41c   :  { %v2434_v33 = vpop.f32.mrf.mxu1 }
 0x41d   :  { %v2174_v59 = vpack.c.bf16 %v2138_v36, %v2136_v17  ;;  %v2435_v27 = vadd.f32 %v2434_v33, %v2346_v11  ;;  %v1984_v54 = vpop.f32.mrf.mxu2  ;;  %v2368_v11 = vadd.f32 %v4244_v37, %v2367_v50 }
 0x41e   :  { %v1985_v49 = vadd.f32 %v1984_v54, %v4149_v3  ;;  %v2370_v53 = vpop.f32.mrf.mxu0 }
 0x41f   :  { %2499 = vst [vmem:[#allocation11 + $0x50] sm:$0xff] %v2435_v27  ;;  %2473 = vmatmul.bf16.gmra.mxu1 %v2174_v59  ;;  %v2371_v59 = vadd.f32 %v4244_v37, %v2370_v53 }
 0x420   :  { %v2073_v21 = vpop.f32.mrf.mxu3 }
 0x421   :  { %v2074_v62 = vadd.f32 %v2073_v21, %v1985_v49 }
 0x423   :  { %v2140_v8 = vmax.f32 %v2074_v62, 0.0 }
 0x424   :  { %v2436_v28 = vpop.f32.mrf.mxu1 }
 0x425   :  { %v2437_v57 = vadd.f32 %v2436_v28, %v2348_v40  ;;  %v1986_v56 = vpop.f32.mrf.mxu2 }
 0x426   :  { %v1987_v44 = vadd.f32 %v1986_v56, %v1898_v19  ;;  %v2372_v41 = vpop.f32.mrf.mxu0 }
 0x427   :  { %2500 = vst [vmem:[#allocation11 + $0x58] sm:$0xff] %v2437_v57 }
 0x428   :  { %v2075_v52 = vpop.f32.mrf.mxu3 }
 0x429   :  { %v2076_v16 = vadd.f32 %v2075_v52, %v1987_v44 }
 0x42b   :  { %v2142_v61 = vmax.f32 %v2076_v16, 0.0 }
 0x42c   :  { %v2439_v5 = vpop.f32.mrf.mxu1 }
 0x42d   :  { %v2176_v1 = vpack.c.bf16 %v2142_v61, %v2140_v8  ;;  %v2440_v24 = vadd.f32 %v2439_v5, %v2351_v38  ;;  %v1989_v30 = vpop.f32.mrf.mxu2 }
 0x42e   :  { %v1990_v7 = vadd.f32 %v1989_v30, %v4163_v0  ;;  %v2358_v0 = vadd.f32 %v4244_v37, %v2357_v25  ;;  %v2375_v33 = vpop.f32.mrf.mxu0  ;;  %v2373_v25 = vadd.f32 %v4244_v37, %v2372_v41 }
 0x42f   :  { %2501 = vst [vmem:[#allocation11 + $0x60] sm:$0xff] %v2440_v24  ;;  %2478 = vmatmul.bf16.gmra.mxu1 %v2176_v1  ;;  %v2376_v28 = vadd.f32 %v4244_v37, %v2375_v33 }
 0x430   :  { %v2078_v3 = vpop.f32.mrf.mxu3 }
 0x431   :  { %v2079_v35 = vadd.f32 %v2078_v3, %v1990_v7 }
 0x433   :  { %v2144_v2 = vmax.f32 %v2079_v35, 0.0 }
 0x434   :  { %v2441_v22 = vpop.f32.mrf.mxu1 }
 0x435   :  { %v2442_v26 = vadd.f32 %v2441_v22, %v2353_v48  ;;  %v1991_v4 = vpop.f32.mrf.mxu2 }
 0x436   :  { %v1992_v55 = vadd.f32 %v1991_v4, %v1903_v46  ;;  %v2377_v21 = vpop.f32.mrf.mxu0 }
 0x437   :  { %2502 = vst [vmem:[#allocation11 + $0x68] sm:$0xff] %v2442_v26  ;;  %v2378_v56 = vadd.f32 %v4244_v37, %v2377_v21 }
 0x438   :  { %v2080_v47 = vpop.f32.mrf.mxu3 }
 0x439   :  { %v2081_v32 = vadd.f32 %v2080_v47, %v1992_v55 }
 0x43b   :  { %v2146_v29 = vmax.f32 %v2081_v32, 0.0 }
 0x43c   :  { %v2444_v58 = vpop.f32.mrf.mxu1 }
 0x43d   :  { %v2178_v14 = vpack.c.bf16 %v2146_v29, %v2144_v2  ;;  %v2445_v34 = vadd.f32 %v2444_v58, %v2356_v31 }
 0x43e   :  { %v2380_v49 = vpop.f32.mrf.mxu0 }
 0x43f   :  { %2503 = vst [vmem:[#allocation11 + $0x70] sm:$0xff] %v2445_v34  ;;  %2483 = vmatmul.bf16.gmra.mxu1 %v2178_v14  ;;  %v2381_v16 = vadd.f32 %v4244_v37, %v2380_v49 }
 0x444   :  { %v2446_v39 = vpop.f32.mrf.mxu1 }
 0x445   :  { %v2447_v20 = vadd.f32 %v2446_v39, %v2358_v0 }
 0x446   :  { %v2382_v62 = vpop.f32.mrf.mxu0 }
 0x447   :  { %2504 = vst [vmem:[#allocation11 + $0x78] sm:$0xff] %v2447_v20  ;;  %v2383_v61 = vadd.f32 %v4244_v37, %v2382_v62 }
 0x44c   :  { %v2449_v42 = vpop.f32.mrf.mxu1 }
 0x44d   :  { %v2450_v23 = vadd.f32 %v2449_v42, %v2361_v43 }
 0x44e   :  { %v2385_v8 = vpop.f32.mrf.mxu0 }
 0x44f   :  { %2505 = vst [vmem:[#allocation11 + $0x80] sm:$0xff] %v2450_v23  ;;  %v2386_v30 = vadd.f32 %v4244_v37, %v2385_v8 }
 0x454   :  { %v2451_v60 = vpop.f32.mrf.mxu1 }
 0x455   :  { %v2452_v45 = vadd.f32 %v2451_v60, %v2363_v6 }
 0x456   :  { %v2387_v24 = vpop.f32.mrf.mxu0 }
 0x457   :  { %2506 = vst [vmem:[#allocation11 + $0x88] sm:$0xff] %v2452_v45  ;;  %v2388_v7 = vadd.f32 %v4244_v37, %v2387_v24 }
 0x45c   :  { %v2454_v15 = vpop.f32.mrf.mxu1 }
 0x45d   :  { %v2455_v13 = vadd.f32 %v2454_v15, %v2366_v51 }
 0x45e   :  { %v2390_v48 = vpop.f32.mrf.mxu0 }
 0x45f   :  { %2507 = vst [vmem:[#allocation11 + $0x90] sm:$0xff] %v2455_v13  ;;  %v2391_v46 = vadd.f32 %v4244_v37, %v2390_v48 }
 0x464   :  { %v2456_v17 = vpop.f32.mrf.mxu1 }
 0x465   :  { %v2457_v36 = vadd.f32 %v2456_v17, %v2368_v11 }
 0x466   :  { %v2392_v26 = vpop.f32.mrf.mxu0 }
 0x467   :  { %2508 = vst [vmem:[#allocation11 + $0x98] sm:$0xff] %v2457_v36  ;;  %v2393_v55 = vadd.f32 %v4244_v37, %v2392_v26 }
 0x46c   :  { %v2459_v27 = vpop.f32.mrf.mxu1 }
 0x46d   :  { %v2460_v54 = vadd.f32 %v2459_v27, %v2371_v59 }
 0x46e   :  { %v2395_v31 = vpop.f32.mrf.mxu0 }
 0x46f   :  { %2509 = vst [vmem:[#allocation11 + $0xa0] sm:$0xff] %v2460_v54  ;;  %v2396_v2 = vadd.f32 %v4244_v37, %v2395_v31 }
 0x474   :  { %v2461_v12 = vpop.f32.mrf.mxu1 }
 0x475   :  { %v2462_v40 = vadd.f32 %v2461_v12, %v2373_v25 }
 0x476   :  { %v2397_v14 = vpop.f32.mrf.mxu0 }
 0x477   :  { %2510 = vst [vmem:[#allocation11 + $0xa8] sm:$0xff] %v2462_v40  ;;  %v2398_v34 = vadd.f32 %v4244_v37, %v2397_v14 }
 0x47c   :  { %v2464_v19 = vpop.f32.mrf.mxu1 }
 0x47d   :  { %v2465_v57 = vadd.f32 %v2464_v19, %v2376_v28 }
 0x47f   :  { %2511 = vst [vmem:[#allocation11 + $0xb0] sm:$0xff] %v2465_v57 }
 0x484   :  { %v2466_v44 = vpop.f32.mrf.mxu1 }
 0x485   :  { %v2467_v52 = vadd.f32 %v2466_v44, %v2378_v56 }
 0x487   :  { %2512 = vst [vmem:[#allocation11 + $0xb8] sm:$0xff] %v2467_v52 }
 0x48c   :  { %v2469_v10 = vpop.f32.mrf.mxu1 }
 0x48d   :  { %v2470_v38 = vadd.f32 %v2469_v10, %v2381_v16 }
 0x48f   :  { %2513 = vst [vmem:[#allocation11 + $0xc0] sm:$0xff] %v2470_v38 }
 0x494   :  { %v2471_v5 = vpop.f32.mrf.mxu1 }
 0x495   :  { %v2472_v1 = vadd.f32 %v2471_v5, %v2383_v61 }
 0x497   :  { %2514 = vst [vmem:[#allocation11 + $0xc8] sm:$0xff] %v2472_v1 }
 0x49c   :  { %v2474_v3 = vpop.f32.mrf.mxu1 }
 0x49d   :  { %v2475_v18 = vadd.f32 %v2474_v3, %v2386_v30 }
 0x49f   :  { %2515 = vst [vmem:[#allocation11 + $0xd0] sm:$0xff] %v2475_v18 }
 0x4a4   :  { %v2476_v63 = vpop.f32.mrf.mxu1 }
 0x4a5   :  { %v2477_v22 = vadd.f32 %v2476_v63, %v2388_v7 }
 0x4a7   :  { %2516 = vst [vmem:[#allocation11 + $0xd8] sm:$0xff] %v2477_v22 }
 0x4ac   :  { %v2479_v4 = vpop.f32.mrf.mxu1 }
 0x4ad   :  { %v2480_v35 = vadd.f32 %v2479_v4, %v2391_v46 }
 0x4af   :  { %2517 = vst [vmem:[#allocation11 + $0xe0] sm:$0xff] %v2480_v35 }
 0x4b4   :  { %v2481_v47 = vpop.f32.mrf.mxu1 }
 0x4b5   :  { %v2482_v32 = vadd.f32 %v2481_v47, %v2393_v55 }
 0x4b7   :  { %2518 = vst [vmem:[#allocation11 + $0xe8] sm:$0xff] %v2482_v32 }
 0x4bc   :  { %v2484_v29 = vpop.f32.mrf.mxu1 }
 0x4bd   :  { %v2485_v58 = vadd.f32 %v2484_v29, %v2396_v2 }
 0x4bf   :  { %2519 = vst [vmem:[#allocation11 + $0xf0] sm:$0xff] %v2485_v58 }
 0x4c4   :  { %v2486_v9 = vpop.f32.mrf.mxu1 }
 0x4c5   :  { %v2487_v0 = vadd.f32 %v2486_v9, %v2398_v34 }
 0x4c7   :  { %2520 = vst [vmem:[#allocation11 + $0xf8] sm:$0xff] %v2487_v0 }
 0x4c8   :  { %2533 = dma.vmem_to_hbm [thread:$0]  %s2526_s9, 4096, %s2528_s12, [#allocation4], %s3373_s13, %s3373_s13, %s3374_s14  }
 0x4c9   :  { %3367 = dma.done.wait [#allocation4], 4096  }
 0x4ca   :  { %3368 = vsyncadd [#allocation4], 4294963200 }
 0x4cb   :  { %2538 = vsyncpa [#allocation3], 1 }
 0x4cc   :  { %2539 = vsyncpa [#allocation6], 1 }
 0x4cd   :  { %2540 = vsyncpa [#allocation9], 1 }
 0x4ce   :  { %2541 = vsyncpa [#allocation4], 1 }

</bundles_post_ra>
